<compile_context>
chip_gen: v7x
topology: tpu7x:2x2x1
jax: 0.10.0
libtpu: 0.0.40
codegen_flags: <defaults>
</compile_context>

<pallas_src>
import math
import numpy as np
import jax
import jax.numpy as jnp
from jax.experimental import pallas as pl
from jax.experimental.pallas import tpu as pltpu

# ---------------- synthetic (small) BERT config ----------------
VOCAB = 200
HIDDEN = 128
NUM_HEADS = 2
HEAD_DIM = HIDDEN // NUM_HEADS
FFN = 256
NUM_LAYERS = 2
MAX_LEN = 128            # stands in for the module's max_len=512
CLS_ID, SEP_ID, PAD_ID = 101, 102, 0
LN_EPS = 1e-12


# ---------------- shared in-kernel helpers ----------------
def _layer_norm(z, gamma, beta):
    mu = jnp.mean(z, axis=-1, keepdims=True)
    var = jnp.mean(jnp.square(z - mu), axis=-1, keepdims=True)
    return (z - mu) * jax.lax.rsqrt(var + LN_EPS) * gamma + beta


# ---------------- fused Pallas kernel: embeddings + encoder + CLS head -------
def fused_bert_kernel(we_ref, tte_ref, pos_ref, tt0_ref, wts_ref, embg_ref, embb_ref,
                      bias_ref, wqkv_ref, bqkv_ref, wo_ref, bo_ref,
                      g1_ref, be1_ref, w1_ref, bf1_ref, w2_ref, bf2_ref,
                      g2_ref, be2_ref, clsw_ref, clsb_ref,
                      out_ref, h_ref):
    l = pl.program_id(1)
    n_layers = pl.num_programs(1)

    # ----- embedding prologue: only on the first layer iteration of each b -----
    @pl.when(l == 0)
    def _():
        pos = pos_ref[...]                                     # (S, H)
        g = embg_ref[...]                                      # (1, H)
        be = embb_ref[...]
        # bert.embeddings(input_ids=...)  (token_type defaults to 0)
        e1 = _layer_norm(we_ref[0] + pos + tt0_ref[...], g, be)
        # TODO(synk): embedding dropout omitted (eval-mode identity).
        x0 = e1 * wts_ref[0]                                   # passage weights
        # bert(inputs_embeds=x0, token_type_ids=...) re-applies pos/tt emb + LN
        h_ref[...] = _layer_norm(x0 + pos + tte_ref[0], g, be)

    # ----- one BERT encoder layer (hidden state resident in VMEM scratch) -----
    x = h_ref[...]                                             # (S, H) f32
    x_bf = x.astype(jnp.bfloat16)
    bias = bias_ref[0]                                         # (1, S), -1e9 on pads
    scale = 1.0 / math.sqrt(HEAD_DIM)

    attn = jnp.zeros((MAX_LEN, HIDDEN), jnp.float32)
    for hh in range(NUM_HEADS):                                # static unroll, 2 heads
        # per-head pre-split weights: no 64-lane slicing of a fused QKV tensor
        q = jnp.dot(x_bf, wqkv_ref[0, 0 * NUM_HEADS + hh],
                    preferred_element_type=jnp.float32) + bqkv_ref[0, 0 * NUM_HEADS + hh]
        k = jnp.dot(x_bf, wqkv_ref[0, 1 * NUM_HEADS + hh],
                    preferred_element_type=jnp.float32) + bqkv_ref[0, 1 * NUM_HEADS + hh]
        v = jnp.dot(x_bf, wqkv_ref[0, 2 * NUM_HEADS + hh],
                    preferred_element_type=jnp.float32) + bqkv_ref[0, 2 * NUM_HEADS + hh]
        # scores = q @ k^T  (contraction on head dim, no explicit transpose)
        s = jax.lax.dot_general(q.astype(jnp.bfloat16), k.astype(jnp.bfloat16),
                                (((1,), (1,)), ((), ())),
                                preferred_element_type=jnp.float32) * scale + bias
        s = s - jnp.max(s, axis=-1, keepdims=True)
        p = jnp.exp(s)
        p = p * pl.reciprocal(jnp.sum(p, axis=-1, keepdims=True), approx=True)
        ctx = jnp.dot(p.astype(jnp.bfloat16), v.astype(jnp.bfloat16),
                      preferred_element_type=jnp.float32)      # (S, HEAD_DIM)
        # fold output projection into the head loop (no concat relayout)
        attn = attn + jnp.dot(ctx.astype(jnp.bfloat16), wo_ref[0, hh],
                              preferred_element_type=jnp.float32)
    attn = attn + bo_ref[0]
    # TODO(synk): attention/hidden dropout omitted (eval-mode identity).
    h1 = _layer_norm(x + attn, g1_ref[0], be1_ref[0])

    ff = jnp.dot(h1.astype(jnp.bfloat16), w1_ref[0],
                 preferred_element_type=jnp.float32) + bf1_ref[0]
    # TODO(synk): HF default 'gelu' is erf-based; using tanh approximation for guaranteed Mosaic lowering.
    ff = jax.nn.gelu(ff, approximate=True)
    ff = jnp.dot(ff.astype(jnp.bfloat16), w2_ref[0],
                 preferred_element_type=jnp.float32) + bf2_ref[0]
    h_new = _layer_norm(h1 + ff, g2_ref[0], be2_ref[0])
    h_ref[...] = h_new

    # ----- CLS head epilogue: only on the last layer iteration of each b -----
    @pl.when(l == n_layers - 1)
    def _():
        # TODO(synk): dropout on cls_out omitted (eval-mode identity).
        cls_vec = h_new[0:1, :]                                # (1, H), CLS token
        score = jnp.sum(cls_vec * clsw_ref[...], axis=-1, keepdims=True) + clsb_ref[...]
        out_ref[...] = jnp.broadcast_to(score, (1, 1, HIDDEN)) # lane-dense store


def fused_bert_pallas(we, tte, pos, tt0, wts, emb_g, emb_b, bias, stk, cls_w, cls_b):
    B, S, H = we.shape
    L = NUM_LAYERS

    in_specs = [
        pl.BlockSpec((1, S, H), lambda b, l: (b, 0, 0)),                       # we
        pl.BlockSpec((1, S, H), lambda b, l: (b, 0, 0)),                       # tte
        pl.BlockSpec((S, H), lambda b, l: (0, 0)),                             # pos
        pl.BlockSpec((1, H), lambda b, l: (0, 0)),                             # tt0
        pl.BlockSpec((1, S, H), lambda b, l: (b, 0, 0)),                       # weights
        pl.BlockSpec((1, H), lambda b, l: (0, 0)),                             # emb LN g
        pl.BlockSpec((1, H), lambda b, l: (0, 0)),                             # emb LN b
        pl.BlockSpec((1, 1, S), lambda b, l: (b, 0, 0)),                       # mask bias
        pl.BlockSpec((1, 3 * NUM_HEADS, H, HEAD_DIM), lambda b, l: (l, 0, 0, 0)),  # wqkv
        pl.BlockSpec((1, 3 * NUM_HEADS, 1, HEAD_DIM), lambda b, l: (l, 0, 0, 0)),  # bqkv
        pl.BlockSpec((1, NUM_HEADS, HEAD_DIM, H), lambda b, l: (l, 0, 0, 0)),  # wo
        pl.BlockSpec((1, 1, H), lambda b, l: (l, 0, 0)),                       # bo
        pl.BlockSpec((1, 1, H), lambda b, l: (l, 0, 0)),                       # ln1 g
        pl.BlockSpec((1, 1, H), lambda b, l: (l, 0, 0)),                       # ln1 b
        pl.BlockSpec((1, H, FFN), lambda b, l: (l, 0, 0)),                     # w1
        pl.BlockSpec((1, 1, FFN), lambda b, l: (l, 0, 0)),                     # b1
        pl.BlockSpec((1, FFN, H), lambda b, l: (l, 0, 0)),                     # w2
        pl.BlockSpec((1, 1, H), lambda b, l: (l, 0, 0)),                       # b2
        pl.BlockSpec((1, 1, H), lambda b, l: (l, 0, 0)),                       # ln2 g
        pl.BlockSpec((1, 1, H), lambda b, l: (l, 0, 0)),                       # ln2 b
        pl.BlockSpec((1, H), lambda b, l: (0, 0)),                             # cls_w
        pl.BlockSpec((1, 1), lambda b, l: (0, 0)),                             # cls_b
    ]

    out = pl.pallas_call(
        fused_bert_kernel,
        out_shape=jax.ShapeDtypeStruct((B, 1, H), jnp.float32),
        grid=(B, L),
        in_specs=in_specs,
        out_specs=pl.BlockSpec((1, 1, H), lambda b, l: (b, 0, 0)),
        scratch_shapes=[pltpu.VMEM((S, H), jnp.float32)],       # resident hidden state
        compiler_params=pltpu.CompilerParams(
            dimension_semantics=("parallel", "arbitrary")),
    )(we, tte, pos, tt0, wts, emb_g, emb_b, bias,
      stk["wqkv"], stk["bqkv"], stk["wo"], stk["bo"],
      stk["ln1_g"], stk["ln1_b"], stk["w1"], stk["b1"], stk["w2"], stk["b2"],
      stk["ln2_g"], stk["ln2_b"], cls_w, cls_b)
    return out[:, 0, :1]                                        # (B, 1)


# ---------------- parameters (deterministic, synthetic) ----------------
def init_params(key):
    std = 0.02
    ks = jax.random.split(key, 5)
    params = {
        "word_emb": jax.random.normal(ks[0], (VOCAB, HIDDEN), jnp.float32) * std,
        "pos_emb": jax.random.normal(ks[1], (MAX_LEN, HIDDEN), jnp.float32) * std,
        "tt_emb": jax.random.normal(ks[2], (2, HIDDEN), jnp.float32) * std,
        "emb_ln_g": jnp.ones((1, HIDDEN), jnp.float32),
        "emb_ln_b": jnp.zeros((1, HIDDEN), jnp.float32),
        "cls_w": jax.random.normal(ks[3], (1, HIDDEN), jnp.float32) * std,
        "cls_b": jnp.zeros((1, 1), jnp.float32),
    }
    L = NUM_LAYERS
    kw = jax.random.split(ks[4], 4)
    # per-layer weights stacked on a leading layer axis; matmul weights in bf16
    # QKV laid out per head: index = kind*NUM_HEADS + head  (kind: 0=q, 1=k, 2=v)
    params["stacked"] = {
        "wqkv": (jax.random.normal(kw[0], (L, 3 * NUM_HEADS, HIDDEN, HEAD_DIM),
                                   jnp.float32) * std).astype(jnp.bfloat16),
        "bqkv": jnp.zeros((L, 3 * NUM_HEADS, 1, HEAD_DIM), jnp.float32),
        "wo": (jax.random.normal(kw[1], (L, NUM_HEADS, HEAD_DIM, HIDDEN),
                                 jnp.float32) * std).astype(jnp.bfloat16),
        "bo": jnp.zeros((L, 1, HIDDEN), jnp.float32),
        "ln1_g": jnp.ones((L, 1, HIDDEN), jnp.float32),
        "ln1_b": jnp.zeros((L, 1, HIDDEN), jnp.float32),
        "w1": (jax.random.normal(kw[2], (L, HIDDEN, FFN),
                                 jnp.float32) * std).astype(jnp.bfloat16),
        "b1": jnp.zeros((L, 1, FFN), jnp.float32),
        "w2": (jax.random.normal(kw[3], (L, FFN, HIDDEN),
                                 jnp.float32) * std).astype(jnp.bfloat16),
        "b2": jnp.zeros((L, 1, HIDDEN), jnp.float32),
        "ln2_g": jnp.ones((L, 1, HIDDEN), jnp.float32),
        "ln2_b": jnp.zeros((L, 1, HIDDEN), jnp.float32),
    }
    return params


# ---------------- host-side reproduction of _get_single_input ----------------
def build_single_input(query_in, doc_in, lengths, weights):
    in_ids = [np.array([CLS_ID], np.int64), np.asarray(query_in, np.int64),
              np.array([SEP_ID], np.int64)]
    running = len(query_in) + 2
    tt_ids = [np.zeros(running, np.int64)]
    in_weights = [np.ones(running, np.float32)]
    idx = 0
    for length, weight in zip(lengths, weights):
        assert length > 0
        nxt = idx + int(length)
        if float(weight) == 1.0:
            in_ids.append(np.asarray(doc_in[idx:nxt], np.int64))
            tt_ids.append(np.ones(int(length), np.int64))
            in_weights.append(np.full(int(length), float(weight), np.float32))
            running += int(length)
        idx = nxt
    in_ids.append(np.array([SEP_ID], np.int64))
    running += 1
    mask = [np.ones(running, np.float32)]
    remaining = MAX_LEN - min(running, MAX_LEN)
    if remaining > 0:
        in_ids.append(np.full(remaining, PAD_ID, np.int64))
        mask.append(np.zeros(remaining, np.float32))
    tt_ids.append(np.zeros(remaining + 1, np.int64))
    in_weights.append(np.ones(remaining + 1, np.float32))
    in_ids = np.concatenate(in_ids)[:MAX_LEN]
    mask = np.concatenate(mask)[:MAX_LEN]
    tt_ids = np.concatenate(tt_ids)[:MAX_LEN]
    in_weights = np.concatenate(in_weights)[:MAX_LEN]
    assert in_ids.shape[-1] == mask.shape[-1] == tt_ids.shape[-1] == in_weights.shape[-1] == MAX_LEN
    return in_ids, mask, tt_ids, in_weights


# ---------------- full forward ----------------
def forward(params, in_ids, mask, tt_ids, in_weights):
    B = in_ids.shape[0]
    # gathers / broadcasts are glue (plain JAX); all dense math runs in ONE Pallas kernel
    we = jnp.take(params["word_emb"], in_ids, axis=0)            # (B,S,H)
    tte = jnp.take(params["tt_emb"], tt_ids, axis=0)             # (B,S,H)
    tt0 = params["tt_emb"][0:1]                                  # (1,H)
    pos = params["pos_emb"]                                      # (S,H)
    wts = jnp.broadcast_to(in_weights[:, :, None], (B, MAX_LEN, HIDDEN))
    bias = ((1.0 - mask) * (-1e9))[:, None, :]                   # (B,1,S) hoisted mask bias
    return fused_bert_pallas(we, tte, pos, tt0, wts,
                             params["emb_ln_g"], params["emb_ln_b"], bias,
                             params["stacked"], params["cls_w"], params["cls_b"])


if __name__ == "__main__":
    key = jax.random.PRNGKey(0)
    kparams, kq, kd, kl = jax.random.split(key, 4)
    params = init_params(kparams)

    # synthetic SRBatch: (query_in, query_length, doc_in, doc_length, lengths), weights
    B, N_PASS, Q_MAX = 2, 3, 8
    query_lengths = np.array([4, 6], dtype=np.int32)
    query_in = np.asarray(jax.random.randint(kq, (B, Q_MAX), 103, VOCAB, dtype=jnp.int32))
    pass_lengths = np.asarray(jax.random.randint(kl, (B, N_PASS), 3, 9, dtype=jnp.int32))
    doc_lengths = pass_lengths.sum(axis=1).astype(np.int32)
    D_MAX = int(doc_lengths.max())
    doc_in = np.asarray(jax.random.randint(kd, (B, D_MAX), 103, VOCAB, dtype=jnp.int32))
    sel_weights = np.array([[1.0, 0.0, 1.0], [0.0, 1.0, 1.0]], dtype=np.float32)  # k-hot

    ids_b, mask_b, tt_b, w_b = [], [], [], []
    for b in range(B):
        q = query_in[b, :query_lengths[b]]
        d = doc_in[b, :doc_lengths[b]]
        i, m, t, w = build_single_input(q, d, pass_lengths[b], sel_weights[b])
        ids_b.append(i); mask_b.append(m); tt_b.append(t); w_b.append(w)

    batch_in_ids = jnp.asarray(np.stack(ids_b), dtype=jnp.int32)      # (B, MAX_LEN)
    batch_masks = jnp.asarray(np.stack(mask_b), dtype=jnp.float32)    # (B, MAX_LEN)
    batch_tt_ids = jnp.asarray(np.stack(tt_b), dtype=jnp.int32)       # (B, MAX_LEN)
    batch_weights = jnp.asarray(np.stack(w_b), dtype=jnp.float32)     # (B, MAX_LEN)

    scores = jax.jit(forward)(params, batch_in_ids, batch_masks,
                              batch_tt_ids, batch_weights)
    jax.block_until_ready(scores)
    assert scores.shape == (B, 1) and scores.dtype == jnp.float32
    assert bool(jnp.all(jnp.isfinite(scores)))
    print("KERNEL_OK")
</pallas_src>

<mosaic_0001>
module attributes {stable_mosaic.version = 11 : i64} {
  func.func @fused_bert_kernel(%arg0: i32, %arg1: i32, %arg2: memref<1x128x128xf32, #tpu.memory_space<vmem>>, %arg3: memref<1x128x128xf32, #tpu.memory_space<vmem>>, %arg4: memref<128x128xf32, #tpu.memory_space<vmem>>, %arg5: memref<1x128xf32, #tpu.memory_space<vmem>>, %arg6: memref<1x128x128xf32, #tpu.memory_space<vmem>>, %arg7: memref<1x128xf32, #tpu.memory_space<vmem>>, %arg8: memref<1x128xf32, #tpu.memory_space<vmem>>, %arg9: memref<1x1x128xf32, #tpu.memory_space<vmem>>, %arg10: memref<1x6x128x64xbf16, #tpu.memory_space<vmem>>, %arg11: memref<1x6x1x64xf32, #tpu.memory_space<vmem>>, %arg12: memref<1x2x64x128xbf16, #tpu.memory_space<vmem>>, %arg13: memref<1x1x128xf32, #tpu.memory_space<vmem>>, %arg14: memref<1x1x128xf32, #tpu.memory_space<vmem>>, %arg15: memref<1x1x128xf32, #tpu.memory_space<vmem>>, %arg16: memref<1x128x256xbf16, #tpu.memory_space<vmem>>, %arg17: memref<1x1x256xf32, #tpu.memory_space<vmem>>, %arg18: memref<1x256x128xbf16, #tpu.memory_space<vmem>>, %arg19: memref<1x1x128xf32, #tpu.memory_space<vmem>>, %arg20: memref<1x1x128xf32, #tpu.memory_space<vmem>>, %arg21: memref<1x1x128xf32, #tpu.memory_space<vmem>>, %arg22: memref<1x128xf32, #tpu.memory_space<vmem>>, %arg23: memref<1x1xf32, #tpu.memory_space<vmem>>, %arg24: memref<1x1x128xf32, #tpu.memory_space<vmem>>, %arg25: memref<128x128xf32, #tpu.memory_space<vmem>>) attributes {dimension_semantics = [#tpu.dimension_semantics<parallel>, #tpu.dimension_semantics<arbitrary>], iteration_bounds = array<i64: 2, 2>, scalar_prefetch = 0 : i64, scratch_operands = 1 : i64, tpu.core_type = #tpu.core_type<tc>, window_params = [{transform_indices = @transform_0, window_bounds = array<i64: 1, 128, 128>}, {transform_indices = @transform_1, window_bounds = array<i64: 1, 128, 128>}, {pipeline_mode = #tpu.pipeline_mode<synchronous>, transform_indices = @transform_2, window_bounds = array<i64: 128, 128>}, {pipeline_mode = #tpu.pipeline_mode<synchronous>, transform_indices = @transform_3, window_bounds = array<i64: 1, 128>}, {transform_indices = @transform_4, window_bounds = array<i64: 1, 128, 128>}, {pipeline_mode = #tpu.pipeline_mode<synchronous>, transform_indices = @transform_5, window_bounds = array<i64: 1, 128>}, {pipeline_mode = #tpu.pipeline_mode<synchronous>, transform_indices = @transform_6, window_bounds = array<i64: 1, 128>}, {transform_indices = @transform_7, window_bounds = array<i64: 1, 1, 128>}, {transform_indices = @transform_8, window_bounds = array<i64: 1, 6, 128, 64>}, {transform_indices = @transform_9, window_bounds = array<i64: 1, 6, 1, 64>}, {transform_indices = @transform_10, window_bounds = array<i64: 1, 2, 64, 128>}, {transform_indices = @transform_11, window_bounds = array<i64: 1, 1, 128>}, {transform_indices = @transform_12, window_bounds = array<i64: 1, 1, 128>}, {transform_indices = @transform_13, window_bounds = array<i64: 1, 1, 128>}, {transform_indices = @transform_14, window_bounds = array<i64: 1, 128, 256>}, {transform_indices = @transform_15, window_bounds = array<i64: 1, 1, 256>}, {transform_indices = @transform_16, window_bounds = array<i64: 1, 256, 128>}, {transform_indices = @transform_17, window_bounds = array<i64: 1, 1, 128>}, {transform_indices = @transform_18, window_bounds = array<i64: 1, 1, 128>}, {transform_indices = @transform_19, window_bounds = array<i64: 1, 1, 128>}, {pipeline_mode = #tpu.pipeline_mode<synchronous>, transform_indices = @transform_20, window_bounds = array<i64: 1, 128>}, {pipeline_mode = #tpu.pipeline_mode<synchronous>, transform_indices = @transform_21, window_bounds = array<i64: 1, 1>}, {transform_indices = @transform_22, window_bounds = array<i64: 1, 1, 128>}]} {
    %c0_i32 = arith.constant 0 : i32
    %0 = arith.cmpi eq, %arg1, %c0_i32 : i32
    %1 = arith.extui %0 : i1 to i32
    %c0_i32_0 = arith.constant 0 : i32
    %2 = arith.cmpi ne, %1, %c0_i32_0 : i32
    scf.if %2 {
      %c0_120 = arith.constant 0 : index
      %c0_121 = arith.constant 0 : index
      %191 = vector.load %arg4[%c0_120, %c0_121] : memref<128x128xf32, #tpu.memory_space<vmem>>, vector<128x128xf32>
      %c0_122 = arith.constant 0 : index
      %c0_123 = arith.constant 0 : index
      %192 = vector.load %arg7[%c0_122, %c0_123] : memref<1x128xf32, #tpu.memory_space<vmem>>, vector<1x128xf32>
      %c0_124 = arith.constant 0 : index
      %c0_125 = arith.constant 0 : index
      %193 = vector.load %arg8[%c0_124, %c0_125] : memref<1x128xf32, #tpu.memory_space<vmem>>, vector<1x128xf32>
      %c0_126 = arith.constant 0 : index
      %c0_127 = arith.constant 0 : index
      %c0_128 = arith.constant 0 : index
      %194 = vector.load %arg2[%c0_126, %c0_127, %c0_128] : memref<1x128x128xf32, #tpu.memory_space<vmem>>, vector<1x128x128xf32>
      %195 = vector.shape_cast %194 : vector<1x128x128xf32> to vector<128x128xf32>
      %196 = arith.addf %195, %191 : vector<128x128xf32>
      %c0_129 = arith.constant 0 : index
      %c0_130 = arith.constant 0 : index
      %197 = vector.load %arg5[%c0_129, %c0_130] : memref<1x128xf32, #tpu.memory_space<vmem>>, vector<1x128xf32>
      %198 = vector.broadcast %197 : vector<1x128xf32> to vector<128x128xf32>
      %199 = arith.addf %196, %198 : vector<128x128xf32>
      %cst_131 = arith.constant dense<0.000000e+00> : vector<128xf32>
      %200 = vector.multi_reduction <add>, %199, %cst_131 [1] : vector<128x128xf32> to vector<128xf32>
      %201 = vector.shape_cast %200 : vector<128xf32> to vector<128x1xf32>
      %cst_132 = arith.constant 1.280000e+02 : f32
      %202 = vector.broadcast %cst_132 : f32 to vector<128x1xf32>
      %203 = arith.divf %201, %202 : vector<128x1xf32>
      %204 = vector.broadcast %203 : vector<128x1xf32> to vector<128x128xf32>
      %205 = arith.subf %199, %204 : vector<128x128xf32>
      %206 = arith.mulf %205, %205 : vector<128x128xf32>
      %cst_133 = arith.constant dense<0.000000e+00> : vector<128xf32>
      %207 = vector.multi_reduction <add>, %206, %cst_133 [1] : vector<128x128xf32> to vector<128xf32>
      %208 = vector.shape_cast %207 : vector<128xf32> to vector<128x1xf32>
      %cst_134 = arith.constant 1.280000e+02 : f32
      %209 = vector.broadcast %cst_134 : f32 to vector<128x1xf32>
      %210 = arith.divf %208, %209 : vector<128x1xf32>
      %211 = vector.broadcast %203 : vector<128x1xf32> to vector<128x128xf32>
      %212 = arith.subf %199, %211 : vector<128x128xf32>
      %cst_135 = arith.constant 9.99999996E-13 : f32
      %213 = vector.broadcast %cst_135 : f32 to vector<128x1xf32>
      %214 = arith.addf %210, %213 : vector<128x1xf32>
      %215 = math.rsqrt %214 : vector<128x1xf32>
      %216 = vector.broadcast %215 : vector<128x1xf32> to vector<128x128xf32>
      %217 = arith.mulf %212, %216 : vector<128x128xf32>
      %218 = vector.broadcast %192 : vector<1x128xf32> to vector<128x128xf32>
      %219 = arith.mulf %217, %218 : vector<128x128xf32>
      %220 = vector.broadcast %193 : vector<1x128xf32> to vector<128x128xf32>
      %221 = arith.addf %219, %220 : vector<128x128xf32>
      %c0_136 = arith.constant 0 : index
      %c0_137 = arith.constant 0 : index
      %c0_138 = arith.constant 0 : index
      %222 = vector.load %arg6[%c0_136, %c0_137, %c0_138] : memref<1x128x128xf32, #tpu.memory_space<vmem>>, vector<1x128x128xf32>
      %223 = vector.shape_cast %222 : vector<1x128x128xf32> to vector<128x128xf32>
      %224 = arith.mulf %221, %223 : vector<128x128xf32>
      %225 = arith.addf %224, %191 : vector<128x128xf32>
      %c0_139 = arith.constant 0 : index
      %c0_140 = arith.constant 0 : index
      %c0_141 = arith.constant 0 : index
      %226 = vector.load %arg3[%c0_139, %c0_140, %c0_141] : memref<1x128x128xf32, #tpu.memory_space<vmem>>, vector<1x128x128xf32>
      %227 = vector.shape_cast %226 : vector<1x128x128xf32> to vector<128x128xf32>
      %228 = arith.addf %225, %227 : vector<128x128xf32>
      %cst_142 = arith.constant dense<0.000000e+00> : vector<128xf32>
      %229 = vector.multi_reduction <add>, %228, %cst_142 [1] : vector<128x128xf32> to vector<128xf32>
      %230 = vector.shape_cast %229 : vector<128xf32> to vector<128x1xf32>
      %cst_143 = arith.constant 1.280000e+02 : f32
      %231 = vector.broadcast %cst_143 : f32 to vector<128x1xf32>
      %232 = arith.divf %230, %231 : vector<128x1xf32>
      %233 = vector.broadcast %232 : vector<128x1xf32> to vector<128x128xf32>
      %234 = arith.subf %228, %233 : vector<128x128xf32>
      %235 = arith.mulf %234, %234 : vector<128x128xf32>
      %cst_144 = arith.constant dense<0.000000e+00> : vector<128xf32>
      %236 = vector.multi_reduction <add>, %235, %cst_144 [1] : vector<128x128xf32> to vector<128xf32>
      %237 = vector.shape_cast %236 : vector<128xf32> to vector<128x1xf32>
      %cst_145 = arith.constant 1.280000e+02 : f32
      %238 = vector.broadcast %cst_145 : f32 to vector<128x1xf32>
      %239 = arith.divf %237, %238 : vector<128x1xf32>
      %240 = vector.broadcast %232 : vector<128x1xf32> to vector<128x128xf32>
      %241 = arith.subf %228, %240 : vector<128x128xf32>
      %cst_146 = arith.constant 9.99999996E-13 : f32
      %242 = vector.broadcast %cst_146 : f32 to vector<128x1xf32>
      %243 = arith.addf %239, %242 : vector<128x1xf32>
      %244 = math.rsqrt %243 : vector<128x1xf32>
      %245 = vector.broadcast %244 : vector<128x1xf32> to vector<128x128xf32>
      %246 = arith.mulf %241, %245 : vector<128x128xf32>
      %247 = vector.broadcast %192 : vector<1x128xf32> to vector<128x128xf32>
      %248 = arith.mulf %246, %247 : vector<128x128xf32>
      %249 = vector.broadcast %193 : vector<1x128xf32> to vector<128x128xf32>
      %250 = arith.addf %248, %249 : vector<128x128xf32>
      %c0_147 = arith.constant 0 : index
      %c0_148 = arith.constant 0 : index
      %251 = vector.load %arg25[%c0_147, %c0_148] : memref<128x128xf32, #tpu.memory_space<vmem>>, vector<128x128xf32>
      tpu.vector_store %arg25[%c0_147, %c0_148], %250 {strides = array<i32>} : memref<128x128xf32, #tpu.memory_space<vmem>>, vector<128x128xf32>,
    } else {
    }
    %c0 = arith.constant 0 : index
    %c0_1 = arith.constant 0 : index
    %3 = vector.load %arg25[%c0, %c0_1] : memref<128x128xf32, #tpu.memory_space<vmem>>, vector<128x128xf32>
    %4 = arith.truncf %3 : vector<128x128xf32> to vector<128x128xbf16>
    %c0_2 = arith.constant 0 : index
    %c0_3 = arith.constant 0 : index
    %c0_4 = arith.constant 0 : index
    %5 = vector.load %arg9[%c0_2, %c0_3, %c0_4] : memref<1x1x128xf32, #tpu.memory_space<vmem>>, vector<1x1x128xf32>
    %6 = vector.shape_cast %5 : vector<1x1x128xf32> to vector<1x128xf32>
    %cst = arith.constant 0.000000e+00 : f32
    %7 = vector.broadcast %cst : f32 to vector<128x128xf32>
    %c0_5 = arith.constant 0 : index
    %c0_6 = arith.constant 0 : index
    %c0_7 = arith.constant 0 : index
    %c0_8 = arith.constant 0 : index
    %8 = vector.load %arg10[%c0_5, %c0_6, %c0_7, %c0_8] : memref<1x6x128x64xbf16, #tpu.memory_space<vmem>>, vector<1x1x128x64xbf16>
    %9 = vector.shape_cast %8 : vector<1x1x128x64xbf16> to vector<128x64xbf16>
    %cst_9 = arith.constant dense<0.000000e+00> : vector<128x64xf32>
    %10 = tpu.matmul %4, %9, %cst_9 {dimension_numbers = #tpu.dot_dimension_numbers<[1], [0], [0], [1], [0, 0, 1, 1], [], []>} : vector<128x128xbf16>, vector<128x64xbf16>, vector<128x64xf32> -> vector<128x64xf32>
    %c0_10 = arith.constant 0 : index
    %c0_11 = arith.constant 0 : index
    %c0_12 = arith.constant 0 : index
    %c0_13 = arith.constant 0 : index
    %11 = vector.load %arg11[%c0_10, %c0_11, %c0_12, %c0_13] : memref<1x6x1x64xf32, #tpu.memory_space<vmem>>, vector<1x1x1x64xf32>
    %12 = vector.shape_cast %11 : vector<1x1x1x64xf32> to vector<1x64xf32>
    %13 = vector.broadcast %12 : vector<1x64xf32> to vector<128x64xf32>
    %14 = arith.addf %10, %13 : vector<128x64xf32>
    %c0_14 = arith.constant 0 : index
    %c2 = arith.constant 2 : index
    %c0_15 = arith.constant 0 : index
    %c0_16 = arith.constant 0 : index
    %15 = vector.load %arg10[%c0_14, %c2, %c0_15, %c0_16] : memref<1x6x128x64xbf16, #tpu.memory_space<vmem>>, vector<1x1x128x64xbf16>
    %16 = vector.shape_cast %15 : vector<1x1x128x64xbf16> to vector<128x64xbf16>
    %cst_17 = arith.constant dense<0.000000e+00> : vector<128x64xf32>
    %17 = tpu.matmul %4, %16, %cst_17 {dimension_numbers = #tpu.dot_dimension_numbers<[1], [0], [0], [1], [0, 0, 1, 1], [], []>} : vector<128x128xbf16>, vector<128x64xbf16>, vector<128x64xf32> -> vector<128x64xf32>
    %c0_18 = arith.constant 0 : index
    %c2_19 = arith.constant 2 : index
    %c0_20 = arith.constant 0 : index
    %c0_21 = arith.constant 0 : index
    %18 = vector.load %arg11[%c0_18, %c2_19, %c0_20, %c0_21] : memref<1x6x1x64xf32, #tpu.memory_space<vmem>>, vector<1x1x1x64xf32>
    %19 = vector.shape_cast %18 : vector<1x1x1x64xf32> to vector<1x64xf32>
    %20 = vector.broadcast %19 : vector<1x64xf32> to vector<128x64xf32>
    %21 = arith.addf %17, %20 : vector<128x64xf32>
    %c0_22 = arith.constant 0 : index
    %c4 = arith.constant 4 : index
    %c0_23 = arith.constant 0 : index
    %c0_24 = arith.constant 0 : index
    %22 = vector.load %arg10[%c0_22, %c4, %c0_23, %c0_24] : memref<1x6x128x64xbf16, #tpu.memory_space<vmem>>, vector<1x1x128x64xbf16>
    %23 = vector.shape_cast %22 : vector<1x1x128x64xbf16> to vector<128x64xbf16>
    %cst_25 = arith.constant dense<0.000000e+00> : vector<128x64xf32>
    %24 = tpu.matmul %4, %23, %cst_25 {dimension_numbers = #tpu.dot_dimension_numbers<[1], [0], [0], [1], [0, 0, 1, 1], [], []>} : vector<128x128xbf16>, vector<128x64xbf16>, vector<128x64xf32> -> vector<128x64xf32>
    %c0_26 = arith.constant 0 : index
    %c4_27 = arith.constant 4 : index
    %c0_28 = arith.constant 0 : index
    %c0_29 = arith.constant 0 : index
    %25 = vector.load %arg11[%c0_26, %c4_27, %c0_28, %c0_29] : memref<1x6x1x64xf32, #tpu.memory_space<vmem>>, vector<1x1x1x64xf32>
    %26 = vector.shape_cast %25 : vector<1x1x1x64xf32> to vector<1x64xf32>
    %27 = vector.broadcast %26 : vector<1x64xf32> to vector<128x64xf32>
    %28 = arith.addf %24, %27 : vector<128x64xf32>
    %29 = arith.truncf %14 : vector<128x64xf32> to vector<128x64xbf16>
    %30 = arith.truncf %21 : vector<128x64xf32> to vector<128x64xbf16>
    %cst_30 = arith.constant dense<0.000000e+00> : vector<128x128xf32>
    %31 = tpu.matmul %29, %30, %cst_30 {dimension_numbers = #tpu.dot_dimension_numbers<[1], [1], [0], [0], [0, 0, 1, 0], [], []>} : vector<128x64xbf16>, vector<128x64xbf16>, vector<128x128xf32> -> vector<128x128xf32>
    %cst_31 = arith.constant 1.250000e-01 : f32
    %32 = vector.broadcast %cst_31 : f32 to vector<128x128xf32>
    %33 = arith.mulf %31, %32 : vector<128x128xf32>
    %34 = vector.broadcast %6 : vector<1x128xf32> to vector<128x128xf32>
    %35 = arith.addf %33, %34 : vector<128x128xf32>
    %cst_32 = arith.constant dense<0xFF800000> : vector<128xf32>
    %36 = vector.multi_reduction <maximumf>, %35, %cst_32 [1] : vector<128x128xf32> to vector<128xf32>
    %37 = vector.shape_cast %36 : vector<128xf32> to vector<128x1xf32>
    %38 = vector.broadcast %37 : vector<128x1xf32> to vector<128x128xf32>
    %39 = arith.subf %35, %38 : vector<128x128xf32>
    %40 = math.exp %39 : vector<128x128xf32>
    %cst_33 = arith.constant dense<0.000000e+00> : vector<128xf32>
    %41 = vector.multi_reduction <add>, %40, %cst_33 [1] : vector<128x128xf32> to vector<128xf32>
    %42 = vector.shape_cast %41 : vector<128xf32> to vector<128x1xf32>
    %43 = tpu.reciprocal %42 {approx = true} : vector<128x1xf32> -> vector<128x1xf32>
    %44 = vector.broadcast %43 : vector<128x1xf32> to vector<128x128xf32>
    %45 = arith.mulf %40, %44 : vector<128x128xf32>
    %46 = arith.truncf %45 : vector<128x128xf32> to vector<128x128xbf16>
    %47 = arith.truncf %28 : vector<128x64xf32> to vector<128x64xbf16>
    %cst_34 = arith.constant dense<0.000000e+00> : vector<128x64xf32>
    %48 = tpu.matmul %46, %47, %cst_34 {dimension_numbers = #tpu.dot_dimension_numbers<[1], [0], [0], [1], [0, 0, 1, 1], [], []>} : vector<128x128xbf16>, vector<128x64xbf16>, vector<128x64xf32> -> vector<128x64xf32>
    %49 = arith.truncf %48 : vector<128x64xf32> to vector<128x64xbf16>
    %c0_35 = arith.constant 0 : index
    %c0_36 = arith.constant 0 : index
    %c0_37 = arith.constant 0 : index
    %c0_38 = arith.constant 0 : index
    %50 = vector.load %arg12[%c0_35, %c0_36, %c0_37, %c0_38] : memref<1x2x64x128xbf16, #tpu.memory_space<vmem>>, vector<1x1x64x128xbf16>
    %51 = vector.shape_cast %50 : vector<1x1x64x128xbf16> to vector<64x128xbf16>
    %cst_39 = arith.constant dense<0.000000e+00> : vector<128x128xf32>
    %52 = tpu.matmul %49, %51, %cst_39 {dimension_numbers = #tpu.dot_dimension_numbers<[1], [0], [0], [1], [0, 0, 1, 1], [], []>} : vector<128x64xbf16>, vector<64x128xbf16>, vector<128x128xf32> -> vector<128x128xf32>
    %53 = arith.addf %7, %52 : vector<128x128xf32>
    %c0_40 = arith.constant 0 : index
    %c1 = arith.constant 1 : index
    %c0_41 = arith.constant 0 : index
    %c0_42 = arith.constant 0 : index
    %54 = vector.load %arg10[%c0_40, %c1, %c0_41, %c0_42] : memref<1x6x128x64xbf16, #tpu.memory_space<vmem>>, vector<1x1x128x64xbf16>
    %55 = vector.shape_cast %54 : vector<1x1x128x64xbf16> to vector<128x64xbf16>
    %cst_43 = arith.constant dense<0.000000e+00> : vector<128x64xf32>
    %56 = tpu.matmul %4, %55, %cst_43 {dimension_numbers = #tpu.dot_dimension_numbers<[1], [0], [0], [1], [0, 0, 1, 1], [], []>} : vector<128x128xbf16>, vector<128x64xbf16>, vector<128x64xf32> -> vector<128x64xf32>
    %c0_44 = arith.constant 0 : index
    %c1_45 = arith.constant 1 : index
    %c0_46 = arith.constant 0 : index
    %c0_47 = arith.constant 0 : index
    %57 = vector.load %arg11[%c0_44, %c1_45, %c0_46, %c0_47] : memref<1x6x1x64xf32, #tpu.memory_space<vmem>>, vector<1x1x1x64xf32>
    %58 = vector.shape_cast %57 : vector<1x1x1x64xf32> to vector<1x64xf32>
    %59 = vector.broadcast %58 : vector<1x64xf32> to vector<128x64xf32>
    %60 = arith.addf %56, %59 : vector<128x64xf32>
    %c0_48 = arith.constant 0 : index
    %c3 = arith.constant 3 : index
    %c0_49 = arith.constant 0 : index
    %c0_50 = arith.constant 0 : index
    %61 = vector.load %arg10[%c0_48, %c3, %c0_49, %c0_50] : memref<1x6x128x64xbf16, #tpu.memory_space<vmem>>, vector<1x1x128x64xbf16>
    %62 = vector.shape_cast %61 : vector<1x1x128x64xbf16> to vector<128x64xbf16>
    %cst_51 = arith.constant dense<0.000000e+00> : vector<128x64xf32>
    %63 = tpu.matmul %4, %62, %cst_51 {dimension_numbers = #tpu.dot_dimension_numbers<[1], [0], [0], [1], [0, 0, 1, 1], [], []>} : vector<128x128xbf16>, vector<128x64xbf16>, vector<128x64xf32> -> vector<128x64xf32>
    %c0_52 = arith.constant 0 : index
    %c3_53 = arith.constant 3 : index
    %c0_54 = arith.constant 0 : index
    %c0_55 = arith.constant 0 : index
    %64 = vector.load %arg11[%c0_52, %c3_53, %c0_54, %c0_55] : memref<1x6x1x64xf32, #tpu.memory_space<vmem>>, vector<1x1x1x64xf32>
    %65 = vector.shape_cast %64 : vector<1x1x1x64xf32> to vector<1x64xf32>
    %66 = vector.broadcast %65 : vector<1x64xf32> to vector<128x64xf32>
    %67 = arith.addf %63, %66 : vector<128x64xf32>
    %c0_56 = arith.constant 0 : index
    %c5 = arith.constant 5 : index
    %c0_57 = arith.constant 0 : index
    %c0_58 = arith.constant 0 : index
    %68 = vector.load %arg10[%c0_56, %c5, %c0_57, %c0_58] : memref<1x6x128x64xbf16, #tpu.memory_space<vmem>>, vector<1x1x128x64xbf16>
    %69 = vector.shape_cast %68 : vector<1x1x128x64xbf16> to vector<128x64xbf16>
    %cst_59 = arith.constant dense<0.000000e+00> : vector<128x64xf32>
    %70 = tpu.matmul %4, %69, %cst_59 {dimension_numbers = #tpu.dot_dimension_numbers<[1], [0], [0], [1], [0, 0, 1, 1], [], []>} : vector<128x128xbf16>, vector<128x64xbf16>, vector<128x64xf32> -> vector<128x64xf32>
    %c0_60 = arith.constant 0 : index
    %c5_61 = arith.constant 5 : index
    %c0_62 = arith.constant 0 : index
    %c0_63 = arith.constant 0 : index
    %71 = vector.load %arg11[%c0_60, %c5_61, %c0_62, %c0_63] : memref<1x6x1x64xf32, #tpu.memory_space<vmem>>, vector<1x1x1x64xf32>
    %72 = vector.shape_cast %71 : vector<1x1x1x64xf32> to vector<1x64xf32>
    %73 = vector.broadcast %72 : vector<1x64xf32> to vector<128x64xf32>
    %74 = arith.addf %70, %73 : vector<128x64xf32>
    %75 = arith.truncf %60 : vector<128x64xf32> to vector<128x64xbf16>
    %76 = arith.truncf %67 : vector<128x64xf32> to vector<128x64xbf16>
    %cst_64 = arith.constant dense<0.000000e+00> : vector<128x128xf32>
    %77 = tpu.matmul %75, %76, %cst_64 {dimension_numbers = #tpu.dot_dimension_numbers<[1], [1], [0], [0], [0, 0, 1, 0], [], []>} : vector<128x64xbf16>, vector<128x64xbf16>, vector<128x128xf32> -> vector<128x128xf32>
    %cst_65 = arith.constant 1.250000e-01 : f32
    %78 = vector.broadcast %cst_65 : f32 to vector<128x128xf32>
    %79 = arith.mulf %77, %78 : vector<128x128xf32>
    %80 = vector.broadcast %6 : vector<1x128xf32> to vector<128x128xf32>
    %81 = arith.addf %79, %80 : vector<128x128xf32>
    %cst_66 = arith.constant dense<0xFF800000> : vector<128xf32>
    %82 = vector.multi_reduction <maximumf>, %81, %cst_66 [1] : vector<128x128xf32> to vector<128xf32>
    %83 = vector.shape_cast %82 : vector<128xf32> to vector<128x1xf32>
    %84 = vector.broadcast %83 : vector<128x1xf32> to vector<128x128xf32>
    %85 = arith.subf %81, %84 : vector<128x128xf32>
    %86 = math.exp %85 : vector<128x128xf32>
    %cst_67 = arith.constant dense<0.000000e+00> : vector<128xf32>
    %87 = vector.multi_reduction <add>, %86, %cst_67 [1] : vector<128x128xf32> to vector<128xf32>
    %88 = vector.shape_cast %87 : vector<128xf32> to vector<128x1xf32>
    %89 = tpu.reciprocal %88 {approx = true} : vector<128x1xf32> -> vector<128x1xf32>
    %90 = vector.broadcast %89 : vector<128x1xf32> to vector<128x128xf32>
    %91 = arith.mulf %86, %90 : vector<128x128xf32>
    %92 = arith.truncf %91 : vector<128x128xf32> to vector<128x128xbf16>
    %93 = arith.truncf %74 : vector<128x64xf32> to vector<128x64xbf16>
    %cst_68 = arith.constant dense<0.000000e+00> : vector<128x64xf32>
    %94 = tpu.matmul %92, %93, %cst_68 {dimension_numbers = #tpu.dot_dimension_numbers<[1], [0], [0], [1], [0, 0, 1, 1], [], []>} : vector<128x128xbf16>, vector<128x64xbf16>, vector<128x64xf32> -> vector<128x64xf32>
    %95 = arith.truncf %94 : vector<128x64xf32> to vector<128x64xbf16>
    %c0_69 = arith.constant 0 : index
    %c1_70 = arith.constant 1 : index
    %c0_71 = arith.constant 0 : index
    %c0_72 = arith.constant 0 : index
    %96 = vector.load %arg12[%c0_69, %c1_70, %c0_71, %c0_72] : memref<1x2x64x128xbf16, #tpu.memory_space<vmem>>, vector<1x1x64x128xbf16>
    %97 = vector.shape_cast %96 : vector<1x1x64x128xbf16> to vector<64x128xbf16>
    %cst_73 = arith.constant dense<0.000000e+00> : vector<128x128xf32>
    %98 = tpu.matmul %95, %97, %cst_73 {dimension_numbers = #tpu.dot_dimension_numbers<[1], [0], [0], [1], [0, 0, 1, 1], [], []>} : vector<128x64xbf16>, vector<64x128xbf16>, vector<128x128xf32> -> vector<128x128xf32>
    %99 = arith.addf %53, %98 : vector<128x128xf32>
    %c0_74 = arith.constant 0 : index
    %c0_75 = arith.constant 0 : index
    %c0_76 = arith.constant 0 : index
    %100 = vector.load %arg13[%c0_74, %c0_75, %c0_76] : memref<1x1x128xf32, #tpu.memory_space<vmem>>, vector<1x1x128xf32>
    %101 = vector.shape_cast %100 : vector<1x1x128xf32> to vector<1x128xf32>
    %102 = vector.broadcast %101 : vector<1x128xf32> to vector<128x128xf32>
    %103 = arith.addf %99, %102 : vector<128x128xf32>
    %104 = arith.addf %3, %103 : vector<128x128xf32>
    %c0_77 = arith.constant 0 : index
    %c0_78 = arith.constant 0 : index
    %c0_79 = arith.constant 0 : index
    %105 = vector.load %arg14[%c0_77, %c0_78, %c0_79] : memref<1x1x128xf32, #tpu.memory_space<vmem>>, vector<1x1x128xf32>
    %106 = vector.shape_cast %105 : vector<1x1x128xf32> to vector<1x128xf32>
    %c0_80 = arith.constant 0 : index
    %c0_81 = arith.constant 0 : index
    %c0_82 = arith.constant 0 : index
    %107 = vector.load %arg15[%c0_80, %c0_81, %c0_82] : memref<1x1x128xf32, #tpu.memory_space<vmem>>, vector<1x1x128xf32>
    %108 = vector.shape_cast %107 : vector<1x1x128xf32> to vector<1x128xf32>
    %cst_83 = arith.constant dense<0.000000e+00> : vector<128xf32>
    %109 = vector.multi_reduction <add>, %104, %cst_83 [1] : vector<128x128xf32> to vector<128xf32>
    %110 = vector.shape_cast %109 : vector<128xf32> to vector<128x1xf32>
    %cst_84 = arith.constant 1.280000e+02 : f32
    %111 = vector.broadcast %cst_84 : f32 to vector<128x1xf32>
    %112 = arith.divf %110, %111 : vector<128x1xf32>
    %113 = vector.broadcast %112 : vector<128x1xf32> to vector<128x128xf32>
    %114 = arith.subf %104, %113 : vector<128x128xf32>
    %115 = arith.mulf %114, %114 : vector<128x128xf32>
    %cst_85 = arith.constant dense<0.000000e+00> : vector<128xf32>
    %116 = vector.multi_reduction <add>, %115, %cst_85 [1] : vector<128x128xf32> to vector<128xf32>
    %117 = vector.shape_cast %116 : vector<128xf32> to vector<128x1xf32>
    %cst_86 = arith.constant 1.280000e+02 : f32
    %118 = vector.broadcast %cst_86 : f32 to vector<128x1xf32>
    %119 = arith.divf %117, %118 : vector<128x1xf32>
    %120 = vector.broadcast %112 : vector<128x1xf32> to vector<128x128xf32>
    %121 = arith.subf %104, %120 : vector<128x128xf32>
    %cst_87 = arith.constant 9.99999996E-13 : f32
    %122 = vector.broadcast %cst_87 : f32 to vector<128x1xf32>
    %123 = arith.addf %119, %122 : vector<128x1xf32>
    %124 = math.rsqrt %123 : vector<128x1xf32>
    %125 = vector.broadcast %124 : vector<128x1xf32> to vector<128x128xf32>
    %126 = arith.mulf %121, %125 : vector<128x128xf32>
    %127 = vector.broadcast %106 : vector<1x128xf32> to vector<128x128xf32>
    %128 = arith.mulf %126, %127 : vector<128x128xf32>
    %129 = vector.broadcast %108 : vector<1x128xf32> to vector<128x128xf32>
    %130 = arith.addf %128, %129 : vector<128x128xf32>
    %131 = arith.truncf %130 : vector<128x128xf32> to vector<128x128xbf16>
    %c0_88 = arith.constant 0 : index
    %c0_89 = arith.constant 0 : index
    %c0_90 = arith.constant 0 : index
    %132 = vector.load %arg16[%c0_88, %c0_89, %c0_90] : memref<1x128x256xbf16, #tpu.memory_space<vmem>>, vector<1x128x256xbf16>
    %133 = vector.shape_cast %132 : vector<1x128x256xbf16> to vector<128x256xbf16>
    %cst_91 = arith.constant dense<0.000000e+00> : vector<128x256xf32>
    %134 = tpu.matmul %131, %133, %cst_91 {dimension_numbers = #tpu.dot_dimension_numbers<[1], [0], [0], [1], [0, 0, 1, 1], [], []>} : vector<128x128xbf16>, vector<128x256xbf16>, vector<128x256xf32> -> vector<128x256xf32>
    %c0_92 = arith.constant 0 : index
    %c0_93 = arith.constant 0 : index
    %c0_94 = arith.constant 0 : index
    %135 = vector.load %arg17[%c0_92, %c0_93, %c0_94] : memref<1x1x256xf32, #tpu.memory_space<vmem>>, vector<1x1x256xf32>
    %136 = vector.shape_cast %135 : vector<1x1x256xf32> to vector<1x256xf32>
    %137 = vector.broadcast %136 : vector<1x256xf32> to vector<128x256xf32>
    %138 = arith.addf %134, %137 : vector<128x256xf32>
    %139 = arith.mulf %138, %138 : vector<128x256xf32>
    %140 = arith.mulf %138, %139 : vector<128x256xf32>
    %cst_95 = arith.constant 4.471500e-02 : f32
    %141 = vector.broadcast %cst_95 : f32 to vector<128x256xf32>
    %142 = arith.mulf %141, %140 : vector<128x256xf32>
    %143 = arith.addf %138, %142 : vector<128x256xf32>
    %cst_96 = arith.constant 0.797884583 : f32
    %144 = vector.broadcast %cst_96 : f32 to vector<128x256xf32>
    %145 = arith.mulf %144, %143 : vector<128x256xf32>
    %146 = math.tanh %145 : vector<128x256xf32>
    %cst_97 = arith.constant 1.000000e+00 : f32
    %147 = vector.broadcast %cst_97 : f32 to vector<128x256xf32>
    %148 = arith.addf %147, %146 : vector<128x256xf32>
    %cst_98 = arith.constant 5.000000e-01 : f32
    %149 = vector.broadcast %cst_98 : f32 to vector<128x256xf32>
    %150 = arith.mulf %149, %148 : vector<128x256xf32>
    %151 = arith.mulf %138, %150 : vector<128x256xf32>
    %152 = arith.truncf %151 : vector<128x256xf32> to vector<128x256xbf16>
    %c0_99 = arith.constant 0 : index
    %c0_100 = arith.constant 0 : index
    %c0_101 = arith.constant 0 : index
    %153 = vector.load %arg18[%c0_99, %c0_100, %c0_101] : memref<1x256x128xbf16, #tpu.memory_space<vmem>>, vector<1x256x128xbf16>
    %154 = vector.shape_cast %153 : vector<1x256x128xbf16> to vector<256x128xbf16>
    %cst_102 = arith.constant dense<0.000000e+00> : vector<128x128xf32>
    %155 = tpu.matmul %152, %154, %cst_102 {dimension_numbers = #tpu.dot_dimension_numbers<[1], [0], [0], [1], [0, 0, 1, 1], [], []>} : vector<128x256xbf16>, vector<256x128xbf16>, vector<128x128xf32> -> vector<128x128xf32>
    %c0_103 = arith.constant 0 : index
    %c0_104 = arith.constant 0 : index
    %c0_105 = arith.constant 0 : index
    %156 = vector.load %arg19[%c0_103, %c0_104, %c0_105] : memref<1x1x128xf32, #tpu.memory_space<vmem>>, vector<1x1x128xf32>
    %157 = vector.shape_cast %156 : vector<1x1x128xf32> to vector<1x128xf32>
    %158 = vector.broadcast %157 : vector<1x128xf32> to vector<128x128xf32>
    %159 = arith.addf %155, %158 : vector<128x128xf32>
    %160 = arith.addf %130, %159 : vector<128x128xf32>
    %c0_106 = arith.constant 0 : index
    %c0_107 = arith.constant 0 : index
    %c0_108 = arith.constant 0 : index
    %161 = vector.load %arg20[%c0_106, %c0_107, %c0_108] : memref<1x1x128xf32, #tpu.memory_space<vmem>>, vector<1x1x128xf32>
    %162 = vector.shape_cast %161 : vector<1x1x128xf32> to vector<1x128xf32>
    %c0_109 = arith.constant 0 : index
    %c0_110 = arith.constant 0 : index
    %c0_111 = arith.constant 0 : index
    %163 = vector.load %arg21[%c0_109, %c0_110, %c0_111] : memref<1x1x128xf32, #tpu.memory_space<vmem>>, vector<1x1x128xf32>
    %164 = vector.shape_cast %163 : vector<1x1x128xf32> to vector<1x128xf32>
    %cst_112 = arith.constant dense<0.000000e+00> : vector<128xf32>
    %165 = vector.multi_reduction <add>, %160, %cst_112 [1] : vector<128x128xf32> to vector<128xf32>
    %166 = vector.shape_cast %165 : vector<128xf32> to vector<128x1xf32>
    %cst_113 = arith.constant 1.280000e+02 : f32
    %167 = vector.broadcast %cst_113 : f32 to vector<128x1xf32>
    %168 = arith.divf %166, %167 : vector<128x1xf32>
    %169 = vector.broadcast %168 : vector<128x1xf32> to vector<128x128xf32>
    %170 = arith.subf %160, %169 : vector<128x128xf32>
    %171 = arith.mulf %170, %170 : vector<128x128xf32>
    %cst_114 = arith.constant dense<0.000000e+00> : vector<128xf32>
    %172 = vector.multi_reduction <add>, %171, %cst_114 [1] : vector<128x128xf32> to vector<128xf32>
    %173 = vector.shape_cast %172 : vector<128xf32> to vector<128x1xf32>
    %cst_115 = arith.constant 1.280000e+02 : f32
    %174 = vector.broadcast %cst_115 : f32 to vector<128x1xf32>
    %175 = arith.divf %173, %174 : vector<128x1xf32>
    %176 = vector.broadcast %168 : vector<128x1xf32> to vector<128x128xf32>
    %177 = arith.subf %160, %176 : vector<128x128xf32>
    %cst_116 = arith.constant 9.99999996E-13 : f32
    %178 = vector.broadcast %cst_116 : f32 to vector<128x1xf32>
    %179 = arith.addf %175, %178 : vector<128x1xf32>
    %180 = math.rsqrt %179 : vector<128x1xf32>
    %181 = vector.broadcast %180 : vector<128x1xf32> to vector<128x128xf32>
    %182 = arith.mulf %177, %181 : vector<128x128xf32>
    %183 = vector.broadcast %162 : vector<1x128xf32> to vector<128x128xf32>
    %184 = arith.mulf %182, %183 : vector<128x128xf32>
    %185 = vector.broadcast %164 : vector<1x128xf32> to vector<128x128xf32>
    %186 = arith.addf %184, %185 : vector<128x128xf32>
    %c0_117 = arith.constant 0 : index
    %c0_118 = arith.constant 0 : index
    %187 = vector.load %arg25[%c0_117, %c0_118] : memref<128x128xf32, #tpu.memory_space<vmem>>, vector<128x128xf32>
    tpu.vector_store %arg25[%c0_117, %c0_118], %186 {strides = array<i32>} : memref<128x128xf32, #tpu.memory_space<vmem>>, vector<128x128xf32>,
    %c1_i32 = arith.constant 1 : i32
    %188 = arith.cmpi eq, %arg1, %c1_i32 : i32
    %189 = arith.extui %188 : i1 to i32
    %c0_i32_119 = arith.constant 0 : i32
    %190 = arith.cmpi ne, %189, %c0_i32_119 : i32
    scf.if %190 {
      %191 = vector.extract_strided_slice %186 {offsets = [0, 0], sizes = [1, 128], strides = [1, 1]} : vector<128x128xf32> to vector<1x128xf32>
      %c0_120 = arith.constant 0 : index
      %c0_121 = arith.constant 0 : index
      %192 = vector.load %arg22[%c0_120, %c0_121] : memref<1x128xf32, #tpu.memory_space<vmem>>, vector<1x128xf32>
      %193 = arith.mulf %191, %192 : vector<1x128xf32>
      %cst_122 = arith.constant dense<0.000000e+00> : vector<1xf32>
      %194 = vector.multi_reduction <add>, %193, %cst_122 [1] : vector<1x128xf32> to vector<1xf32>
      %195 = vector.shape_cast %194 : vector<1xf32> to vector<1x1xf32>
      %c0_123 = arith.constant 0 : index
      %c0_124 = arith.constant 0 : index
      %196 = vector.load %arg23[%c0_123, %c0_124] : memref<1x1xf32, #tpu.memory_space<vmem>>, vector<1x1xf32>
      %197 = arith.addf %195, %196 : vector<1x1xf32>
      %198 = vector.shape_cast %197 : vector<1x1xf32> to vector<1x1x1xf32>
      %199 = vector.broadcast %198 : vector<1x1x1xf32> to vector<1x1x128xf32>
      %c0_125 = arith.constant 0 : index
      %c0_126 = arith.constant 0 : index
      %c0_127 = arith.constant 0 : index
      %200 = vector.load %arg24[%c0_125, %c0_126, %c0_127] : memref<1x1x128xf32, #tpu.memory_space<vmem>>, vector<1x1x128xf32>
      tpu.vector_store %arg24[%c0_125, %c0_126, %c0_127], %199 {strides = array<i32>} : memref<1x1x128xf32, #tpu.memory_space<vmem>>, vector<1x1x128xf32>,
    } else {
    }
    return
  }
  func.func @transform_0(%arg0: i32, %arg1: i32) -> (i32, i32, i32) {
    %c0_i32 = arith.constant 0 : i32
    %c0_i32_0 = arith.constant 0 : i32
    %c0_i32_1 = arith.constant 0 : i32
    return %arg0, %c0_i32, %c0_i32_0 : i32, i32, i32
  }
  func.func @transform_1(%arg0: i32, %arg1: i32) -> (i32, i32, i32) {
    %c0_i32 = arith.constant 0 : i32
    %c0_i32_0 = arith.constant 0 : i32
    %c0_i32_1 = arith.constant 0 : i32
    return %arg0, %c0_i32, %c0_i32_0 : i32, i32, i32
  }
  func.func @transform_2(%arg0: i32, %arg1: i32) -> (i32, i32) {
    %c0_i32 = arith.constant 0 : i32
    %c0_i32_0 = arith.constant 0 : i32
    %c0_i32_1 = arith.constant 0 : i32
    return %c0_i32, %c0_i32_0 : i32, i32
  }
  func.func @transform_3(%arg0: i32, %arg1: i32) -> (i32, i32) {
    %c0_i32 = arith.constant 0 : i32
    %c0_i32_0 = arith.constant 0 : i32
    %c0_i32_1 = arith.constant 0 : i32
    return %c0_i32, %c0_i32_0 : i32, i32
  }
  func.func @transform_4(%arg0: i32, %arg1: i32) -> (i32, i32, i32) {
    %c0_i32 = arith.constant 0 : i32
    %c0_i32_0 = arith.constant 0 : i32
    %c0_i32_1 = arith.constant 0 : i32
    return %arg0, %c0_i32, %c0_i32_0 : i32, i32, i32
  }
  func.func @transform_5(%arg0: i32, %arg1: i32) -> (i32, i32) {
    %c0_i32 = arith.constant 0 : i32
    %c0_i32_0 = arith.constant 0 : i32
    %c0_i32_1 = arith.constant 0 : i32
    return %c0_i32, %c0_i32_0 : i32, i32
  }
  func.func @transform_6(%arg0: i32, %arg1: i32) -> (i32, i32) {
    %c0_i32 = arith.constant 0 : i32
    %c0_i32_0 = arith.constant 0 : i32
    %c0_i32_1 = arith.constant 0 : i32
    return %c0_i32, %c0_i32_0 : i32, i32
  }
  func.func @transform_7(%arg0: i32, %arg1: i32) -> (i32, i32, i32) {
    %c0_i32 = arith.constant 0 : i32
    %c0_i32_0 = arith.constant 0 : i32
    %c0_i32_1 = arith.constant 0 : i32
    return %arg0, %c0_i32, %c0_i32_0 : i32, i32, i32
  }
  func.func @transform_8(%arg0: i32, %arg1: i32) -> (i32, i32, i32, i32) {
    %c0_i32 = arith.constant 0 : i32
    %c0_i32_0 = arith.constant 0 : i32
    %c0_i32_1 = arith.constant 0 : i32
    %c0_i32_2 = arith.constant 0 : i32
    return %arg1, %c0_i32, %c0_i32_0, %c0_i32_1 : i32, i32, i32, i32
  }
  func.func @transform_9(%arg0: i32, %arg1: i32) -> (i32, i32, i32, i32) {
    %c0_i32 = arith.constant 0 : i32
    %c0_i32_0 = arith.constant 0 : i32
    %c0_i32_1 = arith.constant 0 : i32
    %c0_i32_2 = arith.constant 0 : i32
    return %arg1, %c0_i32, %c0_i32_0, %c0_i32_1 : i32, i32, i32, i32
  }
  func.func @transform_10(%arg0: i32, %arg1: i32) -> (i32, i32, i32, i32) {
    %c0_i32 = arith.constant 0 : i32
    %c0_i32_0 = arith.constant 0 : i32
    %c0_i32_1 = arith.constant 0 : i32
    %c0_i32_2 = arith.constant 0 : i32
    return %arg1, %c0_i32, %c0_i32_0, %c0_i32_1 : i32, i32, i32, i32
  }
  func.func @transform_11(%arg0: i32, %arg1: i32) -> (i32, i32, i32) {
    %c0_i32 = arith.constant 0 : i32
    %c0_i32_0 = arith.constant 0 : i32
    %c0_i32_1 = arith.constant 0 : i32
    return %arg1, %c0_i32, %c0_i32_0 : i32, i32, i32
  }
  func.func @transform_12(%arg0: i32, %arg1: i32) -> (i32, i32, i32) {
    %c0_i32 = arith.constant 0 : i32
    %c0_i32_0 = arith.constant 0 : i32
    %c0_i32_1 = arith.constant 0 : i32
    return %arg1, %c0_i32, %c0_i32_0 : i32, i32, i32
  }
  func.func @transform_13(%arg0: i32, %arg1: i32) -> (i32, i32, i32) {
    %c0_i32 = arith.constant 0 : i32
    %c0_i32_0 = arith.constant 0 : i32
    %c0_i32_1 = arith.constant 0 : i32
    return %arg1, %c0_i32, %c0_i32_0 : i32, i32, i32
  }
  func.func @transform_14(%arg0: i32, %arg1: i32) -> (i32, i32, i32) {
    %c0_i32 = arith.constant 0 : i32
    %c0_i32_0 = arith.constant 0 : i32
    %c0_i32_1 = arith.constant 0 : i32
    return %arg1, %c0_i32, %c0_i32_0 : i32, i32, i32
  }
  func.func @transform_15(%arg0: i32, %arg1: i32) -> (i32, i32, i32) {
    %c0_i32 = arith.constant 0 : i32
    %c0_i32_0 = arith.constant 0 : i32
    %c0_i32_1 = arith.constant 0 : i32
    return %arg1, %c0_i32, %c0_i32_0 : i32, i32, i32
  }
  func.func @transform_16(%arg0: i32, %arg1: i32) -> (i32, i32, i32) {
    %c0_i32 = arith.constant 0 : i32
    %c0_i32_0 = arith.constant 0 : i32
    %c0_i32_1 = arith.constant 0 : i32
    return %arg1, %c0_i32, %c0_i32_0 : i32, i32, i32
  }
  func.func @transform_17(%arg0: i32, %arg1: i32) -> (i32, i32, i32) {
    %c0_i32 = arith.constant 0 : i32
    %c0_i32_0 = arith.constant 0 : i32
    %c0_i32_1 = arith.constant 0 : i32
    return %arg1, %c0_i32, %c0_i32_0 : i32, i32, i32
  }
  func.func @transform_18(%arg0: i32, %arg1: i32) -> (i32, i32, i32) {
    %c0_i32 = arith.constant 0 : i32
    %c0_i32_0 = arith.constant 0 : i32
    %c0_i32_1 = arith.constant 0 : i32
    return %arg1, %c0_i32, %c0_i32_0 : i32, i32, i32
  }
  func.func @transform_19(%arg0: i32, %arg1: i32) -> (i32, i32, i32) {
    %c0_i32 = arith.constant 0 : i32
    %c0_i32_0 = arith.constant 0 : i32
    %c0_i32_1 = arith.constant 0 : i32
    return %arg1, %c0_i32, %c0_i32_0 : i32, i32, i32
  }
  func.func @transform_20(%arg0: i32, %arg1: i32) -> (i32, i32) {
    %c0_i32 = arith.constant 0 : i32
    %c0_i32_0 = arith.constant 0 : i32
    %c0_i32_1 = arith.constant 0 : i32
    return %c0_i32, %c0_i32_0 : i32, i32
  }
  func.func @transform_21(%arg0: i32, %arg1: i32) -> (i32, i32) {
    %c0_i32 = arith.constant 0 : i32
    %c0_i32_0 = arith.constant 0 : i32
    %c0_i32_1 = arith.constant 0 : i32
    return %c0_i32, %c0_i32_0 : i32, i32
  }
  func.func @transform_22(%arg0: i32, %arg1: i32) -> (i32, i32, i32) {
    %c0_i32 = arith.constant 0 : i32
    %c0_i32_0 = arith.constant 0 : i32
    %c0_i32_1 = arith.constant 0 : i32
    return %arg0, %c0_i32, %c0_i32_0 : i32, i32, i32
  }
}

</mosaic_0001>

<bundles_post_ra>
// kernel: forward.1
= control target key start
LH: loop header
LB: loop body
LE: loop exit
PB: predicated region body
PF: predicated region fallthrough
CT: control target
= control target key end

     0   :  { %s6882_s29 = smov 0   ;;  %s6884_s30 = smov 0   ;;  %s9079_s0 = inlined_call_operand.vmem [shape: f32[2,128,128], index: 0, kind: input, shape index: {}]   ;;  %s9080_s1 = inlined_call_operand.vmem [shape: f32[2,128,128], index: 1, kind: input, shape index: {}]   ;;  %s9081_s2 = inlined_call_operand.vmem [shape: f32[128,128], index: 2, kind: input, shape index: {}]   ;;  %s9082_s3 = inlined_call_operand.vmem [shape: f32[1,128], index: 3, kind: input, shape index: {}]   ;;  %s9083_s4 = inlined_call_operand.vmem [shape: f32[2,128,128], index: 4, kind: input, shape index: {}]   ;;  %s9084_s5 = inlined_call_operand.vmem [shape: f32[1,128], index: 5, kind: input, shape index: {}]   ;;  %s9085_s6 = inlined_call_operand.vmem [shape: f32[1,128], index: 6, kind: input, shape index: {}]   ;;  %s9086_s7 = inlined_call_operand.vmem [shape: f32[2,1,128], index: 7, kind: input, shape index: {}]   ;;  %s9087_s8 = inlined_call_operand.vmem [shape: bf16[2,6,128,64], index: 8, kind: input, shape index: {}]   ;;  %s9088_s9 = inlined_call_operand.vmem [shape: f32[2,6,1,64], index: 9, kind: input, shape index: {}]   ;;  %s9089_s10 = inlined_call_operand.vmem [shape: bf16[2,2,64,128], index: 10, kind: input, shape index: {}]   ;;  %s9090_s11 = inlined_call_operand.vmem [shape: f32[2,1,128], index: 11, kind: input, shape index: {}]   ;;  %s9091_s12 = inlined_call_operand.vmem [shape: f32[2,1,128], index: 12, kind: input, shape index: {}]   ;;  %s9092_s13 = inlined_call_operand.vmem [shape: f32[2,1,128], index: 13, kind: input, shape index: {}]   ;;  %s9093_s14 = inlined_call_operand.vmem [shape: bf16[2,128,256], index: 14, kind: input, shape index: {}]   ;;  %s9094_s15 = inlined_call_operand.vmem [shape: f32[2,1,256], index: 15, kind: input, shape index: {}]   ;;  %s9095_s16 = inlined_call_operand.vmem [shape: bf16[2,256,128], index: 16, kind: input, shape index: {}]   ;;  %s9096_s17 = inlined_call_operand.vmem [shape: f32[2,1,128], index: 17, kind: input, shape index: {}]   ;;  %s9097_s18 = inlined_call_operand.vmem [shape: f32[2,1,128], index: 18, kind: input, shape index: {}]   ;;  %s9098_s19 = inlined_call_operand.vmem [shape: f32[2,1,128], index: 19, kind: input, shape index: {}]   ;;  %s9099_s20 = inlined_call_operand.vmem [shape: f32[1,128], index: 20, kind: input, shape index: {}]   ;;  %s9100_s21 = inlined_call_operand.<no memory space> [shape: f32[1,1], index: 21, kind: input, shape index: {}]   ;;  %s9101_s22 = inlined_call_operand.vmem [shape: f32[2,1,128], index: 22, kind: output, shape index: {}]  }
   0x1   :  { %9118 = sst [smem:[#allocation22_spill]] %s9079_s0  ;;  %v27_v0 = vstv %s9100_s21  ;;  %s6888_s0 = smov 0  }
   0x2   :  { %9119 = sst [smem:[#allocation23_spill]] %s9080_s1  ;;  %28 = vst [vmem:[#allocation3] sm:$0x1] %v27_v0  ;;  %s6890_s23 = smov 0  }
   0x3   :  { %9120 = sst [smem:[#allocation24_spill]] %s9081_s2 }
   0x4   :  { %9121 = sst [smem:[#allocation25_spill]] %s9082_s3 }
   0x5   :  { %9122 = sst [smem:[#allocation26_spill]] %s9083_s4  ;;  %s6886_s4 = smov 0  }
   0x6   :  { %9123 = sst [smem:[#allocation27_spill]] %s9084_s5 }
   0x7   :  { %9124 = sst [smem:[#allocation28_spill]] %s9085_s6 }
   0x8   :  { %9125 = sst [smem:[#allocation29_spill]] %s9086_s7 }
   0x9   :  { %9126 = sst [smem:[#allocation30_spill]] %s9087_s8 }
   0xa   :  { %9127 = sst [smem:[#allocation31_spill]] %s9088_s9 }
   0xb   :  { %9128 = sst [smem:[#allocation32_spill]] %s9089_s10 }
   0xc   :  { %9129 = sst [smem:[#allocation33_spill]] %s9093_s14 }
   0xd   :  { %9130 = sst [smem:[#allocation34_spill]] %s9094_s15 }
   0xe   :  { %9131 = sst [smem:[#allocation35_spill]] %s9099_s20 }
   0xf   :  { %9132 = sst [smem:[#allocation36_spill]] %s9101_s22 }
  0x10 LB: > { %9133 = sst [smem:[#allocation4_spill]] %s6744_s29  ;;  %s43_s21 = sadd.s32 1, %s6752_s4  ;;  %s6760_s23 = sphi %s6890_s23, %s34_s23   ;;  %s6756_s0 = sphi %s6888_s0, %s9189_s0   ;;  %s6752_s4 = sphi %s6886_s4, %s9188_s4   ;;  %s6748_s30 = sphi %s6884_s30, %s9187_s30   ;;  %s6744_s29 = sphi %s6882_s29, %s9186_s29  }
  0x11   : > { %9134 = sst [smem:[#allocation5_spill]] %s6752_s4  ;;  %s46_s1 = sadd.s32 1, %s6756_s0 }
  0x12   : > { %9135 = sst [smem:[#allocation6_spill]] %s6756_s0  ;;  %p44_p0 = scmp.ge.s32.totalorder %s43_s21, 2 }
  0x13   : > { %9136 = sst [smem:[#allocation7_spill]] %s6760_s23  ;;  %p5342_p1 = scmp.ge.s32.totalorder %s6760_s23, 1 }
  0x14   : > { %p760_p2 = scmp.lt.s32.totalorder %s6760_s23, 5  ;;  %s9191_s21 = smov (%p44_p0, %s43_s21), 0 }
  0x15   : > { %9137 = sst [smem:[#allocation8_spill]] %s9191_s21  ;;  %s9193_s1 = smov (!%p44_p0, %s46_s1), %s6756_s0 }
  0x16   : > { %p761_p3 = pnand %p5342_p1, %p760_p2  ;;  %p48_p4 = scmp.ge.s32.totalorder %s9193_s1, 2 }
  0x18   : > { %s9195_s1 = smov (%p48_p4, %s9193_s1), 0  ;;  %764 = sbr.rel (%p761_p3) target bundleno = 4316 (0x10dc), region = 108 }
  0x19   : > { %9138 = sst [smem:[#allocation9_spill]] %s9195_s1 }
  0x1f   : > { %p879_p5 = scmp.lt.s32.totalorder %s6748_s30, 1  ;;  %p897_p6 = scmp.lt.s32.totalorder %s6744_s29, 1 }
  0x20   : > { %s9139_s7 = sld [smem:[#allocation29_spill]]  ;;  %s9141_s3 = sld [smem:[#allocation22_spill]] }
  0x21   : > { %s9197_s30 = smov (!%p879_p5, %s6748_s30), 1  ;;  %s9143_s0 = sld [smem:[#allocation23_spill]] }
  0x22   : > { %s6918_s5 = scalar_select %p897_p6, %s6744_s29, 1 }
  0x23   : > { %s5590_s24 = sshll.u32 %s9197_s30, 7  ;;  %s9145_s29 = sld [smem:[#allocation26_spill]] }
  0x24   : > { %s6244_s6 = smul.u32 384, %s6918_s5  ;;  %s9147_s8 = sld [smem:[#allocation30_spill]] }
  0x25   : > { %s6245_s25 = smul.u32 6, %s6918_s5  ;;  %s9148_s10 = sld [smem:[#allocation32_spill]] }
  0x26   : > { %s6925_s26 = scalar_lea.vmem %s9139_s7, %s9197_s30  ;;  %s6930_s28 = scalar_lea.vmem %s9141_s3, %s5590_s24 }
  0x27   : > { %9140 = sst [smem:[#allocation10_spill]] %s6925_s26  ;;  %s6935_s4 = scalar_lea.vmem %s9143_s0, %s5590_s24 }
  0x28   : > { %9142 = sst [smem:[#allocation11_spill]] %s6930_s28  ;;  %s5593_s7 = sshll.u32 %s6918_s5, 6 }
  0x29   : > { %9144 = sst [smem:[#allocation12_spill]] %s6935_s4  ;;  %s6940_s22 = scalar_lea.vmem %s9145_s29, %s5590_s24 }
  0x2a   : > { %9146 = sst [smem:[#allocation13_spill]] %s6940_s22  ;;  %s6948_s3 = scalar_lea.vmem %s9147_s8, %s6244_s6 }
  0x2b   : > { %s6953_s1 = scalar_lea.vmem %s9148_s10, %s5593_s7  ;;  %s9149_s9 = sld [smem:[#allocation31_spill]] }
  0x2c   : > { %s5594_s21 = sshll.u32 %s6918_s5, 7  ;;  %s5354_s7 = sshll.u32 %s6918_s5, 1 }
  0x2d   : > { %s9150_s14 = sld [smem:[#allocation33_spill]]  ;;  %s9151_s15 = sld [smem:[#allocation34_spill]] }
  0x2e   : > { %s6987_s22 = scalar_lea.vmem %s9095_s16, %s5594_s21  ;;  %s936_s27 = scalar_lea.vmem %s9096_s17, %s6918_s5 }
  0x2f   : > { %s939_s10 = scalar_lea.vmem %s9097_s18, %s6918_s5  ;;  %s9153_s23 = sld [smem:[#allocation36_spill]] }
  0x31   : > { %s6958_s29 = scalar_lea.vmem %s9149_s9, %s6245_s25 }
  0x33   : > { %s6977_s20 = scalar_lea.vmem %s9150_s14, %s5594_s21  ;;  %s6982_s26 = scalar_lea.vmem %s9151_s15, %s5354_s7 }
  0x34   : > { %9152 = sst [smem:[#allocation14_spill]] %s6982_s26  ;;  %s942_s14 = scalar_lea.vmem %s9098_s19, %s6918_s5 }
  0x35   : > { %s945_s15 = scalar_lea.vmem %s9153_s23, %s9197_s30  ;;  %s9154_s26 = sld [smem:[#allocation4_spill]] }
  0x3b   : > { %p5357_p7 = scmp.ne.s32.totalorder %s9154_s26, 0 }
  0x3c   : > { %s9155_s24 = sld [smem:[#allocation24_spill]] (!%p5357_p7)  ;;  %s9156_s28 = sld [smem:[#allocation11_spill]] (!%p5357_p7) }
  0x3d   : > { %950 = sbr.rel (%p5357_p7) target bundleno = 734 (0x2de), region = 112  ;;  %s9157_s2 = sld [smem:[#allocation25_spill]] (!%p5357_p7) }
  0x3e   : > { %s9160_s0 = sld [smem:[#allocation28_spill]] (!%p5357_p7)  ;;  %s9161_s25 = sld [smem:[#allocation12_spill]] (!%p5357_p7) }
  0x42   : > { %v7009_v1 = vld [vmem:[%s9155_s24] sm:$0xff] (!%p5357_p7)  ;;  %v7021_v5 = vld [vmem:[%s9155_s24 + $0x10] sm:$0xff] (!%p5357_p7)  ;;  %v7027_v7 = vld [vmem:[%s9155_s24 + $0x8] sm:$0xff] (!%p5357_p7) }
  0x43   : > { %v969_v2 = vld [vmem:[%s9156_s28] sm:$0xff] (!%p5357_p7)  ;;  %v971_v6 = vld [vmem:[%s9156_s28 + $0x10] sm:$0xff] (!%p5357_p7)  ;;  %v970_v9 = vld [vmem:[%s9156_s28 + $0x8] sm:$0xff] (!%p5357_p7) }
  0x44   : > { %v7015_v3 = vld [vmem:[%s9157_s2] ss:$0 sm:$0xff]  ;;  %v985_v4 = vadd.f32 %v969_v2, %v7009_v1  ;;  %v987_v8 = vadd.f32 %v971_v6, %v7021_v5  ;;  %v7034_v10 = vld [vmem:[%s9155_s24 + $0x18] sm:$0xff]  ;;  %v986_v13 = vadd.f32 %v970_v9, %v7027_v7  ;;  %v7051_v17 = vld [vmem:[%s9155_s24 + $0x28] sm:$0xff]  ;;  %s9159_s2 = sld [smem:[#allocation27_spill]] }
  0x45   : > { %v972_v11 = vld [vmem:[%s9156_s28 + $0x18] sm:$0xff]  ;;  %v7045_v15 = vld [vmem:[%s9155_s24 + $0x20] sm:$0xff]  ;;  %v974_v19 = vld [vmem:[%s9156_s28 + $0x28] sm:$0xff] }
  0x46   : > { %v7038_v12 = vadd.f32 %v7015_v3, %v985_v4  ;;  %v988_v14 = vadd.f32 %v972_v11, %v7034_v10  ;;  %v973_v16 = vld [vmem:[%s9156_s28 + $0x20] sm:$0xff]  ;;  %v7054_v18 = vadd.f32 %v7015_v3, %v987_v8  ;;  %v7059_v20 = vadd.f32 %v7015_v3, %v986_v13  ;;  %v7070_v24 = vld [vmem:[%s9155_s24 + $0x30] sm:$0xff]  ;;  %v7076_v26 = vld [vmem:[%s9155_s24 + $0x38] sm:$0xff] }
  0x47   : > { %v989_v21 = vadd.f32 %v973_v16, %v7045_v15  ;;  %v990_v23 = vadd.f32 %v974_v19, %v7051_v17  ;;  %v975_v25 = vld [vmem:[%s9156_s28 + $0x30] sm:$0xff]  ;;  %v976_v27 = vld [vmem:[%s9156_s28 + $0x38] sm:$0xff]  ;;  %v7092_v32 = vld [vmem:[%s9155_s24 + $0x40] sm:$0xff] }
  0x48   : > { %1024 = vadd.xlane.f32.xlu0 %v7038_v12  ;;  %1028 = vadd.xlane.f32.xlu1 %v7054_v18  ;;  %v7064_v22 = vadd.f32 %v7015_v3, %v988_v14  ;;  %v991_v29 = vadd.f32 %v975_v25, %v7070_v24  ;;  %v992_v31 = vadd.f32 %v976_v27, %v7076_v26  ;;  %v977_v33 = vld [vmem:[%s9156_s28 + $0x40] sm:$0xff]  ;;  %v7098_v34 = vld [vmem:[%s9155_s24 + $0x48] sm:$0xff]  ;;  %v7114_v40 = vld [vmem:[%s9155_s24 + $0x50] sm:$0xff] }
  0x49   : > { %v7081_v28 = vadd.f32 %v7015_v3, %v989_v21  ;;  %v7086_v30 = vadd.f32 %v7015_v3, %v990_v23  ;;  %v978_v35 = vld [vmem:[%s9156_s28 + $0x48] sm:$0xff]  ;;  %v993_v37 = vadd.f32 %v977_v33, %v7092_v32  ;;  %v979_v41 = vld [vmem:[%s9156_s28 + $0x50] sm:$0xff]  ;;  %v7120_v42 = vld [vmem:[%s9155_s24 + $0x58] sm:$0xff] }
  0x4a   : > { %v7103_v36 = vadd.f32 %v7015_v3, %v991_v29  ;;  %v7108_v38 = vadd.f32 %v7015_v3, %v992_v31  ;;  %v994_v39 = vadd.f32 %v978_v35, %v7098_v34  ;;  %v980_v43 = vld [vmem:[%s9156_s28 + $0x58] sm:$0xff]  ;;  %v995_v45 = vadd.f32 %v979_v41, %v7114_v40  ;;  %v7136_v48 = vld [vmem:[%s9155_s24 + $0x60] sm:$0xff]  ;;  %v7142_v50 = vld [vmem:[%s9155_s24 + $0x68] sm:$0xff] }
  0x4b   : > { %v7125_v44 = vadd.f32 %v7015_v3, %v993_v37  ;;  %v996_v47 = vadd.f32 %v980_v43, %v7120_v42  ;;  %v981_v49 = vld [vmem:[%s9156_s28 + $0x60] sm:$0xff]  ;;  %v982_v51 = vld [vmem:[%s9156_s28 + $0x68] sm:$0xff]  ;;  %v7158_v56 = vld [vmem:[%s9155_s24 + $0x70] sm:$0xff] }
  0x4c   : > { %1026 = vadd.xlane.f32.xlu0 %v7059_v20  ;;  %1030 = vadd.xlane.f32.xlu1 %v7064_v22  ;;  %v7130_v46 = vadd.f32 %v7015_v3, %v994_v39  ;;  %v7147_v52 = vadd.f32 %v7015_v3, %v995_v45  ;;  %v997_v53 = vadd.f32 %v981_v49, %v7136_v48  ;;  %v983_v57 = vld [vmem:[%s9156_s28 + $0x70] sm:$0xff]  ;;  %v7164_v58 = vld [vmem:[%s9155_s24 + $0x78] sm:$0xff] }
  0x4d   : > { %v7152_v54 = vadd.f32 %v7015_v3, %v996_v47  ;;  %v998_v55 = vadd.f32 %v982_v51, %v7142_v50  ;;  %v984_v59 = vld [vmem:[%s9156_s28 + $0x78] sm:$0xff]  ;;  %v999_v61 = vadd.f32 %v983_v57, %v7158_v56  ;;  %s9158_s28 = sld [smem:[#allocation13_spill]] }
  0x4e   : > { %v7169_v60 = vadd.f32 %v7015_v3, %v997_v53  ;;  %v1000_v63 = vadd.f32 %v984_v59, %v7164_v58 }
  0x4f   : > { %v7174_v62 = vadd.f32 %v7015_v3, %v998_v55  ;;  %v7179_v0 = vadd.f32 %v7015_v3, %v999_v61 }
  0x50   : > { %1032 = vadd.xlane.f32.xlu0 %v7081_v28  ;;  %1034 = vadd.xlane.f32.xlu1 %v7086_v30  ;;  %v7183_v2 = vadd.f32 %v7015_v3, %v1000_v63 }
  0x54   : > { %1036 = vadd.xlane.f32.xlu0 %v7103_v36  ;;  %1038 = vadd.xlane.f32.xlu1 %v7108_v38 }
  0x58   : > { %1040 = vadd.xlane.f32.xlu0 %v7125_v44  ;;  %1042 = vadd.xlane.f32.xlu1 %v7130_v46 }
  0x5c   : > { %1044 = vadd.xlane.f32.xlu0 %v7147_v52  ;;  %1046 = vadd.xlane.f32.xlu1 %v7152_v54 }
  0x60   : > { %1048 = vadd.xlane.f32.xlu0 %v7169_v60  ;;  %1050 = vadd.xlane.f32.xlu1 %v7174_v62 }
  0x64   : > { %1052 = vadd.xlane.f32.xlu0 %v7179_v0  ;;  %1054 = vadd.xlane.f32.xlu1 %v7183_v2 }
  0xd5   : > { %v1025_v4 = vpop.xlane.xlu0 %1024  ;;  %v1029_v8 = vpop.xlane.xlu1 %1028 }
  0xd6   : > { %v1057_v6 = vmul.f32 0.0078125, %v1025_v4  ;;  %v1059_v9 = vmul.f32 0.0078125, %v1029_v8 }
  0xd8   : > { %v7188_v11 = vsub.f32 %v7038_v12, %v1057_v6  ;;  %v7191_v13 = vsub.f32 %v7054_v18, %v1059_v9 }
  0xd9   : > { %v1027_v14 = vpop.xlane.xlu0 %1026  ;;  %v1031_v19 = vpop.xlane.xlu1 %1030 }
  0xda   : > { %v1058_v16 = vmul.f32 0.0078125, %v1027_v14  ;;  %v1089_v3 = vmul.f32 %v7188_v11, %v7188_v11  ;;  %v1060_v21 = vmul.f32 0.0078125, %v1031_v19  ;;  %v1091_v25 = vmul.f32 %v7191_v13, %v7191_v13 }
  0xdc   : > { %v7196_v23 = vsub.f32 %v7059_v20, %v1058_v16  ;;  %1105 = vadd.xlane.f32.xlu0 %v1089_v3  ;;  %v7201_v12 = vsub.f32 %v7064_v22, %v1060_v21 }
  0xdd   : > { %v1033_v27 = vpop.xlane.xlu0 %1032  ;;  %v1035_v31 = vpop.xlane.xlu1 %1034 }
  0xde   : > { %v1061_v18 = vmul.f32 0.0078125, %v1033_v27  ;;  %v1090_v29 = vmul.f32 %v7196_v23, %v7196_v23  ;;  %v1062_v33 = vmul.f32 0.0078125, %v1035_v31  ;;  %v1092_v20 = vmul.f32 %v7201_v12, %v7201_v12 }
  0xe0   : > { %v7206_v35 = vsub.f32 %v7081_v28, %v1061_v18  ;;  %1109 = vadd.xlane.f32.xlu0 %v1091_v25  ;;  %1107 = vadd.xlane.f32.xlu1 %v1090_v29  ;;  %v7211_v37 = vsub.f32 %v7086_v30, %v1062_v33 }
  0xe1   : > { %v1037_v22 = vpop.xlane.xlu0 %1036  ;;  %v1039_v43 = vpop.xlane.xlu1 %1038 }
  0xe2   : > { %v1063_v39 = vmul.f32 0.0078125, %v1037_v22  ;;  %v1093_v41 = vmul.f32 %v7206_v35, %v7206_v35  ;;  %v1064_v45 = vmul.f32 0.0078125, %v1039_v43  ;;  %v1094_v28 = vmul.f32 %v7211_v37, %v7211_v37 }
  0xe4   : > { %v7216_v47 = vsub.f32 %v7103_v36, %v1063_v39  ;;  %1111 = vadd.xlane.f32.xlu1 %v1092_v20  ;;  %1113 = vadd.xlane.f32.xlu0 %v1093_v41  ;;  %v7221_v49 = vsub.f32 %v7108_v38, %v1064_v45 }
  0xe5   : > { %v1041_v30 = vpop.xlane.xlu0 %1040  ;;  %v1043_v55 = vpop.xlane.xlu1 %1042 }
  0xe6   : > { %v1065_v51 = vmul.f32 0.0078125, %v1041_v30  ;;  %v1095_v53 = vmul.f32 %v7216_v47, %v7216_v47  ;;  %v1066_v57 = vmul.f32 0.0078125, %v1043_v55  ;;  %v1096_v36 = vmul.f32 %v7221_v49, %v7221_v49 }
  0xe8   : > { %v7226_v59 = vsub.f32 %v7125_v44, %v1065_v51  ;;  %1115 = vadd.xlane.f32.xlu1 %v1094_v28  ;;  %1117 = vadd.xlane.f32.xlu0 %v1095_v53  ;;  %v7231_v61 = vsub.f32 %v7130_v46, %v1066_v57 }
  0xe9   : > { %v1045_v38 = vpop.xlane.xlu0 %1044  ;;  %v1047_v6 = vpop.xlane.xlu1 %1046 }
  0xea   : > { %v1067_v63 = vmul.f32 0.0078125, %v1045_v38  ;;  %v1097_v4 = vmul.f32 %v7226_v59, %v7226_v59  ;;  %v1068_v8 = vmul.f32 0.0078125, %v1047_v6  ;;  %v1098_v44 = vmul.f32 %v7231_v61, %v7231_v61 }
  0xec   : > { %v7236_v9 = vsub.f32 %v7147_v52, %v1067_v63  ;;  %1119 = vadd.xlane.f32.xlu1 %v1096_v36  ;;  %1121 = vadd.xlane.f32.xlu0 %v1097_v4  ;;  %v7241_v14 = vsub.f32 %v7152_v54, %v1068_v8 }
  0xed   : > { %v1049_v46 = vpop.xlane.xlu0 %1048  ;;  %v1051_v19 = vpop.xlane.xlu1 %1050 }
  0xee   : > { %v1069_v16 = vmul.f32 0.0078125, %v1049_v46  ;;  %v1099_v3 = vmul.f32 %v7236_v9, %v7236_v9  ;;  %v1070_v21 = vmul.f32 0.0078125, %v1051_v19  ;;  %v1100_v52 = vmul.f32 %v7241_v14, %v7241_v14 }
  0xf0   : > { %v7246_v25 = vsub.f32 %v7169_v60, %v1069_v16  ;;  %1123 = vadd.xlane.f32.xlu1 %v1098_v44  ;;  %1125 = vadd.xlane.f32.xlu0 %v1099_v3  ;;  %v7251_v27 = vsub.f32 %v7174_v62, %v1070_v21  ;;  %v7270_v21 = vld [vmem:[%s9159_s2] ss:$0 sm:$0xff] }
  0xf1   : > { %v1053_v54 = vpop.xlane.xlu0 %1052  ;;  %v1055_v31 = vpop.xlane.xlu1 %1054 }
  0xf2   : > { %v1071_v18 = vmul.f32 0.0078125, %v1053_v54  ;;  %v1101_v29 = vmul.f32 %v7246_v25, %v7246_v25  ;;  %v1072_v33 = vmul.f32 0.0078125, %v1055_v31  ;;  %v1102_v60 = vmul.f32 %v7251_v27, %v7251_v27 }
  0xf4   : > { %v7256_v20 = vsub.f32 %v7179_v0, %v1071_v18  ;;  %1127 = vadd.xlane.f32.xlu1 %v1100_v52  ;;  %1129 = vadd.xlane.f32.xlu0 %v1101_v29  ;;  %v7261_v22 = vsub.f32 %v7183_v2, %v1072_v33  ;;  %v7276_v33 = vld [vmem:[%s9160_s0] ss:$0 sm:$0xff] }
  0xf6   : > { %v1103_v62 = vmul.f32 %v7256_v20, %v7256_v20  ;;  %v1104_v39 = vmul.f32 %v7261_v22, %v7261_v22 }
  0xf8   : > { %1131 = vadd.xlane.f32.xlu1 %v1102_v60  ;;  %1133 = vadd.xlane.f32.xlu0 %v1103_v62 }
  0xfc   : > { %1135 = vadd.xlane.f32.xlu1 %v1104_v39 }
 0x169   : > { %v1106_v41 = vpop.xlane.xlu0 %1105 }
 0x16a   : > { %v1137_v0 = vmul.f32 0.0078125, %v1106_v41 }
 0x16c   : > { %v1153_v43 = vadd.f32 1e-12, %v1137_v0  ;;  %v1245_v0 = vld [vmem:[%s9158_s28] sm:$0xff] }
 0x16d   : > { %v1108_v45 = vpop.xlane.xlu1 %1107  ;;  %v1110_v28 = vpop.xlane.xlu0 %1109 }
 0x16e   : > { %6288 = vrsqrt.f32 %v1153_v43  ;;  %v1138_v30 = vmul.f32 0.0078125, %v1108_v45  ;;  %v1139_v51 = vmul.f32 0.0078125, %v1110_v28 }
 0x170   : > { %v1154_v53 = vadd.f32 1e-12, %v1138_v30  ;;  %v1155_v2 = vadd.f32 1e-12, %v1139_v51 }
 0x171   : > { %v1112_v55 = vpop.xlane.xlu1 %1111  ;;  %v1114_v57 = vpop.xlane.xlu0 %1113 }
 0x172   : > { %6290 = vrsqrt.f32 %v1154_v53  ;;  %v1140_v36 = vmul.f32 0.0078125, %v1112_v55  ;;  %v1141_v38 = vmul.f32 0.0078125, %v1114_v57 }
 0x173   : > { %6292 = vrsqrt.f32 %v1155_v2 }
 0x174   : > { %v1156_v63 = vadd.f32 1e-12, %v1140_v36  ;;  %v1157_v4 = vadd.f32 1e-12, %v1141_v38 }
 0x175   : > { %v1116_v6 = vpop.xlane.xlu1 %1115  ;;  %v1118_v8 = vpop.xlane.xlu0 %1117 }
 0x176   : > { %6294 = vrsqrt.f32 %v1156_v63  ;;  %v1142_v44 = vmul.f32 0.0078125, %v1116_v6  ;;  %v1143_v46 = vmul.f32 0.0078125, %v1118_v8  ;;  %v1246_v6 = vld [vmem:[%s9158_s28 + $0x8] sm:$0xff] }
 0x177   : > { %6296 = vrsqrt.f32 %v1157_v4  ;;  %v1293_v4 = vld [vmem:[%s9161_s25] sm:$0xff] }
 0x178   : > { %v6289_v16 = vpop.eup %6288  ;;  %v1158_v3 = vadd.f32 1e-12, %v1142_v44  ;;  %v1159_v19 = vadd.f32 1e-12, %v1143_v46 }
 0x179   : > { %v1120_v52 = vpop.xlane.xlu1 %1119  ;;  %v1122_v54 = vpop.xlane.xlu0 %1121  ;;  %v1185_v18 = vmul.f32 %v6289_v16, %v7188_v11 }
 0x17a   : > { %6298 = vrsqrt.f32 %v1158_v3  ;;  %v1144_v29 = vmul.f32 0.0078125, %v1120_v52  ;;  %v1145_v31 = vmul.f32 0.0078125, %v1122_v54 }
 0x17b   : > { %v1207_v60 = vmul.f32 %v7270_v21, %v1185_v18  ;;  %6300 = vrsqrt.f32 %v1159_v19 }
 0x17c   : > { %v6291_v62 = vpop.eup %6290  ;;  %v1160_v39 = vadd.f32 1e-12, %v1144_v29  ;;  %v1161_v41 = vadd.f32 1e-12, %v1145_v31 }
 0x17d   : > { %v6293_v43 = vpop.eup %6292  ;;  %v1124_v45 = vpop.xlane.xlu1 %1123  ;;  %v1229_v28 = vadd.f32 %v7276_v33, %v1207_v60  ;;  %v1186_v30 = vmul.f32 %v6291_v62, %v7196_v23 }
 0x17e   : > { %v1126_v11 = vpop.xlane.xlu0 %1125  ;;  %6302 = vrsqrt.f32 %v1160_v39  ;;  %v1146_v51 = vmul.f32 0.0078125, %v1124_v45  ;;  %v1187_v2 = vmul.f32 %v6293_v43, %v7191_v13  ;;  %v1247_v13 = vld [vmem:[%s9158_s28 + $0x10] sm:$0xff]  ;;  %v1248_v43 = vld [vmem:[%s9158_s28 + $0x18] sm:$0xff] }
 0x17f   : > { %v1147_v53 = vmul.f32 0.0078125, %v1126_v11  ;;  %6304 = vrsqrt.f32 %v1161_v41  ;;  %v1261_v55 = vmul.f32 %v1245_v0, %v1229_v28  ;;  %v1208_v57 = vmul.f32 %v7270_v21, %v1186_v30  ;;  %v1294_v41 = vld [vmem:[%s9161_s25 + $0x8] sm:$0xff]  ;;  %v1295_v30 = vld [vmem:[%s9161_s25 + $0x10] sm:$0xff] }
 0x180   : > { %v6295_v36 = vpop.eup %6294  ;;  %v1162_v38 = vadd.f32 1e-12, %v1146_v51  ;;  %v1209_v8 = vmul.f32 %v7270_v21, %v1187_v2 }
 0x181   : > { %v1163_v63 = vadd.f32 1e-12, %v1147_v53  ;;  %v6297_v44 = vpop.eup %6296  ;;  %v1128_v46 = vpop.xlane.xlu1 %1127  ;;  %v1277_v16 = vadd.f32 %v1261_v55, %v7009_v1  ;;  %v1230_v3 = vadd.f32 %v7276_v33, %v1208_v57  ;;  %v1188_v19 = vmul.f32 %v6295_v36, %v7201_v12 }
 0x182   : > { %v1130_v23 = vpop.xlane.xlu0 %1129  ;;  %6306 = vrsqrt.f32 %v1162_v38  ;;  %v1148_v52 = vmul.f32 0.0078125, %v1128_v46  ;;  %v1231_v18 = vadd.f32 %v7276_v33, %v1209_v8  ;;  %v1189_v12 = vmul.f32 %v6297_v44, %v7206_v35  ;;  %v1296_v44 = vld [vmem:[%s9161_s25 + $0x18] sm:$0xff] }
 0x183   : > { %v1149_v54 = vmul.f32 0.0078125, %v1130_v23  ;;  %6308 = vrsqrt.f32 %v1163_v63  ;;  %v7292_v29 = vadd.f32 %v1293_v4, %v1277_v16  ;;  %v1262_v31 = vmul.f32 %v1246_v6, %v1230_v3 }
 0x184   : > { %v1210_v60 = vmul.f32 %v7270_v21, %v1188_v19  ;;  %v6299_v62 = vpop.eup %6298  ;;  %v1164_v1 = vadd.f32 1e-12, %v1148_v52  ;;  %v1263_v0 = vmul.f32 %v1247_v13, %v1231_v18  ;;  %v1250_v13 = vld [vmem:[%s9158_s28 + $0x28] sm:$0xff] }
 0x185   : > { %v1165_v39 = vadd.f32 1e-12, %v1149_v54  ;;  %v1132_v45 = vpop.xlane.xlu1 %1131  ;;  %1325 = vadd.xlane.f32.xlu0 %v7292_v29  ;;  %v1278_v28 = vadd.f32 %v1262_v31, %v7027_v7  ;;  %v1190_v53 = vmul.f32 %v6299_v62, %v7211_v37  ;;  %v6301_v2 = vpop.eup %6300  ;;  %v1211_v7 = vmul.f32 %v7270_v21, %v1189_v12  ;;  %v1249_v37 = vld [vmem:[%s9158_s28 + $0x20] sm:$0xff] }
 0x186   : > { %v1134_v11 = vpop.xlane.xlu0 %1133  ;;  %v1232_v51 = vadd.f32 %v7276_v33, %v1210_v60  ;;  %6310 = vrsqrt.f32 %v1164_v1  ;;  %v1150_v55 = vmul.f32 0.0078125, %v1132_v45  ;;  %v1279_v36 = vadd.f32 %v1263_v0, %v7021_v5  ;;  %v1298_v45 = vld [vmem:[%s9161_s25 + $0x28] sm:$0xff] }
 0x187   : > { %v1151_v57 = vmul.f32 0.0078125, %v1134_v11  ;;  %6312 = vrsqrt.f32 %v1165_v39  ;;  %v7304_v35 = vadd.f32 %v1294_v41, %v1278_v28  ;;  %v1212_v46 = vmul.f32 %v7270_v21, %v1190_v53  ;;  %v1251_v41 = vld [vmem:[%s9158_s28 + $0x30] sm:$0xff]  ;;  %v1252_v28 = vld [vmem:[%s9158_s28 + $0x38] sm:$0xff] }
 0x188   : > { %v1264_v38 = vmul.f32 %v1248_v43, %v1232_v51  ;;  %v6303_v63 = vpop.eup %6302  ;;  %v1166_v4 = vadd.f32 1e-12, %v1150_v55  ;;  %v7307_v8 = vadd.f32 %v1295_v30, %v1279_v36  ;;  %v1233_v3 = vadd.f32 %v7276_v33, %v1211_v7  ;;  %v1253_v30 = vld [vmem:[%s9158_s28 + $0x40] sm:$0xff] }
 0x189   : > { %v1167_v6 = vadd.f32 1e-12, %v1151_v57  ;;  %v6305_v23 = vpop.eup %6304  ;;  %1327 = vadd.xlane.f32.xlu1 %v7304_v35  ;;  %v1136_v5 = vpop.xlane.xlu1 %1135  ;;  %v1191_v19 = vmul.f32 %v6301_v2, %v7216_v47  ;;  %v1192_v52 = vmul.f32 %v6303_v63, %v7221_v49  ;;  %v1234_v18 = vadd.f32 %v7276_v33, %v1212_v46  ;;  %v1297_v49 = vld [vmem:[%s9161_s25 + $0x20] sm:$0xff]  ;;  %v1300_v46 = vld [vmem:[%s9161_s25 + $0x38] sm:$0xff] }
 0x18a   : > { %v1280_v16 = vadd.f32 %v1264_v38, %v7034_v10  ;;  %6314 = vrsqrt.f32 %v1166_v4  ;;  %v1152_v54 = vmul.f32 0.0078125, %v1136_v5  ;;  %1329 = vadd.xlane.f32.xlu0 %v7307_v8  ;;  %v1193_v31 = vmul.f32 %v6305_v23, %v7226_v59  ;;  %v1301_v23 = vld [vmem:[%s9161_s25 + $0x40] sm:$0xff] }
 0x18b   : > { %6316 = vrsqrt.f32 %v1167_v6  ;;  %v1265_v60 = vmul.f32 %v1249_v37, %v1233_v3  ;;  %v1213_v62 = vmul.f32 %v7270_v21, %v1191_v19  ;;  %v1266_v39 = vmul.f32 %v1250_v13, %v1234_v18  ;;  %v1254_v6 = vld [vmem:[%s9158_s28 + $0x48] sm:$0xff]  ;;  %v1255_v19 = vld [vmem:[%s9158_s28 + $0x50] sm:$0xff] }
 0x18c   : > { %v7321_v10 = vadd.f32 %v1296_v44, %v1280_v16  ;;  %v6307_v47 = vpop.eup %6306  ;;  %v1168_v1 = vadd.f32 1e-12, %v1152_v54  ;;  %v1214_v0 = vmul.f32 %v7270_v21, %v1192_v52  ;;  %v1215_v43 = vmul.f32 %v7270_v21, %v1193_v31 }
 0x18d   : > { %v6309_v12 = vpop.eup %6308  ;;  %v1281_v59 = vadd.f32 %v1265_v60, %v7045_v15  ;;  %v1235_v11 = vadd.f32 %v7276_v33, %v1213_v62  ;;  %v1194_v51 = vmul.f32 %v6307_v47, %v7231_v61  ;;  %v1282_v53 = vadd.f32 %v1266_v39, %v7051_v17  ;;  %v1299_v61 = vld [vmem:[%s9161_s25 + $0x30] sm:$0xff]  ;;  %v1256_v47 = vld [vmem:[%s9158_s28 + $0x58] sm:$0xff] }
 0x18e   : > { %1331 = vadd.xlane.f32.xlu1 %v7321_v10  ;;  %6318 = vrsqrt.f32 %v1168_v1  ;;  %v1236_v2 = vadd.f32 %v7276_v33, %v1214_v0  ;;  %v1237_v55 = vadd.f32 %v7276_v33, %v1215_v43  ;;  %v1195_v38 = vmul.f32 %v6309_v12, %v7236_v9  ;;  %v1303_v43 = vld [vmem:[%s9161_s25 + $0x50] sm:$0xff] }
 0x18f   : > { %v7338_v57 = vadd.f32 %v1297_v49, %v1281_v59  ;;  %v1267_v15 = vmul.f32 %v1251_v41, %v1235_v11  ;;  %v1216_v36 = vmul.f32 %v7270_v21, %v1194_v51  ;;  %v7342_v63 = vadd.f32 %v1298_v45, %v1282_v53  ;;  %v1257_v41 = vld [vmem:[%s9158_s28 + $0x60] sm:$0xff]  ;;  %v1304_v51 = vld [vmem:[%s9161_s25 + $0x58] sm:$0xff] }
 0x190   : > { %v6311_v7 = vpop.eup %6310  ;;  %v1268_v4 = vmul.f32 %v1252_v28, %v1236_v2  ;;  %v1269_v17 = vmul.f32 %v1253_v30, %v1237_v55  ;;  %v1217_v9 = vmul.f32 %v7270_v21, %v1195_v38 }
 0x191   : > { %v6313_v44 = vpop.eup %6312  ;;  %1333 = vadd.xlane.f32.xlu0 %v7338_v57  ;;  %v1283_v37 = vadd.f32 %v1267_v15, %v7070_v24  ;;  %v1238_v5 = vadd.f32 %v7276_v33, %v1216_v36  ;;  %v1196_v16 = vmul.f32 %v6311_v7, %v7241_v14  ;;  %v1259_v15 = vld [vmem:[%s9158_s28 + $0x70] sm:$0xff]  ;;  %v1305_v7 = vld [vmem:[%s9161_s25 + $0x60] sm:$0xff] }
 0x192   : > { %1335 = vadd.xlane.f32.xlu1 %v7342_v63  ;;  %v1284_v3 = vadd.f32 %v1268_v4, %v7076_v26  ;;  %v1285_v13 = vadd.f32 %v1269_v17, %v7092_v32  ;;  %v1197_v52 = vmul.f32 %v6313_v44, %v7246_v25  ;;  %v1239_v18 = vadd.f32 %v7276_v33, %v1217_v9  ;;  %v1302_v26 = vld [vmem:[%s9161_s25 + $0x48] sm:$0xff] }
 0x193   : > { %v7358_v24 = vadd.f32 %v1299_v61, %v1283_v37  ;;  %v1270_v54 = vmul.f32 %v1254_v6, %v1238_v5  ;;  %v1218_v31 = vmul.f32 %v7270_v21, %v1196_v16  ;;  %v1260_v37 = vld [vmem:[%s9158_s28 + $0x78] sm:$0xff]  ;;  %v1307_v5 = vld [vmem:[%s9161_s25 + $0x70] sm:$0xff] }
 0x194   : > { %v6315_v60 = vpop.eup %6314  ;;  %v7362_v14 = vadd.f32 %v1300_v46, %v1284_v3  ;;  %v7364_v62 = vadd.f32 %v1301_v23, %v1285_v13  ;;  %v1219_v32 = vmul.f32 %v7270_v21, %v1197_v52  ;;  %v1271_v49 = vmul.f32 %v1255_v19, %v1239_v18  ;;  %v1308_v3 = vld [vmem:[%s9161_s25 + $0x78] sm:$0xff] }
 0x195   : > { %v6317_v1 = vpop.eup %6316  ;;  %1337 = vadd.xlane.f32.xlu0 %v7358_v24  ;;  %v1286_v25 = vadd.f32 %v1270_v54, %v7098_v34  ;;  %v1240_v39 = vadd.f32 %v7276_v33, %v1218_v31  ;;  %v1198_v0 = vmul.f32 %v6315_v60, %v7251_v27  ;;  %v1258_v27 = vld [vmem:[%s9158_s28 + $0x68] sm:$0xff] }
 0x196   : > { %1339 = vadd.xlane.f32.xlu1 %v7362_v14  ;;  %v1241_v12 = vadd.f32 %v7276_v33, %v1219_v32  ;;  %v1199_v59 = vmul.f32 %v6317_v1, %v7256_v20  ;;  %v1287_v11 = vadd.f32 %v1271_v49, %v7114_v40 }
 0x197   : > { %v7378_v45 = vadd.f32 %v1302_v26, %v1286_v25  ;;  %v1272_v34 = vmul.f32 %v1256_v47, %v1240_v39  ;;  %v1220_v28 = vmul.f32 %v7270_v21, %v1198_v0 }
 0x198   : > { %v6319_v30 = vpop.eup %6318  ;;  %v1273_v53 = vmul.f32 %v1257_v41, %v1241_v12  ;;  %v1221_v2 = vmul.f32 %v7270_v21, %v1199_v59  ;;  %v7386_v55 = vadd.f32 %v1303_v43, %v1287_v11 }
 0x199   : > { %1341 = vadd.xlane.f32.xlu0 %v7364_v62  ;;  %v1288_v20 = vadd.f32 %v1272_v34, %v7120_v42  ;;  %v1242_v40 = vadd.f32 %v7276_v33, %v1220_v28  ;;  %v1200_v36 = vmul.f32 %v6319_v30, %v7261_v22  ;;  %v1306_v42 = vld [vmem:[%s9161_s25 + $0x68] sm:$0xff] }
 0x19a   : > { %1343 = vadd.xlane.f32.xlu1 %v7378_v45  ;;  %v1289_v38 = vadd.f32 %v1273_v53, %v7136_v48  ;;  %v1243_v61 = vadd.f32 %v7276_v33, %v1221_v2 }
 0x19b   : > { %v7396_v4 = vadd.f32 %v1304_v51, %v1288_v20  ;;  %v1274_v17 = vmul.f32 %v1258_v27, %v1242_v40  ;;  %v1222_v6 = vmul.f32 %v7270_v21, %v1200_v36 }
 0x19c   : > { %v1275_v44 = vmul.f32 %v1259_v15, %v1243_v61  ;;  %v7402_v22 = vadd.f32 %v1305_v7, %v1289_v38 }
 0x19d   : > { %1345 = vadd.xlane.f32.xlu0 %v7386_v55  ;;  %v1290_v46 = vadd.f32 %v1274_v17, %v7142_v50  ;;  %v1244_v48 = vadd.f32 %v7276_v33, %v1222_v6 }
 0x19e   : > { %1347 = vadd.xlane.f32.xlu1 %v7396_v4  ;;  %v1291_v23 = vadd.f32 %v1275_v44, %v7158_v56 }
 0x19f   : > { %v7409_v9 = vadd.f32 %v1306_v42, %v1290_v46  ;;  %v1276_v16 = vmul.f32 %v1260_v37, %v1244_v48 }
 0x1a0   : > { %v7413_v13 = vadd.f32 %v1307_v5, %v1291_v23 }
 0x1a1   : > { %1349 = vadd.xlane.f32.xlu0 %v7402_v22  ;;  %v1292_v19 = vadd.f32 %v1276_v16, %v7164_v58 }
 0x1a2   : > { %1351 = vadd.xlane.f32.xlu1 %v7409_v9 }
 0x1a3   : > { %v7417_v50 = vadd.f32 %v1308_v3, %v1292_v19 }
 0x1a5   : > { %1353 = vadd.xlane.f32.xlu0 %v7413_v13 }
 0x1a6   : > { %1355 = vadd.xlane.f32.xlu1 %v7417_v50 }
 0x212   : > { %v1326_v56 = vpop.xlane.xlu0 %1325 }
 0x213   : > { %v1357_v52 = vmul.f32 0.0078125, %v1326_v56 }
 0x215   : > { %v7422_v54 = vsub.f32 %v7292_v29, %v1357_v52 }
 0x216   : > { %v1328_v18 = vpop.xlane.xlu1 %1327 }
 0x217   : > { %v1358_v31 = vmul.f32 0.0078125, %v1328_v18  ;;  %v1330_v60 = vpop.xlane.xlu0 %1329  ;;  %v1389_v26 = vmul.f32 %v7422_v54, %v7422_v54 }
 0x218   : > { %v1359_v58 = vmul.f32 0.0078125, %v1330_v60 }
 0x219   : > { %v7427_v47 = vsub.f32 %v7304_v35, %v1358_v31  ;;  %1405 = vadd.xlane.f32.xlu0 %v1389_v26 }
 0x21a   : > { %v7430_v32 = vsub.f32 %v7307_v8, %v1359_v58 }
 0x21b   : > { %v1332_v1 = vpop.xlane.xlu1 %1331  ;;  %v1390_v29 = vmul.f32 %v7427_v47, %v7427_v47 }
 0x21c   : > { %v1360_v25 = vmul.f32 0.0078125, %v1332_v1  ;;  %v1391_v49 = vmul.f32 %v7430_v32, %v7430_v32 }
 0x21d   : > { %1407 = vadd.xlane.f32.xlu1 %v1390_v29 }
 0x21e   : > { %v7437_v39 = vsub.f32 %v7321_v10, %v1360_v25  ;;  %v1334_v41 = vpop.xlane.xlu0 %1333  ;;  %1409 = vadd.xlane.f32.xlu0 %v1391_v49 }
 0x21f   : > { %v1361_v35 = vmul.f32 0.0078125, %v1334_v41  ;;  %v1336_v0 = vpop.xlane.xlu1 %1335 }
 0x220   : > { %v1392_v8 = vmul.f32 %v7437_v39, %v7437_v39  ;;  %v1362_v43 = vmul.f32 0.0078125, %v1336_v0 }
 0x221   : > { %v7442_v12 = vsub.f32 %v7338_v57, %v1361_v35 }
 0x222   : > { %1411 = vadd.xlane.f32.xlu1 %v1392_v8  ;;  %v7445_v59 = vsub.f32 %v7342_v63, %v1362_v43  ;;  %v1338_v11 = vpop.xlane.xlu0 %1337 }
 0x223   : > { %v1363_v34 = vmul.f32 0.0078125, %v1338_v11  ;;  %v1393_v10 = vmul.f32 %v7442_v12, %v7442_v12  ;;  %v1340_v28 = vpop.xlane.xlu1 %1339 }
 0x224   : > { %v1364_v30 = vmul.f32 0.0078125, %v1340_v28  ;;  %v1394_v51 = vmul.f32 %v7445_v59, %v7445_v59 }
 0x225   : > { %v7452_v53 = vsub.f32 %v7358_v24, %v1363_v34  ;;  %1413 = vadd.xlane.f32.xlu0 %v1393_v10 }
 0x226   : > { %v7455_v57 = vsub.f32 %v7362_v14, %v1364_v30  ;;  %v1342_v27 = vpop.xlane.xlu0 %1341  ;;  %1415 = vadd.xlane.f32.xlu1 %v1394_v51 }
 0x227   : > { %v1365_v63 = vmul.f32 0.0078125, %v1342_v27  ;;  %v1395_v2 = vmul.f32 %v7452_v53, %v7452_v53  ;;  %v1344_v20 = vpop.xlane.xlu1 %1343 }
 0x228   : > { %v1366_v40 = vmul.f32 0.0078125, %v1344_v20  ;;  %v1396_v15 = vmul.f32 %v7455_v57, %v7455_v57 }
 0x229   : > { %v7462_v36 = vsub.f32 %v7364_v62, %v1365_v63  ;;  %1417 = vadd.xlane.f32.xlu0 %v1395_v2 }
 0x22a   : > { %v7465_v24 = vsub.f32 %v7378_v45, %v1366_v40  ;;  %v1346_v14 = vpop.xlane.xlu0 %1345  ;;  %1419 = vadd.xlane.f32.xlu1 %v1396_v15 }
 0x22b   : > { %v1367_v38 = vmul.f32 0.0078125, %v1346_v14  ;;  %v1397_v7 = vmul.f32 %v7462_v36, %v7462_v36  ;;  %v1348_v61 = vpop.xlane.xlu1 %1347 }
 0x22c   : > { %v1368_v17 = vmul.f32 0.0078125, %v1348_v61  ;;  %v1398_v6 = vmul.f32 %v7465_v24, %v7465_v24 }
 0x22d   : > { %v7472_v42 = vsub.f32 %v7386_v55, %v1367_v38  ;;  %1421 = vadd.xlane.f32.xlu0 %v1397_v7 }
 0x22e   : > { %v7475_v62 = vsub.f32 %v7396_v4, %v1368_v17  ;;  %v1350_v45 = vpop.xlane.xlu0 %1349  ;;  %1423 = vadd.xlane.f32.xlu1 %v1398_v6 }
 0x22f   : > { %v1369_v44 = vmul.f32 0.0078125, %v1350_v45  ;;  %v1399_v37 = vmul.f32 %v7472_v42, %v7472_v42  ;;  %v1352_v46 = vpop.xlane.xlu1 %1351 }
 0x230   : > { %v1370_v48 = vmul.f32 0.0078125, %v1352_v46  ;;  %v1400_v23 = vmul.f32 %v7475_v62, %v7475_v62 }
 0x231   : > { %v7482_v5 = vsub.f32 %v7402_v22, %v1369_v44  ;;  %1425 = vadd.xlane.f32.xlu0 %v1399_v37 }
 0x232   : > { %v7485_v55 = vsub.f32 %v7409_v9, %v1370_v48  ;;  %v1354_v4 = vpop.xlane.xlu0 %1353  ;;  %1427 = vadd.xlane.f32.xlu1 %v1400_v23 }
 0x233   : > { %v1371_v16 = vmul.f32 0.0078125, %v1354_v4  ;;  %v1401_v3 = vmul.f32 %v7482_v5, %v7482_v5  ;;  %v1356_v19 = vpop.xlane.xlu1 %1355 }
 0x234   : > { %v1372_v56 = vmul.f32 0.0078125, %v1356_v19  ;;  %v1402_v52 = vmul.f32 %v7485_v55, %v7485_v55 }
 0x235   : > { %v7492_v18 = vsub.f32 %v7413_v13, %v1371_v16  ;;  %1429 = vadd.xlane.f32.xlu0 %v1401_v3 }
 0x236   : > { %v7495_v22 = vsub.f32 %v7417_v50, %v1372_v56  ;;  %1431 = vadd.xlane.f32.xlu1 %v1402_v52 }
 0x237   : > { %v1403_v9 = vmul.f32 %v7492_v18, %v7492_v18 }
 0x238   : > { %v1404_v31 = vmul.f32 %v7495_v22, %v7495_v22 }
 0x239   : > { %1433 = vadd.xlane.f32.xlu0 %v1403_v9 }
 0x23a   : > { %1435 = vadd.xlane.f32.xlu1 %v1404_v31 }
 0x2a6   : > { %v1406_v60 = vpop.xlane.xlu0 %1405 }
 0x2a7   : > { %v1437_v26 = vmul.f32 0.0078125, %v1406_v60 }
 0x2a9   : > { %v1453_v58 = vadd.f32 1e-12, %v1437_v26 }
 0x2aa   : > { %v1408_v1 = vpop.xlane.xlu1 %1407 }
 0x2ab   : > { %6320 = vrsqrt.f32 %v1453_v58  ;;  %v1438_v13 = vmul.f32 0.0078125, %v1408_v1  ;;  %v1410_v25 = vpop.xlane.xlu0 %1409 }
 0x2ac   : > { %v1439_v29 = vmul.f32 0.0078125, %v1410_v25 }
 0x2ad   : > { %v1454_v49 = vadd.f32 1e-12, %v1438_v13 }
 0x2ae   : > { %v1455_v50 = vadd.f32 1e-12, %v1439_v29 }
 0x2af   : > { %v1412_v41 = vpop.xlane.xlu1 %1411  ;;  %6322 = vrsqrt.f32 %v1454_v49 }
 0x2b0   : > { %v1440_v35 = vmul.f32 0.0078125, %v1412_v41  ;;  %6324 = vrsqrt.f32 %v1455_v50 }
 0x2b2   : > { %v1456_v0 = vadd.f32 1e-12, %v1440_v35  ;;  %v1414_v8 = vpop.xlane.xlu0 %1413 }
 0x2b3   : > { %v1441_v43 = vmul.f32 0.0078125, %v1414_v8  ;;  %v1416_v11 = vpop.xlane.xlu1 %1415 }
 0x2b4   : > { %6326 = vrsqrt.f32 %v1456_v0  ;;  %v1442_v34 = vmul.f32 0.0078125, %v1416_v11 }
 0x2b5   : > { %v6321_v10 = vpop.eup %6320  ;;  %v1457_v28 = vadd.f32 1e-12, %v1441_v43 }
 0x2b6   : > { %v1485_v30 = vmul.f32 %v6321_v10, %v7422_v54  ;;  %v1458_v51 = vadd.f32 1e-12, %v1442_v34  ;;  %v1418_v27 = vpop.xlane.xlu0 %1417 }
 0x2b7   : > { %6328 = vrsqrt.f32 %v1457_v28  ;;  %v1443_v63 = vmul.f32 0.0078125, %v1418_v27  ;;  %v1420_v2 = vpop.xlane.xlu1 %1419 }
 0x2b8   : > { %v1501_v20 = vmul.f32 %v7270_v21, %v1485_v30  ;;  %6330 = vrsqrt.f32 %v1458_v51  ;;  %v1444_v40 = vmul.f32 0.0078125, %v1420_v2 }
 0x2b9   : > { %v6323_v15 = vpop.eup %6322  ;;  %v1459_v14 = vadd.f32 1e-12, %v1443_v63 }
 0x2ba   : > { %v6325_v38 = vpop.eup %6324  ;;  %v1517_v7 = vadd.f32 %v7276_v33, %v1501_v20  ;;  %v1486_v61 = vmul.f32 %v6323_v15, %v7427_v47  ;;  %v1460_v17 = vadd.f32 1e-12, %v1444_v40  ;;  %v1422_v6 = vpop.xlane.xlu0 %1421 }
 0x2bb   : > { %v1487_v54 = vmul.f32 %v6325_v38, %v7430_v32  ;;  %6332 = vrsqrt.f32 %v1459_v14  ;;  %v1445_v45 = vmul.f32 0.0078125, %v1422_v6  ;;  %v1424_v44 = vpop.xlane.xlu1 %1423 }
 0x2bc   : > { %1533 = vst [vmem:[#allocation2] sm:$0xff] %v1517_v7  ;;  %v1502_v37 = vmul.f32 %v7270_v21, %v1486_v61  ;;  %6334 = vrsqrt.f32 %v1460_v17  ;;  %v1446_v46 = vmul.f32 0.0078125, %v1424_v44 }
 0x2bd   : > { %v1503_v23 = vmul.f32 %v7270_v21, %v1487_v54  ;;  %v1461_v4 = vadd.f32 1e-12, %v1445_v45 }
 0x2be   : > { %v6327_v48 = vpop.eup %6326  ;;  %v1518_v16 = vadd.f32 %v7276_v33, %v1502_v37  ;;  %v1462_v3 = vadd.f32 1e-12, %v1446_v46  ;;  %v1426_v19 = vpop.xlane.xlu0 %1425 }
 0x2bf   : > { %v1488_v47 = vmul.f32 %v6327_v48, %v7437_v39  ;;  %v1519_v32 = vadd.f32 %v7276_v33, %v1503_v23  ;;  %6336 = vrsqrt.f32 %v1461_v4  ;;  %v1447_v56 = vmul.f32 0.0078125, %v1426_v19  ;;  %v1428_v52 = vpop.xlane.xlu1 %1427 }
 0x2c0   : > { %1534 = vst [vmem:[#allocation2 + $0x8] sm:$0xff] %v1518_v16  ;;  %6338 = vrsqrt.f32 %v1462_v3  ;;  %v1448_v31 = vmul.f32 0.0078125, %v1428_v52 }
 0x2c1   : > { %v1504_v9 = vmul.f32 %v7270_v21, %v1488_v47  ;;  %v6329_v60 = vpop.eup %6328  ;;  %1535 = vst [vmem:[#allocation2 + $0x10] sm:$0xff] %v1519_v32  ;;  %v1463_v26 = vadd.f32 1e-12, %v1447_v56 }
 0x2c2   : > { %v6331_v58 = vpop.eup %6330  ;;  %v1489_v39 = vmul.f32 %v6329_v60, %v7442_v12  ;;  %v1464_v13 = vadd.f32 1e-12, %v1448_v31  ;;  %v1430_v25 = vpop.xlane.xlu0 %1429 }
 0x2c3   : > { %v1520_v1 = vadd.f32 %v7276_v33, %v1504_v9  ;;  %v1490_v29 = vmul.f32 %v6331_v58, %v7445_v59  ;;  %6340 = vrsqrt.f32 %v1463_v26  ;;  %v1449_v49 = vmul.f32 0.0078125, %v1430_v25  ;;  %v1432_v50 = vpop.xlane.xlu1 %1431 }
 0x2c4   : > { %v1505_v41 = vmul.f32 %v7270_v21, %v1489_v39  ;;  %6342 = vrsqrt.f32 %v1464_v13  ;;  %v1450_v35 = vmul.f32 0.0078125, %v1432_v50 }
 0x2c5   : > { %1536 = vst [vmem:[#allocation2 + $0x18] sm:$0xff] %v1520_v1  ;;  %v6333_v0 = vpop.eup %6332  ;;  %v1506_v8 = vmul.f32 %v7270_v21, %v1490_v29  ;;  %v1465_v43 = vadd.f32 1e-12, %v1449_v49 }
 0x2c6   : > { %v6335_v11 = vpop.eup %6334  ;;  %v1521_v34 = vadd.f32 %v7276_v33, %v1505_v41  ;;  %v1491_v12 = vmul.f32 %v6333_v0, %v7452_v53  ;;  %v1466_v10 = vadd.f32 1e-12, %v1450_v35  ;;  %v1434_v28 = vpop.xlane.xlu0 %1433 }
 0x2c7   : > { %v1522_v59 = vadd.f32 %v7276_v33, %v1506_v8  ;;  %v1492_v30 = vmul.f32 %v6335_v11, %v7455_v57  ;;  %6344 = vrsqrt.f32 %v1465_v43  ;;  %v1451_v51 = vmul.f32 0.0078125, %v1434_v28  ;;  %v1436_v27 = vpop.xlane.xlu1 %1435 }
 0x2c8   : > { %1537 = vst [vmem:[#allocation2 + $0x20] sm:$0xff] %v1521_v34  ;;  %v1507_v63 = vmul.f32 %v7270_v21, %v1491_v12  ;;  %6346 = vrsqrt.f32 %v1466_v10  ;;  %v1452_v2 = vmul.f32 0.0078125, %v1436_v27 }
 0x2c9   : > { %v6337_v20 = vpop.eup %6336  ;;  %1538 = vst [vmem:[#allocation2 + $0x28] sm:$0xff] %v1522_v59  ;;  %v1508_v40 = vmul.f32 %v7270_v21, %v1492_v30  ;;  %v1467_v15 = vadd.f32 1e-12, %v1451_v51 }
 0x2ca   : > { %v6339_v53 = vpop.eup %6338  ;;  %v1523_v14 = vadd.f32 %v7276_v33, %v1507_v63  ;;  %v1493_v38 = vmul.f32 %v6337_v20, %v7462_v36  ;;  %v1468_v7 = vadd.f32 1e-12, %v1452_v2 }
 0x2cb   : > { %v1524_v57 = vadd.f32 %v7276_v33, %v1508_v40  ;;  %v1494_v61 = vmul.f32 %v6339_v53, %v7465_v24  ;;  %6348 = vrsqrt.f32 %v1467_v15 }
 0x2cc   : > { %1539 = vst [vmem:[#allocation2 + $0x30] sm:$0xff] %v1523_v14  ;;  %v1509_v17 = vmul.f32 %v7270_v21, %v1493_v38  ;;  %6350 = vrsqrt.f32 %v1468_v7 }
 0x2cd   : > { %v6341_v6 = vpop.eup %6340  ;;  %1540 = vst [vmem:[#allocation2 + $0x38] sm:$0xff] %v1524_v57  ;;  %v1510_v54 = vmul.f32 %v7270_v21, %v1494_v61 }
 0x2ce   : > { %v6343_v45 = vpop.eup %6342  ;;  %v1525_v44 = vadd.f32 %v7276_v33, %v1509_v17  ;;  %v1495_v37 = vmul.f32 %v6341_v6, %v7472_v42 }
 0x2cf   : > { %v1526_v36 = vadd.f32 %v7276_v33, %v1510_v54  ;;  %v1496_v46 = vmul.f32 %v6343_v45, %v7475_v62 }
 0x2d0   : > { %1541 = vst [vmem:[#allocation2 + $0x40] sm:$0xff] %v1525_v44  ;;  %v1511_v24 = vmul.f32 %v7270_v21, %v1495_v37 }
 0x2d1   : > { %v6345_v48 = vpop.eup %6344  ;;  %1542 = vst [vmem:[#allocation2 + $0x48] sm:$0xff] %v1526_v36  ;;  %v1512_v23 = vmul.f32 %v7270_v21, %v1496_v46 }
 0x2d2   : > { %v6347_v4 = vpop.eup %6346  ;;  %v1527_v16 = vadd.f32 %v7276_v33, %v1511_v24  ;;  %v1497_v47 = vmul.f32 %v6345_v48, %v7482_v5 }
 0x2d3   : > { %v1528_v3 = vadd.f32 %v7276_v33, %v1512_v23  ;;  %v1498_v42 = vmul.f32 %v6347_v4, %v7485_v55 }
 0x2d4   : > { %1543 = vst [vmem:[#allocation2 + $0x50] sm:$0xff] %v1527_v16  ;;  %v1513_v19 = vmul.f32 %v7270_v21, %v1497_v47 }
 0x2d5   : > { %v6349_v62 = vpop.eup %6348  ;;  %1544 = vst [vmem:[#allocation2 + $0x58] sm:$0xff] %v1528_v3  ;;  %v1514_v32 = vmul.f32 %v7270_v21, %v1498_v42 }
 0x2d6   : > { %v6351_v56 = vpop.eup %6350  ;;  %v1529_v52 = vadd.f32 %v7276_v33, %v1513_v19  ;;  %v1499_v9 = vmul.f32 %v6349_v62, %v7492_v18 }
 0x2d7   : > { %v1530_v31 = vadd.f32 %v7276_v33, %v1514_v32  ;;  %v1500_v5 = vmul.f32 %v6351_v56, %v7495_v22 }
 0x2d8   : > { %1545 = vst [vmem:[#allocation2 + $0x60] sm:$0xff] %v1529_v52  ;;  %v1515_v60 = vmul.f32 %v7270_v21, %v1499_v9 }
 0x2d9   : > { %1546 = vst [vmem:[#allocation2 + $0x68] sm:$0xff] %v1530_v31  ;;  %v1516_v55 = vmul.f32 %v7270_v21, %v1500_v5 }
 0x2da   : > { %v1531_v26 = vadd.f32 %v7276_v33, %v1515_v60 }
 0x2db   : > { %v1532_v58 = vadd.f32 %v7276_v33, %v1516_v55 }
 0x2dc   : > { %1547 = vst [vmem:[#allocation2 + $0x70] sm:$0xff] %v1531_v26 }
 0x2dd   : > { %1548 = vst [vmem:[#allocation2 + $0x78] sm:$0xff] %v1532_v58 }
 0x2de PF: > { %v6352_v18 = vld [vmem:[%s6948_s3] sm:$0xff]   ;;  %v6353_v22 = vld [vmem:[%s6948_s3 + $0x8] sm:$0xff]   ;;  %v6354_v1 = vld [vmem:[%s6948_s3 + $0x10] sm:$0xff]   ;;  %vm2098_vm0 = vcmask 523264   ;;  %s9162_s7 = sld [smem:[#allocation10_spill]]  ;;  %s9164_s4 = scalar_lea.vmem %s9091_s12, %s6918_s5 }
 0x2df   : > { %5844 = vmatprep.subr.bf16.mxu1 %v6352_v18  ;;  %v6355_v21 = vld [vmem:[%s6948_s3 + $0x18] sm:$0xff]   ;;  %v1549_v33 = vld [vmem:[#allocation2] sm:$0xff]  ;;  %v1550_v39 = vld [vmem:[#allocation2 + $0x8] sm:$0xff]  ;;  %s9165_s8 = scalar_lea.vmem %s9092_s13, %s6918_s5  ;;  %s9173_s9 = sld [smem:[#allocation14_spill]] }
 0x2e0   : > { %5845 = vmatpush3.bf16.msra.mxu1 %v6352_v18  ;;  %v7553_v13 = vpack.c.bf16 %v1550_v39, %v1549_v33  ;;  %v6356_v25 = vld [vmem:[%s6948_s3 + $0x20] sm:$0xff]   ;;  %v6357_v29 = vld [vmem:[%s6948_s3 + $0x28] sm:$0xff]   ;;  %v6358_v49 = vld [vmem:[%s6948_s3 + $0x30] sm:$0xff]  }
 0x2e1   : > { %5846 = vmatprep.subr.bf16.mxu1 %v6353_v22  ;;  %v6359_v50 = vld [vmem:[%s6948_s3 + $0x38] sm:$0xff]   ;;  %v1551_v41 = vld [vmem:[#allocation2 + $0x10] sm:$0xff]  ;;  %v6360_v0 = vld [vmem:[%s6948_s3 + $0x80] sm:$0xff]  }
 0x2e2   : > { %5860 = vmatprep.mubr.bf16.mxu1 %v7553_v13  ;;  %5924 = vmatprep.mubr.bf16.mxu0 %v7553_v13  ;;  %v1552_v35 = vld [vmem:[#allocation2 + $0x18] sm:$0xff]  ;;  %v1553_v8 = vld [vmem:[#allocation2 + $0x20] sm:$0xff]  ;;  %v1554_v43 = vld [vmem:[#allocation2 + $0x28] sm:$0xff] }
 0x2e3   : > { %v7562_v11 = vpack.c.bf16 %v1552_v35, %v1551_v41  ;;  %v6361_v34 = vld [vmem:[%s6948_s3 + $0x88] sm:$0xff]   ;;  %v7565_v12 = vpack.c.bf16 %v1554_v43, %v1553_v8  ;;  %v1555_v10 = vld [vmem:[#allocation2 + $0x30] sm:$0xff]  ;;  %v1556_v28 = vld [vmem:[#allocation2 + $0x38] sm:$0xff] }
 0x2e4   : > { %5847 = vmatpush3.bf16.msra.mxu1 %v6353_v22  ;;  %v6362_v59 = vld [vmem:[%s6948_s3 + $0x90] sm:$0xff]   ;;  %v1557_v30 = vld [vmem:[#allocation2 + $0x40] sm:$0xff]  ;;  %v1558_v51 = vld [vmem:[#allocation2 + $0x48] sm:$0xff]  ;;  %v7570_v27 = vpack.c.bf16 %v1556_v28, %v1555_v10 }
 0x2e5   : > { %5848 = vmatprep.subr.bf16.mxu1 %v6354_v1  ;;  %v6363_v63 = vld [vmem:[%s6948_s3 + $0x98] sm:$0xff]   ;;  %v7573_v2 = vpack.c.bf16 %v1558_v51, %v1557_v30  ;;  %v1559_v20 = vld [vmem:[#allocation2 + $0x50] sm:$0xff]  ;;  %v6364_v15 = vld [vmem:[%s6948_s3 + $0xa0] sm:$0xff]  }
 0x2e6   : > { %v1560_v40 = vld [vmem:[#allocation2 + $0x58] sm:$0xff]  ;;  %v1561_v53 = vld [vmem:[#allocation2 + $0x60] sm:$0xff]  ;;  %v1562_v14 = vld [vmem:[#allocation2 + $0x68] sm:$0xff] }
 0x2e7   : > { %v7578_v38 = vpack.c.bf16 %v1560_v40, %v1559_v20  ;;  %v6365_v7 = vld [vmem:[%s6948_s3 + $0xa8] sm:$0xff]   ;;  %v7581_v57 = vpack.c.bf16 %v1562_v14, %v1561_v53  ;;  %v1563_v61 = vld [vmem:[#allocation2 + $0x70] sm:$0xff]  ;;  %v1564_v17 = vld [vmem:[#allocation2 + $0x78] sm:$0xff] }
 0x2e8   : > { %5849 = vmatpush3.bf16.msra.mxu1 %v6354_v1  ;;  %v6366_v6 = vld [vmem:[%s6948_s3 + $0xb0] sm:$0xff]   ;;  %v7586_v54 = vpack.c.bf16 %v1564_v17, %v1563_v61  ;;  %v6367_v45 = vld [vmem:[%s6948_s3 + $0xb8] sm:$0xff]   ;;  %v5361_v44 = vld [vmem:[%s6958_s29] ss:$0 sm:$0xff] }
 0x2e9   : > { %5850 = vmatprep.subr.bf16.mxu1 %v6355_v21 }
 0x2ec   : > { %5851 = vmatpush3.bf16.msra.mxu1 %v6355_v21 }
 0x2ed   : > { %5852 = vmatprep.subr.bf16.mxu1 %v6356_v25 }
 0x2f0   : > { %5853 = vmatpush3.bf16.msra.mxu1 %v6356_v25 }
 0x2f1   : > { %5854 = vmatprep.subr.bf16.mxu1 %v6357_v29 }
 0x2f4   : > { %5855 = vmatpush3.bf16.msra.mxu1 %v6357_v29 }
 0x2f5   : > { %5856 = vmatprep.subr.bf16.mxu1 %v6358_v49 }
 0x2f8   : > { %5857 = vmatpush3.bf16.msra.mxu1 %v6358_v49 }
 0x2f9   : > { %5858 = vmatprep.subr.bf16.mxu1 %v6359_v50 }
 0x2fc   : > { %5859 = vmatpush3.bf16.msra.mxu1 %v6359_v50 }
 0x2fd   : > { %5876 = vmatprep.subr.bf16.mxu1 %v6360_v0 }
 0x2ff   : > { %5861 = vmatmul.mubr.bf16.vlgmr.msra.gmra.mrb[0].mxu1 %v7562_v11 }
 0x300   : > { %5877 = vmatpush3.bf16.msra.mxu1 %v6360_v0  ;;  %5864 = vmatprep.mubr.bf16.mxu1 %v7565_v12 }
 0x301   : > { %5878 = vmatprep.subr.bf16.mxu1 %v6361_v34 }
 0x304   : > { %5879 = vmatpush3.bf16.msra.mxu1 %v6361_v34 }
 0x305   : > { %5880 = vmatprep.subr.bf16.mxu1 %v6362_v59 }
 0x307   : > { %5865 = vmatmul.mubr.bf16.gmra.mrb[4].mxu1 %v7570_v27 }
 0x308   : > { %5881 = vmatpush3.bf16.msra.mxu1 %v6362_v59  ;;  %5868 = vmatprep.mubr.bf16.mxu1 %v7573_v2  ;;  %v5387_v59 = vld [vmem:[%s6958_s29 + $0x2] ss:$0 sm:$0xff] }
 0x309   : > { %5882 = vmatprep.subr.bf16.mxu1 %v6363_v63 }
 0x30c   : > { %5883 = vmatpush3.bf16.msra.mxu1 %v6363_v63 }
 0x30d   : > { %5884 = vmatprep.subr.bf16.mxu1 %v6364_v15 }
 0x30f   : > { %5869 = vmatmul.mubr.bf16.gmra.mrb[8].mxu1 %v7578_v38 }
 0x310   : > { %5885 = vmatpush3.bf16.msra.mxu1 %v6364_v15  ;;  %5872 = vmatprep.mubr.bf16.mxu1 %v7581_v57 }
 0x311   : > { %5886 = vmatprep.subr.bf16.mxu1 %v6365_v7 }
 0x314   : > { %5887 = vmatpush3.bf16.msra.mxu1 %v6365_v7 }
 0x315   : > { %5888 = vmatprep.subr.bf16.mxu1 %v6366_v6 }
 0x317   : > { %5873 = vmatmul.mubr.bf16.gmra.mrb[12].mxu1 %v7586_v54 }
 0x318   : > { %5889 = vmatpush3.bf16.msra.mxu1 %v6366_v6  ;;  %5892 = vmatprep.mubr.bf16.mxu1 %v7553_v13 }
 0x319   : > { %5890 = vmatprep.subr.bf16.mxu1 %v6367_v45 }
 0x31c   : > { %5891 = vmatpush3.bf16.msra.mxu1 %v6367_v45 }
 0x31f   : > { %5893 = vmatmul.mubr.bf16.vlgmr.msra.gmra.mrb[16].mxu1 %v7562_v11 }
 0x320   : > { %5896 = vmatprep.mubr.bf16.mxu1 %v7565_v12 }
 0x327   : > { %5897 = vmatmul.mubr.bf16.gmra.mrb[20].mxu1 %v7570_v27 }
 0x328   : > { %5900 = vmatprep.mubr.bf16.mxu1 %v7573_v2 }
 0x32f   : > { %5901 = vmatmul.mubr.bf16.gmra.mrb[24].mxu1 %v7578_v38 }
 0x330   : > { %5904 = vmatprep.mubr.bf16.mxu1 %v7581_v57 }
 0x337   : > { %5905 = vmatmul.mubr.bf16.gmra.mrb[28].mxu1 %v7586_v54 }
 0x3d2   : > { %v5862_v37 = vpop.f32.mrb[0].mxu1 }
 0x3d3   : > { %v7599_v36 = vadd.f32 %v5862_v37, %v5361_v44  ;;  %v1679_v46 = vpop.f32.mrb[1].mxu1 }
 0x3d4   : > { %v5863_v24 = vpop.f32.mrb[2].mxu1  ;;  %v1680_v4 = vadd.f32 %v5361_v44, %v1679_v46 }
 0x3d5   : > { %v7601_v48 = vadd.f32 %v5863_v24, %v5361_v44  ;;  %v1682_v23 = vpop.f32.mrb[3].mxu1 }
 0x3d6   : > { %v1683_v16 = vadd.f32 %v5361_v44, %v1682_v23 }
 0x3d7   : > { %v2083_v47 = vpack.c.bf16 %v7601_v48, %v7599_v36  ;;  %v6368_v36 = vld [vmem:[%s6948_s3 + $0x100] sm:$0xff]   ;;  %v6369_v48 = vld [vmem:[%s6948_s3 + $0x108] sm:$0xff]  }
 0x3d8   : > { %v2082_v3 = vpack.c.bf16 %v1683_v16, %v1680_v4  ;;  %5908 = vmatprep.subr.bf16.mxu0 %v6368_v36 }
 0x3d9   : > { %5909 = vmatpush3.bf16.msra.mxu0 %v6368_v36 }
 0x3da   : > { %v5866_v42 = vpop.f32.mrb[4].mxu1  ;;  %5956 = vmatprep.mubr.msk.bf16.mxu1 %vm2098_vm0, %v2082_v3  ;;  %5910 = vmatprep.subr.bf16.mxu0 %v6369_v48 }
 0x3db   : > { %v7606_v19 = vadd.f32 %v5866_v42, %v5361_v44  ;;  %v1695_v62 = vpop.f32.mrb[5].mxu1 }
 0x3dc   : > { %v7608_v32 = vadd.f32 %v5361_v44, %v1695_v62  ;;  %v5867_v56 = vpop.f32.mrb[6].mxu1 }
 0x3dd   : > { %v7610_v52 = vadd.f32 %v5867_v56, %v5361_v44  ;;  %v1698_v9 = vpop.f32.mrb[7].mxu1  ;;  %5911 = vmatpush3.bf16.msra.mxu0 %v6369_v48  ;;  %v6376_v48 = vld [vmem:[%s6948_s3 + $0xc0] sm:$0xff]  }
 0x3de   : > { %v7612_v31 = vadd.f32 %v5361_v44, %v1698_v9 }
 0x3df   : > { %v2085_v5 = vpack.c.bf16 %v7610_v52, %v7606_v19  ;;  %v6371_v19 = vld [vmem:[%s6948_s3 + $0x118] sm:$0xff]   ;;  %v6373_v52 = vld [vmem:[%s6948_s3 + $0x128] sm:$0xff]  }
 0x3e0   : > { %v2084_v60 = vpack.c.bf16 %v7612_v31, %v7608_v32  ;;  %v6372_v32 = vld [vmem:[%s6948_s3 + $0x120] sm:$0xff]   ;;  %v6374_v31 = vld [vmem:[%s6948_s3 + $0x130] sm:$0xff]  }
 0x3e2   : > { %v5870_v55 = vpop.f32.mrb[8].mxu1 }
 0x3e3   : > { %v7618_v26 = vadd.f32 %v5870_v55, %v5361_v44  ;;  %v1711_v58 = vpop.f32.mrb[9].mxu1 }
 0x3e4   : > { %v7620_v18 = vadd.f32 %v5361_v44, %v1711_v58  ;;  %v5871_v22 = vpop.f32.mrb[10].mxu1 }
 0x3e5   : > { %v7622_v1 = vadd.f32 %v5871_v22, %v5361_v44  ;;  %v1714_v21 = vpop.f32.mrb[11].mxu1 }
 0x3e6   : > { %v7624_v33 = vadd.f32 %v5361_v44, %v1714_v21 }
 0x3e7   : > { %v2087_v39 = vpack.c.bf16 %v7622_v1, %v7618_v26  ;;  %v5430_v26 = vld [vmem:[%s9162_s7] ss:$0 sm:$0xff] }
 0x3e8   : > { %v2086_v25 = vpack.c.bf16 %v7624_v33, %v7620_v18 }
 0x3ea   : > { %v5874_v29 = vpop.f32.mrb[12].mxu1 }
 0x3eb   : > { %v7630_v49 = vadd.f32 %v5874_v29, %v5361_v44  ;;  %v1727_v50 = vpop.f32.mrb[13].mxu1 }
 0x3ec   : > { %v7632_v41 = vadd.f32 %v5361_v44, %v1727_v50  ;;  %v5875_v35 = vpop.f32.mrb[14].mxu1 }
 0x3ed   : > { %v7634_v0 = vadd.f32 %v5875_v35, %v5361_v44  ;;  %v1730_v8 = vpop.f32.mrb[15].mxu1 }
 0x3ee   : > { %v7636_v43 = vadd.f32 %v5361_v44, %v1730_v8 }
 0x3ef   : > { %v2089_v34 = vpack.c.bf16 %v7634_v0, %v7630_v49 }
 0x3f0   : > { %v2088_v10 = vpack.c.bf16 %v7636_v43, %v7632_v41 }
 0x3f2   : > { %v5894_v28 = vpop.f32.mrb[16].mxu1 }
 0x3f3   : > { %v1849_v30 = vpop.f32.mrb[17].mxu1  ;;  %v1858_v63 = vadd.f32 %v5894_v28, %v5387_v59 }
 0x3f4   : > { %v5895_v51 = vpop.f32.mrb[18].mxu1  ;;  %v1850_v15 = vadd.f32 %v5387_v59, %v1849_v30 }
 0x3f5   : > { %v1861_v20 = vadd.f32 %v5895_v51, %v5387_v59  ;;  %v1852_v40 = vpop.f32.mrb[19].mxu1 }
 0x3f6   : > { %v1853_v53 = vadd.f32 %v5387_v59, %v1852_v40 }
 0x3f7   : > { %v2091_v14 = vpack.c.bf16 %v1861_v20, %v1858_v63 }
 0x3f8   : > { %v2090_v7 = vpack.c.bf16 %v1853_v53, %v1850_v15 }
 0x3f9   : > { %v2127_v3 = vsel %vm2098_vm0, %v2091_v14, 0 }
 0x3fa   : > { %6228 = vmatprep.subr.msk.bf16.mxu1 %vm2098_vm0, %v2090_v7  ;;  %v2124_v61 = vsel %vm2098_vm0, %v2090_v7, 0  ;;  %v5898_v17 = vpop.f32.mrb[20].mxu1 }
 0x3fb   : > { %5941 = vmatpush3.bf16.xpose.msra.mxu1 %v2124_v61  ;;  %v1874_v6 = vadd.f32 %v5898_v17, %v5387_v59  ;;  %v1865_v45 = vpop.f32.mrb[21].mxu1 }
 0x3fc   : > { %6229 = vmatprep.subr.msk.bf16.mxu1 %vm2098_vm0, %v2091_v14  ;;  %v1866_v44 = vadd.f32 %v5387_v59, %v1865_v45  ;;  %v5899_v37 = vpop.f32.mrb[22].mxu1 }
 0x3fd   : > { %v1877_v46 = vadd.f32 %v5899_v37, %v5387_v59  ;;  %v1868_v24 = vpop.f32.mrb[23].mxu1 }
 0x3fe   : > { %v1869_v23 = vadd.f32 %v5387_v59, %v1868_v24 }
 0x3ff   : > { %v2093_v4 = vpack.c.bf16 %v1877_v46, %v1874_v6 }
 0x400   : > { %v2092_v16 = vpack.c.bf16 %v1869_v23, %v1866_v44 }
 0x401   : > { %v2133_v7 = vsel %vm2098_vm0, %v2093_v4, 0 }
 0x402   : > { %v5902_v42 = vpop.f32.mrb[24].mxu1  ;;  %v2130_v35 = vsel %vm2098_vm0, %v2092_v16, 0 }
 0x403   : > { %5943 = vmatpush3.bf16.xpose.msra.mxu1 %v2127_v3  ;;  %v1890_v62 = vadd.f32 %v5902_v42, %v5387_v59  ;;  %v1881_v56 = vpop.f32.mrb[25].mxu1 }
 0x404   : > { %6230 = vmatprep.subr.msk.bf16.mxu1 %vm2098_vm0, %v2092_v16  ;;  %v1882_v9 = vadd.f32 %v5387_v59, %v1881_v56  ;;  %v5903_v55 = vpop.f32.mrb[26].mxu1 }
 0x405   : > { %v1893_v58 = vadd.f32 %v5903_v55, %v5387_v59  ;;  %v1884_v22 = vpop.f32.mrb[27].mxu1 }
 0x406   : > { %v1885_v21 = vadd.f32 %v5387_v59, %v1884_v22 }
 0x407   : > { %v2095_v29 = vpack.c.bf16 %v1893_v58, %v1890_v62 }
 0x408   : > { %v2094_v50 = vpack.c.bf16 %v1885_v21, %v1882_v9 }
 0x409   : > { %v2139_v17 = vsel %vm2098_vm0, %v2095_v29, 0 }
 0x40a   : > { %v5906_v8 = vpop.f32.mrb[28].mxu1  ;;  %v2136_v61 = vsel %vm2098_vm0, %v2094_v50, 0 }
 0x40b   : > { %5945 = vmatpush3.bf16.xpose.msra.mxu1 %v2130_v35  ;;  %v1906_v28 = vadd.f32 %v5906_v8, %v5387_v59  ;;  %v1897_v30 = vpop.f32.mrb[29].mxu1 }
 0x40c   : > { %6231 = vmatprep.subr.msk.bf16.mxu1 %vm2098_vm0, %v2093_v4  ;;  %v1898_v51 = vadd.f32 %v5387_v59, %v1897_v30  ;;  %v5907_v63 = vpop.f32.mrb[30].mxu1 }
 0x40d   : > { %v1909_v20 = vadd.f32 %v5907_v63, %v5387_v59  ;;  %v1900_v40 = vpop.f32.mrb[31].mxu1 }
 0x40e   : > { %v1901_v15 = vadd.f32 %v5387_v59, %v1900_v40 }
 0x40f   : > { %v2097_v53 = vpack.c.bf16 %v1909_v20, %v1906_v28 }
 0x410   : > { %v2096_v14 = vpack.c.bf16 %v1901_v15, %v1898_v51 }
 0x411   : > { %v2145_v6 = vsel %vm2098_vm0, %v2097_v53, 0 }
 0x412   : > { %v2142_v59 = vsel %vm2098_vm0, %v2096_v14, 0 }
 0x413   : > { %5947 = vmatpush3.bf16.xpose.msra.mxu1 %v2133_v7 }
 0x414   : > { %6232 = vmatprep.subr.msk.bf16.mxu1 %vm2098_vm0, %v2094_v50 }
 0x41b   : > { %5949 = vmatpush3.bf16.xpose.msra.mxu1 %v2136_v61 }
 0x41c   : > { %6233 = vmatprep.subr.msk.bf16.mxu1 %vm2098_vm0, %v2095_v29 }
 0x423   : > { %5951 = vmatpush3.bf16.xpose.msra.mxu1 %v2139_v17 }
 0x424   : > { %6234 = vmatprep.subr.msk.bf16.mxu1 %vm2098_vm0, %v2096_v14 }
 0x42b   : > { %5953 = vmatpush3.bf16.xpose.msra.mxu1 %v2142_v59 }
 0x42c   : > { %6235 = vmatprep.subr.msk.bf16.mxu1 %vm2098_vm0, %v2097_v53 }
 0x433   : > { %5955 = vmatpush3.bf16.xpose.msra.mxu1 %v2145_v6 }
 0x434   : > { %6036 = vmatprep.subr.bf16.mxu1 %v6376_v48 }
 0x43a   : > { %5957 = vmatmul.mubr.msk.bf16.vlgmr.msra.gmra.mrb[32].mxu1 %vm2098_vm0, %v2083_v47  ;;  %v6370_v47 = vld [vmem:[%s6948_s3 + $0x110] sm:$0xff]  }
 0x43b   : > { %5960 = vmatprep.mubr.msk.bf16.mxu1 %vm2098_vm0, %v2084_v60  ;;  %5912 = vmatprep.subr.bf16.mxu0 %v6370_v47 }
 0x43c   : > { %5913 = vmatpush3.bf16.msra.mxu0 %v6370_v47  ;;  %v6377_v47 = vld [vmem:[%s6948_s3 + $0xc8] sm:$0xff]   ;;  %6037 = vmatpush3.bf16.msra.mxu1 %v6376_v48 }
 0x43d   : > { %5914 = vmatprep.subr.bf16.mxu0 %v6371_v19  ;;  %6038 = vmatprep.subr.bf16.mxu1 %v6377_v47 }
 0x440   : > { %5915 = vmatpush3.bf16.msra.mxu0 %v6371_v19  ;;  %v6378_v19 = vld [vmem:[%s6948_s3 + $0xd0] sm:$0xff]   ;;  %6039 = vmatpush3.bf16.msra.mxu1 %v6377_v47 }
 0x441   : > { %5916 = vmatprep.subr.bf16.mxu0 %v6372_v32  ;;  %6040 = vmatprep.subr.bf16.mxu1 %v6378_v19 }
 0x442   : > { %5961 = vmatmul.mubr.msk.bf16.gmra.mrb[36].mxu1 %vm2098_vm0, %v2085_v5  ;;  %v6375_v5 = vld [vmem:[%s6948_s3 + $0x138] sm:$0xff]  }
 0x443   : > { %5964 = vmatprep.mubr.msk.bf16.mxu1 %vm2098_vm0, %v2086_v25 }
 0x444   : > { %5917 = vmatpush3.bf16.msra.mxu0 %v6372_v32  ;;  %v6379_v32 = vld [vmem:[%s6948_s3 + $0xd8] sm:$0xff]   ;;  %6041 = vmatpush3.bf16.msra.mxu1 %v6378_v19 }
 0x445   : > { %5918 = vmatprep.subr.bf16.mxu0 %v6373_v52  ;;  %6042 = vmatprep.subr.bf16.mxu1 %v6379_v32 }
 0x448   : > { %5919 = vmatpush3.bf16.msra.mxu0 %v6373_v52  ;;  %v6380_v52 = vld [vmem:[%s6948_s3 + $0xe0] sm:$0xff]   ;;  %6043 = vmatpush3.bf16.msra.mxu1 %v6379_v32 }
 0x449   : > { %5920 = vmatprep.subr.bf16.mxu0 %v6374_v31  ;;  %6044 = vmatprep.subr.bf16.mxu1 %v6380_v52 }
 0x44a   : > { %5965 = vmatmul.mubr.msk.bf16.gmra.mrb[40].mxu1 %vm2098_vm0, %v2087_v39 }
 0x44b   : > { %5968 = vmatprep.mubr.msk.bf16.mxu1 %vm2098_vm0, %v2088_v10 }
 0x44c   : > { %5921 = vmatpush3.bf16.msra.mxu0 %v6374_v31  ;;  %v6381_v31 = vld [vmem:[%s6948_s3 + $0xe8] sm:$0xff]   ;;  %6045 = vmatpush3.bf16.msra.mxu1 %v6380_v52 }
 0x44d   : > { %5922 = vmatprep.subr.bf16.mxu0 %v6375_v5  ;;  %6046 = vmatprep.subr.bf16.mxu1 %v6381_v31 }
 0x450   : > { %5923 = vmatpush3.bf16.msra.mxu0 %v6375_v5  ;;  %v6382_v5 = vld [vmem:[%s6948_s3 + $0xf0] sm:$0xff]   ;;  %6047 = vmatpush3.bf16.msra.mxu1 %v6381_v31 }
 0x451   : > { %6048 = vmatprep.subr.bf16.mxu1 %v6382_v5 }
 0x452   : > { %5969 = vmatmul.mubr.msk.bf16.gmra.mrb[44].mxu1 %vm2098_vm0, %v2089_v34 }
 0x453   : > { %6052 = vmatprep.mubr.bf16.mxu1 %v7553_v13  ;;  %5925 = vmatmul.mubr.bf16.vlgmr.msra.gmra.mrb[0].mxu0 %v7562_v11 }
 0x454   : > { %5928 = vmatprep.mubr.bf16.mxu0 %v7565_v12  ;;  %6049 = vmatpush3.bf16.msra.mxu1 %v6382_v5 }
 0x45b   : > { %5929 = vmatmul.mubr.bf16.gmra.mrb[4].mxu0 %v7570_v27 }
 0x45c   : > { %5932 = vmatprep.mubr.bf16.mxu0 %v7573_v2 }
 0x463   : > { %5933 = vmatmul.mubr.bf16.gmra.mrb[8].mxu0 %v7578_v38 }
 0x464   : > { %5936 = vmatprep.mubr.bf16.mxu0 %v7581_v57 }
 0x46b   : > { %5937 = vmatmul.mubr.bf16.gmra.mrb[12].mxu0 %v7586_v54 }
 0x50d   : > { %v5958_v60 = vpop.f32.mrb[32].mxu1 }
 0x50e   : > { %v2246_v18 = vmul.f32 0.125, %v5958_v60  ;;  %v2181_v1 = vpop.f32.mrb[33].mxu1  ;;  %v6383_v60 = vld [vmem:[%s6948_s3 + $0xf8] sm:$0xff]  }
 0x50f   : > { %v2244_v33 = vmul.f32 0.125, %v2181_v1  ;;  %v5959_v39 = vpop.f32.mrb[34].mxu1  ;;  %6050 = vmatprep.subr.bf16.mxu1 %v6383_v60 }
 0x510   : > { %v2247_v25 = vmul.f32 0.125, %v5959_v39  ;;  %v2184_v49 = vpop.f32.mrb[35].mxu1  ;;  %v7704_v41 = vadd.f32 %v5430_v26, %v2246_v18  ;;  %6051 = vmatpush3.bf16.msra.mxu1 %v6383_v60 }
 0x511   : > { %v2245_v0 = vmul.f32 0.125, %v2184_v49  ;;  %v7706_v43 = vadd.f32 %v5430_v26, %v2244_v33 }
 0x512   : > { %2286 = vmax.xlane.f32.xlu1 %v7704_v41  ;;  %v7710_v34 = vadd.f32 %v5430_v26, %v2247_v25 }
 0x513   : > { %2282 = vmax.xlane.f32.xlu0 %v7706_v43  ;;  %v7712_v45 = vadd.f32 %v5430_v26, %v2245_v0  ;;  %6053 = vmatmul.mubr.bf16.vlgmr.msra.gmra.mrb[48].mxu1 %v7562_v11 }
 0x514   : > { %6056 = vmatprep.mubr.bf16.mxu1 %v7565_v12 }
 0x515   : > { %v5962_v10 = vpop.f32.mrb[36].mxu1 }
 0x516   : > { %2288 = vmax.xlane.f32.xlu1 %v7710_v34  ;;  %v2197_v44 = vpop.f32.mrb[37].mxu1  ;;  %v2250_v23 = vmul.f32 0.125, %v5962_v10 }
 0x517   : > { %v2248_v37 = vmul.f32 0.125, %v2197_v44  ;;  %2284 = vmax.xlane.f32.xlu0 %v7712_v45  ;;  %v5963_v46 = vpop.f32.mrb[38].mxu1  ;;  %v7771_v44 = vld [vmem:[%s6958_s29 + $0x4] ss:$0 sm:$0xff] }
 0x518   : > { %v2200_v24 = vpop.f32.mrb[39].mxu1  ;;  %v2251_v3 = vmul.f32 0.125, %v5963_v46  ;;  %v7722_v56 = vadd.f32 %v5430_v26, %v2250_v23 }
 0x519   : > { %v2249_v4 = vmul.f32 0.125, %v2200_v24  ;;  %v7716_v16 = vadd.f32 %v5430_v26, %v2248_v37 }
 0x51a   : > { %v7725_v22 = vadd.f32 %v5430_v26, %v2251_v3 }
 0x51b   : > { %2290 = vmax.xlane.f32.xlu0 %v7716_v16  ;;  %v7719_v42 = vadd.f32 %v5430_v26, %v2249_v4  ;;  %6057 = vmatmul.mubr.bf16.gmra.mrb[52].mxu1 %v7570_v27 }
 0x51c   : > { %6060 = vmatprep.mubr.bf16.mxu1 %v7573_v2 }
 0x51d   : > { %2292 = vmax.xlane.f32.xlu1 %v7719_v42  ;;  %v5966_v62 = vpop.f32.mrb[40].mxu1 }
 0x51e   : > { %v2213_v9 = vpop.f32.mrb[41].mxu1  ;;  %v2254_v29 = vmul.f32 0.125, %v5966_v62 }
 0x51f   : > { %v2252_v55 = vmul.f32 0.125, %v2213_v9  ;;  %2294 = vmax.xlane.f32.xlu0 %v7722_v56  ;;  %v5967_v58 = vpop.f32.mrb[42].mxu1 }
 0x520   : > { %v2216_v21 = vpop.f32.mrb[43].mxu1  ;;  %v2255_v8 = vmul.f32 0.125, %v5967_v58  ;;  %v7734_v51 = vadd.f32 %v5430_v26, %v2254_v29 }
 0x521   : > { %v2253_v50 = vmul.f32 0.125, %v2216_v21  ;;  %2296 = vmax.xlane.f32.xlu1 %v7725_v22  ;;  %v7728_v35 = vadd.f32 %v5430_v26, %v2252_v55 }
 0x522   : > { %v7737_v15 = vadd.f32 %v5430_v26, %v2255_v8 }
 0x523   : > { %2298 = vmax.xlane.f32.xlu0 %v7728_v35  ;;  %v7731_v28 = vadd.f32 %v5430_v26, %v2253_v50  ;;  %6061 = vmatmul.mubr.bf16.gmra.mrb[56].mxu1 %v7578_v38 }
 0x524   : > { %6064 = vmatprep.mubr.bf16.mxu1 %v7581_v57 }
 0x525   : > { %2300 = vmax.xlane.f32.xlu1 %v7731_v28  ;;  %v5970_v30 = vpop.f32.mrb[44].mxu1 }
 0x526   : > { %v2229_v63 = vpop.f32.mrb[45].mxu1  ;;  %v2258_v14 = vmul.f32 0.125, %v5970_v30  ;;  %v5926_v46 = vpop.f32.mrb[0].mxu0 }
 0x527   : > { %v2256_v20 = vmul.f32 0.125, %v2229_v63  ;;  %2302 = vmax.xlane.f32.xlu0 %v7734_v51  ;;  %v5971_v40 = vpop.f32.mrb[46].mxu1  ;;  %v2028_v24 = vadd.f32 %v5926_v46, %v7771_v44  ;;  %v2019_v23 = vpop.f32.mrb[1].mxu0 }
 0x528   : > { %v2232_v53 = vpop.f32.mrb[47].mxu1  ;;  %v2259_v17 = vmul.f32 0.125, %v5971_v40  ;;  %v7746_v6 = vadd.f32 %v5430_v26, %v2258_v14  ;;  %v5927_v3 = vpop.f32.mrb[2].mxu0 }
 0x529   : > { %v2257_v7 = vmul.f32 0.125, %v2232_v53  ;;  %2304 = vmax.xlane.f32.xlu1 %v7737_v15  ;;  %v7740_v61 = vadd.f32 %v5430_v26, %v2256_v20  ;;  %v2031_v9 = vadd.f32 %v5927_v3, %v7771_v44 }
 0x52a   : > { %v7749_v36 = vadd.f32 %v5430_v26, %v2259_v17 }
 0x52b   : > { %2306 = vmax.xlane.f32.xlu0 %v7740_v61  ;;  %v7743_v59 = vadd.f32 %v5430_v26, %v2257_v7  ;;  %6065 = vmatmul.mubr.bf16.gmra.mrb[60].mxu1 %v7586_v54  ;;  %v2435_v21 = vpack.c.bf16 %v2031_v9, %v2028_v24 }
 0x52d   : > { %2308 = vmax.xlane.f32.xlu1 %v7743_v59 }
 0x52f   : > { %2310 = vmax.xlane.f32.xlu0 %v7746_v6 }
 0x531   : > { %2312 = vmax.xlane.f32.xlu1 %v7749_v36 }
 0x59f   : > { %v2287_v26 = vpop.xlane.xlu1 %2286 }
 0x5a0   : > { %v2316_v18 = vsub.f32 %v7704_v41, %v2287_v26  ;;  %v2283_v1 = vpop.xlane.xlu0 %2282  ;;  %v2020_v41 = vadd.f32 %v7771_v44, %v2019_v23 }
 0x5a1   : > { %v2314_v33 = vsub.f32 %v7706_v43, %v2283_v1 }
 0x5a2   : > { %v2334_v49 = vmul.f32 1.442695, %v2316_v18 }
 0x5a3   : > { %v2330_v39 = vmul.f32 1.442695, %v2314_v33  ;;  %v2289_v25 = vpop.xlane.xlu1 %2288 }
 0x5a4   : > { %v2317_v0 = vsub.f32 %v7710_v34, %v2289_v25  ;;  %v2285_v10 = vpop.xlane.xlu0 %2284  ;;  %v2022_v34 = vpop.f32.mrb[3].mxu0 }
 0x5a5   : > { %6448 = vpow2.f32 %v2330_v39  ;;  %v2315_v37 = vsub.f32 %v7712_v45, %v2285_v10  ;;  %v2023_v58 = vadd.f32 %v7771_v44, %v2022_v34  ;;  %v5930_v40 = vpop.f32.mrb[4].mxu0 }
 0x5a6   : > { %6450 = vpow2.f32 %v2334_v49  ;;  %v2336_v43 = vmul.f32 1.442695, %v2317_v0  ;;  %v2044_v14 = vadd.f32 %v5930_v40, %v7771_v44 }
 0x5a7   : > { %v2332_v4 = vmul.f32 1.442695, %v2315_v37  ;;  %v2434_v8 = vpack.c.bf16 %v2023_v58, %v2020_v41 }
 0x5a8   : > { %v2291_v62 = vpop.xlane.xlu0 %2290 }
 0x5a9   : > { %6452 = vpow2.f32 %v2332_v4  ;;  %v2318_v55 = vsub.f32 %v7716_v16, %v2291_v62  ;;  %5972 = vmatprep.subr.bf16.mxu0 %v2434_v8  ;;  %v2035_v16 = vpop.f32.mrb[5].mxu0 }
 0x5aa   : > { %v2293_v45 = vpop.xlane.xlu1 %2292  ;;  %6454 = vpow2.f32 %v2336_v43  ;;  %5973 = vmatpush3.bf16.msra.mxu0 %v2434_v8  ;;  %v5931_v47 = vpop.f32.mrb[6].mxu0 }
 0x5ab   : > { %v2338_v29 = vmul.f32 1.442695, %v2318_v55  ;;  %v2319_v50 = vsub.f32 %v7719_v42, %v2293_v45  ;;  %v2036_v42 = vadd.f32 %v7771_v44, %v2035_v16  ;;  %5974 = vmatprep.subr.bf16.mxu0 %v2435_v21  ;;  %v2038_v32 = vpop.f32.mrb[7].mxu0 }
 0x5ac   : > { %v2295_v30 = vpop.xlane.xlu0 %2294  ;;  %v2039_v5 = vadd.f32 %v7771_v44, %v2038_v32  ;;  %v5934_v0 = vpop.f32.mrb[8].mxu0 }
 0x5ad   : > { %6456 = vpow2.f32 %v2338_v29  ;;  %v2340_v63 = vmul.f32 1.442695, %v2319_v50  ;;  %v2320_v20 = vsub.f32 %v7722_v56, %v2295_v30  ;;  %v2047_v56 = vadd.f32 %v5931_v47, %v7771_v44  ;;  %v2051_v24 = vpop.f32.mrb[9].mxu0 }
 0x5ae   : > { %v2297_v53 = vpop.xlane.xlu1 %2296  ;;  %5975 = vmatpush3.bf16.msra.mxu0 %v2435_v21  ;;  %v2436_v39 = vpack.c.bf16 %v2039_v5, %v2036_v42  ;;  %v2060_v46 = vadd.f32 %v5934_v0, %v7771_v44  ;;  %v2052_v41 = vadd.f32 %v7771_v44, %v2051_v24  ;;  %v5935_v3 = vpop.f32.mrb[10].mxu0  ;;  %v7855_v24 = vld [vmem:[%s6958_s29 + $0x3] ss:$0 sm:$0xff] }
 0x5af   : > { %v7782_v7 = vpop.eup %6448  ;;  %v2342_v17 = vmul.f32 1.442695, %v2320_v20  ;;  %v2321_v48 = vsub.f32 %v7725_v22, %v2297_v53  ;;  %6458 = vpow2.f32 %v2340_v63  ;;  %v2437_v26 = vpack.c.bf16 %v2047_v56, %v2044_v14  ;;  %v2054_v62 = vpop.f32.mrb[11].mxu0 }
 0x5b0   : > { %v2299_v19 = vpop.xlane.xlu0 %2298  ;;  %2362 = vadd.xlane.f32.xlu0 %v7782_v7  ;;  %v7790_v60 = vpop.eup %6450  ;;  %5976 = vmatprep.subr.bf16.mxu0 %v2436_v39  ;;  %v2063_v43 = vadd.f32 %v5935_v3, %v7771_v44  ;;  %v2055_v55 = vadd.f32 %v7771_v44, %v2054_v62 }
 0x5b1   : > { %6460 = vpow2.f32 %v2342_v17  ;;  %v2344_v52 = vmul.f32 1.442695, %v2321_v48  ;;  %v2322_v31 = vsub.f32 %v7728_v35, %v2299_v19  ;;  %v5938_v20 = vpop.f32.mrb[12].mxu0 }
 0x5b2   : > { %v2301_v22 = vpop.xlane.xlu1 %2300  ;;  %5977 = vmatpush3.bf16.msra.mxu0 %v2436_v39  ;;  %v2439_v45 = vpack.c.bf16 %v2063_v43, %v2060_v46  ;;  %v2438_v8 = vpack.c.bf16 %v2055_v55, %v2052_v41  ;;  %v2076_v14 = vadd.f32 %v5938_v20, %v7771_v44  ;;  %v2067_v16 = vpop.f32.mrb[13].mxu0  ;;  %v7851_v39 = vld [vmem:[%s6948_s3 + $0x40] sm:$0xff]  }
 0x5b3   : > { %v7792_v18 = vpop.eup %6452  ;;  %v2346_v1 = vmul.f32 1.442695, %v2322_v31  ;;  %v2323_v33 = vsub.f32 %v7731_v28, %v2301_v22  ;;  %6462 = vpow2.f32 %v2344_v52  ;;  %5978 = vmatprep.subr.bf16.mxu0 %v2437_v26  ;;  %v2068_v42 = vadd.f32 %v7771_v44, %v2067_v16  ;;  %v5939_v47 = vpop.f32.mrb[14].mxu0 }
 0x5b4   : > { %v2303_v25 = vpop.xlane.xlu0 %2302  ;;  %2366 = vadd.xlane.f32.xlu0 %v7790_v60  ;;  %2364 = vadd.xlane.f32.xlu1 %v7792_v18  ;;  %v7798_v10 = vpop.eup %6454 }
 0x5b5   : > { %6464 = vpow2.f32 %v2346_v1  ;;  %v2348_v35 = vmul.f32 1.442695, %v2323_v33  ;;  %v2324_v49 = vsub.f32 %v7734_v51, %v2303_v25  ;;  %v2070_v19 = vpop.f32.mrb[15].mxu0 }
 0x5b6   : > { %v2305_v37 = vpop.xlane.xlu1 %2304  ;;  %5979 = vmatpush3.bf16.msra.mxu0 %v2437_v26  ;;  %v2071_v32 = vadd.f32 %v7771_v44, %v2070_v19 }
 0x5b7   : > { %v7801_v28 = vpop.eup %6456  ;;  %v2350_v23 = vmul.f32 1.442695, %v2324_v49  ;;  %v2325_v4 = vsub.f32 %v7737_v15, %v2305_v37  ;;  %6466 = vpow2.f32 %v2348_v35  ;;  %5980 = vmatprep.subr.bf16.mxu0 %v2438_v8 }
 0x5b8   : > { %2370 = vadd.xlane.f32.xlu0 %v7801_v28  ;;  %v2307_v51 = vpop.xlane.xlu0 %2306  ;;  %2368 = vadd.xlane.f32.xlu1 %v7798_v10  ;;  %v2440_v5 = vpack.c.bf16 %v2071_v32, %v2068_v42 }
 0x5b9   : > { %6468 = vpow2.f32 %v2350_v23  ;;  %v2352_v9 = vmul.f32 1.442695, %v2325_v4  ;;  %v2326_v34 = vsub.f32 %v7740_v61, %v2307_v51  ;;  %v7810_v15 = vpop.eup %6458 }
 0x5ba   : > { %v2309_v58 = vpop.xlane.xlu1 %2308  ;;  %5981 = vmatpush3.bf16.msra.mxu0 %v2438_v8 }
 0x5bb   : > { %v7812_v21 = vpop.eup %6460  ;;  %v2354_v29 = vmul.f32 1.442695, %v2326_v34  ;;  %v2327_v50 = vsub.f32 %v7743_v59, %v2309_v58  ;;  %6470 = vpow2.f32 %v2352_v9  ;;  %5982 = vmatprep.subr.bf16.mxu0 %v2439_v45 }
 0x5bc   : > { %2374 = vadd.xlane.f32.xlu0 %v7812_v21  ;;  %v2311_v30 = vpop.xlane.xlu0 %2310  ;;  %2372 = vadd.xlane.f32.xlu1 %v7810_v15 }
 0x5bd   : > { %6472 = vpow2.f32 %v2354_v29  ;;  %v2356_v61 = vmul.f32 1.442695, %v2327_v50  ;;  %v2328_v63 = vsub.f32 %v7746_v6, %v2311_v30  ;;  %v7818_v40 = vpop.eup %6462  ;;  %v2079_v6 = vadd.f32 %v5939_v47, %v7771_v44 }
 0x5be   : > { %v2313_v53 = vpop.xlane.xlu1 %2312  ;;  %5983 = vmatpush3.bf16.msra.mxu0 %v2439_v45 }
 0x5bf   : > { %v7821_v59 = vpop.eup %6464  ;;  %v2358_v17 = vmul.f32 1.442695, %v2328_v63  ;;  %v2329_v48 = vsub.f32 %v7749_v36, %v2313_v53  ;;  %6474 = vpow2.f32 %v2356_v61  ;;  %v2441_v31 = vpack.c.bf16 %v2079_v6, %v2076_v14  ;;  %5984 = vmatprep.subr.bf16.mxu0 %v2440_v5 }
 0x5c0   : > { %2378 = vadd.xlane.f32.xlu0 %v7821_v59  ;;  %2376 = vadd.xlane.f32.xlu1 %v7818_v40 }
 0x5c1   : > { %6476 = vpow2.f32 %v2358_v17  ;;  %v2360_v56 = vmul.f32 1.442695, %v2329_v48  ;;  %v7829_v52 = vpop.eup %6466 }
 0x5c2   : > { %5985 = vmatpush3.bf16.msra.mxu0 %v2440_v5 }
 0x5c3   : > { %v7831_v36 = vpop.eup %6468  ;;  %6478 = vpow2.f32 %v2360_v56  ;;  %5986 = vmatprep.subr.bf16.mxu0 %v2441_v31 }
 0x5c4   : > { %2382 = vadd.xlane.f32.xlu0 %v7831_v36  ;;  %2380 = vadd.xlane.f32.xlu1 %v7829_v52 }
 0x5c5   : > { %v7835_v22 = vpop.eup %6470 }
 0x5c6   : > { %5987 = vmatpush3.bf16.msra.mxu0 %v2441_v31 }
 0x5c7   : > { %v7837_v26 = vpop.eup %6472  ;;  %6004 = vmatprep.subr.bf16.mxu0 %v7851_v39 }
 0x5c8   : > { %2386 = vadd.xlane.f32.xlu0 %v7837_v26  ;;  %2384 = vadd.xlane.f32.xlu1 %v7835_v22 }
 0x5c9   : > { %v7841_v44 = vpop.eup %6474 }
 0x5cb   : > { %v7843_v1 = vpop.eup %6476 }
 0x5cc   : > { %2390 = vadd.xlane.f32.xlu0 %v7843_v1  ;;  %2388 = vadd.xlane.f32.xlu1 %v7841_v44 }
 0x5cd   : > { %v7847_v33 = vpop.eup %6478 }
 0x5d0   : > { %2392 = vadd.xlane.f32.xlu1 %v7847_v33 }
 0x5e6   : > { %v6054_v46 = vpop.f32.mrb[48].mxu1 }
 0x5e7   : > { %v2841_v23 = vadd.f32 %v6054_v46, %v7855_v24  ;;  %v2832_v4 = vpop.f32.mrb[49].mxu1 }
 0x5e8   : > { %v6055_v41 = vpop.f32.mrb[50].mxu1  ;;  %v2833_v43 = vadd.f32 %v7855_v24, %v2832_v4 }
 0x5e9   : > { %v2844_v62 = vadd.f32 %v6055_v41, %v7855_v24  ;;  %v2835_v9 = vpop.f32.mrb[51].mxu1 }
 0x5ea   : > { %v2836_v58 = vadd.f32 %v7855_v24, %v2835_v9  ;;  %v6386_v9 = vld [vmem:[%s6948_s3 + $0x50] sm:$0xff]  }
 0x5eb   : > { %v3074_v55 = vpack.c.bf16 %v2844_v62, %v2841_v23 }
 0x5ec   : > { %v3073_v8 = vpack.c.bf16 %v2836_v58, %v2833_v43 }
 0x5ed   : > { %v3109_v23 = vsel %vm2098_vm0, %v3074_v55, 0 }
 0x5ee   : > { %v6058_v63 = vpop.f32.mrb[52].mxu1  ;;  %6236 = vmatprep.subr.msk.bf16.mxu1 %vm2098_vm0, %v3073_v8  ;;  %v3106_v53 = vsel %vm2098_vm0, %v3073_v8, 0 }
 0x5ef   : > { %v2857_v14 = vadd.f32 %v6058_v63, %v7855_v24  ;;  %v2848_v16 = vpop.f32.mrb[53].mxu1  ;;  %6101 = vmatpush3.bf16.xpose.msra.mxu1 %v3106_v53 }
 0x5f0   : > { %v6059_v48 = vpop.f32.mrb[54].mxu1  ;;  %6237 = vmatprep.subr.msk.bf16.mxu1 %vm2098_vm0, %v3074_v55 }
 0x5f1   : > { %v2860_v6 = vadd.f32 %v6059_v48, %v7855_v24  ;;  %v2851_v32 = vpop.f32.mrb[55].mxu1 }
 0x5f3   : > { %v7871_v5 = vpack.c.bf16 %v2860_v6, %v2857_v14 }
 0x5f6   : > { %v6062_v41 = vpop.f32.mrb[56].mxu1 }
 0x5f7   : > { %v2864_v43 = vpop.f32.mrb[57].mxu1  ;;  %6103 = vmatpush3.bf16.xpose.msra.mxu1 %v3109_v23 }
 0x63d   : > { %v2363_v25 = vpop.xlane.xlu0 %2362 }
 0x63e   : > { %6480 = vrcp.f32 %v2363_v25  ;;  %v2852_v25 = vadd.f32 %v7855_v24, %v2851_v32  ;;  %v3115_v32 = vsel %vm2098_vm0, %v7871_v5, 0 }
 0x641   : > { %v2367_v35 = vpop.xlane.xlu0 %2366  ;;  %v2365_v49 = vpop.xlane.xlu1 %2364 }
 0x642   : > { %6482 = vrcp.f32 %v2365_v49  ;;  %v6385_v49 = vld [vmem:[%s6948_s3 + $0x48] sm:$0xff]  }
 0x643   : > { %6484 = vrcp.f32 %v2367_v35 }
 0x645   : > { %v2371_v0 = vpop.xlane.xlu0 %2370  ;;  %v2369_v37 = vpop.xlane.xlu1 %2368 }
 0x646   : > { %6486 = vrcp.f32 %v2369_v37 }
 0x647   : > { %6488 = vrcp.f32 %v2371_v0 }
 0x648   : > { %v6481_v34 = vpop.eup %6480 }
 0x649   : > { %v2375_v3 = vpop.xlane.xlu0 %2374  ;;  %v2373_v51 = vpop.xlane.xlu1 %2372  ;;  %v2410_v30 = vmul.f32 %v6481_v34, %v7782_v7 }
 0x64a   : > { %6490 = vrcp.f32 %v2373_v51  ;;  %v2873_v51 = vadd.f32 %v6062_v41, %v7855_v24  ;;  %v6063_v34 = vpop.f32.mrb[58].mxu1 }
 0x64b   : > { %6492 = vrcp.f32 %v2375_v3 }
 0x64c   : > { %v6483_v45 = vpop.eup %6482 }
 0x64d   : > { %v2379_v29 = vpop.xlane.xlu0 %2378  ;;  %v2377_v50 = vpop.xlane.xlu1 %2376  ;;  %v2411_v61 = vmul.f32 %v6483_v45, %v7792_v18  ;;  %v2849_v18 = vadd.f32 %v7855_v24, %v2848_v16 }
 0x64e   : > { %v6485_v20 = vpop.eup %6484  ;;  %6494 = vrcp.f32 %v2377_v50  ;;  %v2867_v50 = vpop.f32.mrb[59].mxu1 }
 0x64f   : > { %v2426_v17 = vpack.c.bf16 %v2411_v61, %v2410_v30  ;;  %6496 = vrcp.f32 %v2379_v29  ;;  %v2412_v19 = vmul.f32 %v6485_v20, %v7790_v60  ;;  %v3075_v60 = vpack.c.bf16 %v2852_v25, %v2849_v18  ;;  %v6387_v20 = vld [vmem:[%s6948_s3 + $0x58] sm:$0xff]  }
 0x650   : > { %v6487_v42 = vpop.eup %6486  ;;  %v2868_v61 = vadd.f32 %v7855_v24, %v2867_v50 }
 0x651   : > { %v2383_v47 = vpop.xlane.xlu0 %2382  ;;  %v2381_v7 = vpop.xlane.xlu1 %2380  ;;  %v2413_v56 = vmul.f32 %v6487_v42, %v7798_v10  ;;  %5988 = vmatprep.mubr.bf16.mxu0 %v2426_v17  ;;  %6238 = vmatprep.subr.msk.bf16.mxu1 %vm2098_vm0, %v3075_v60  ;;  %v3112_v16 = vsel %vm2098_vm0, %v3075_v60, 0 }
 0x652   : > { %v6489_v31 = vpop.eup %6488  ;;  %6498 = vrcp.f32 %v2381_v7  ;;  %6105 = vmatpush3.bf16.xpose.msra.mxu1 %v3112_v16 }
 0x653   : > { %v2427_v35 = vpack.c.bf16 %v2413_v56, %v2412_v19  ;;  %6500 = vrcp.f32 %v2383_v47  ;;  %v2414_v10 = vmul.f32 %v6489_v31, %v7801_v28  ;;  %v2865_v28 = vadd.f32 %v7855_v24, %v2864_v43  ;;  %v6388_v47 = vld [vmem:[%s6948_s3 + $0x60] sm:$0xff]   ;;  %6239 = vmatprep.subr.msk.bf16.mxu1 %vm2098_vm0, %v7871_v5  ;;  %v6389_v19 = vld [vmem:[%s6948_s3 + $0x68] sm:$0xff]  }
 0x654   : > { %v6491_v0 = vpop.eup %6490 }
 0x655   : > { %v2387_v37 = vpop.xlane.xlu0 %2386  ;;  %v2385_v46 = vpop.xlane.xlu1 %2384  ;;  %5989 = vmatmul.mubr.bf16.vlgmr.msra.gmra.mrb[16].mxu0 %v2427_v35  ;;  %v2415_v4 = vmul.f32 %v6491_v0, %v7810_v15  ;;  %v2876_v15 = vadd.f32 %v6063_v34, %v7855_v24 }
 0x656   : > { %v6493_v3 = vpop.eup %6492  ;;  %6502 = vrcp.f32 %v2385_v46  ;;  %6005 = vmatpush3.bf16.msra.mxu0 %v7851_v39  ;;  %v6391_v46 = vld [vmem:[%s6948_s3 + $0x78] sm:$0xff]  }
 0x657   : > { %v2428_v62 = vpack.c.bf16 %v2415_v4, %v2414_v10  ;;  %6006 = vmatprep.subr.bf16.mxu0 %v6385_v49  ;;  %6504 = vrcp.f32 %v2387_v37  ;;  %v2416_v39 = vmul.f32 %v6493_v3, %v7812_v21  ;;  %v7886_v30 = vpack.c.bf16 %v2876_v15, %v2873_v51 }
 0x658   : > { %v6495_v55 = vpop.eup %6494  ;;  %v3077_v21 = vpack.c.bf16 %v2868_v61, %v2865_v28 }
 0x659   : > { %v2391_v58 = vpop.xlane.xlu0 %2390  ;;  %v2389_v45 = vpop.xlane.xlu1 %2388  ;;  %5992 = vmatprep.mubr.bf16.mxu0 %v2428_v62  ;;  %v2417_v29 = vmul.f32 %v6495_v55, %v7818_v40 }
 0x65a   : > { %v6497_v8 = vpop.eup %6496  ;;  %6506 = vrcp.f32 %v2389_v45  ;;  %6007 = vmatpush3.bf16.msra.mxu0 %v6385_v49  ;;  %v6390_v49 = vld [vmem:[%s6948_s3 + $0x70] sm:$0xff]   ;;  %6107 = vmatpush3.bf16.xpose.msra.mxu1 %v3115_v32 }
 0x65b   : > { %6508 = vrcp.f32 %v2391_v58  ;;  %v2429_v63 = vpack.c.bf16 %v2417_v29, %v2416_v39  ;;  %6008 = vmatprep.subr.bf16.mxu0 %v6386_v9  ;;  %v2418_v40 = vmul.f32 %v6497_v8, %v7821_v59  ;;  %6240 = vmatprep.subr.msk.bf16.mxu1 %vm2098_vm0, %v3077_v21 }
 0x65c   : > { %v6499_v53 = vpop.eup %6498 }
 0x65d   : > { %v2393_v14 = vpop.xlane.xlu1 %2392  ;;  %5993 = vmatmul.mubr.bf16.gmra.mrb[20].mxu0 %v2429_v63  ;;  %v2419_v17 = vmul.f32 %v6499_v53, %v7829_v52  ;;  %v6501_v48 = vpop.eup %6500 }
 0x65e   : > { %6510 = vrcp.f32 %v2393_v14  ;;  %6009 = vmatpush3.bf16.msra.mxu0 %v6386_v9  ;;  %v2420_v18 = vmul.f32 %v6501_v48, %v7831_v36 }
 0x65f   : > { %v2430_v42 = vpack.c.bf16 %v2419_v17, %v2418_v40  ;;  %6010 = vmatprep.subr.bf16.mxu0 %v6387_v20 }
 0x660   : > { %v6503_v7 = vpop.eup %6502 }
 0x661   : > { %5996 = vmatprep.mubr.bf16.mxu0 %v2430_v42  ;;  %v2421_v6 = vmul.f32 %v6503_v7, %v7835_v22  ;;  %v6505_v59 = vpop.eup %6504  ;;  %v5448_v7 = vld [vmem:[%s6958_s29 + $0x1] ss:$0 sm:$0xff] }
 0x662   : > { %6011 = vmatpush3.bf16.msra.mxu0 %v6387_v20  ;;  %v2422_v25 = vmul.f32 %v6505_v59, %v7837_v26  ;;  %v3118_v26 = vsel %vm2098_vm0, %v3077_v21, 0 }
 0x663   : > { %v2431_v52 = vpack.c.bf16 %v2421_v6, %v2420_v18  ;;  %6012 = vmatprep.subr.bf16.mxu0 %v6388_v47  ;;  %6109 = vmatpush3.bf16.xpose.msra.mxu1 %v3118_v26 }
 0x664   : > { %v6507_v56 = vpop.eup %6506  ;;  %6241 = vmatprep.subr.msk.bf16.mxu1 %vm2098_vm0, %v7886_v30 }
 0x665   : > { %v6509_v31 = vpop.eup %6508  ;;  %5997 = vmatmul.mubr.bf16.gmra.mrb[24].mxu0 %v2431_v52  ;;  %v2423_v35 = vmul.f32 %v6507_v56, %v7841_v44  ;;  %v6066_v44 = vpop.f32.mrb[60].mxu1 }
 0x666   : > { %6013 = vmatpush3.bf16.msra.mxu0 %v6388_v47  ;;  %v2424_v0 = vmul.f32 %v6509_v31, %v7843_v1  ;;  %v3121_v1 = vsel %vm2098_vm0, %v7886_v30, 0  ;;  %v2880_v23 = vpop.f32.mrb[61].mxu1 }
 0x667   : > { %v2432_v22 = vpack.c.bf16 %v2423_v35, %v2422_v25  ;;  %6014 = vmatprep.subr.bf16.mxu0 %v6389_v19  ;;  %v2881_v60 = vadd.f32 %v7855_v24, %v2880_v23  ;;  %v6067_v10 = vpop.f32.mrb[62].mxu1 }
 0x668   : > { %v6511_v36 = vpop.eup %6510  ;;  %v2892_v4 = vadd.f32 %v6067_v10, %v7855_v24 }
 0x669   : > { %v2425_v37 = vmul.f32 %v6511_v36, %v7847_v33  ;;  %6000 = vmatprep.mubr.bf16.mxu0 %v2432_v22  ;;  %v2889_v33 = vadd.f32 %v6066_v44, %v7855_v24 }
 0x66a   : > { %6015 = vmatpush3.bf16.msra.mxu0 %v6389_v19 }
 0x66b   : > { %v2433_v5 = vpack.c.bf16 %v2425_v37, %v2424_v0  ;;  %6016 = vmatprep.subr.bf16.mxu0 %v6390_v49  ;;  %6111 = vmatpush3.bf16.xpose.msra.mxu1 %v3121_v1  ;;  %v3080_v3 = vpack.c.bf16 %v2892_v4, %v2889_v33 }
 0x66d   : > { %6001 = vmatmul.mubr.bf16.gmra.mrb[28].mxu0 %v2433_v5  ;;  %v3127_v62 = vsel %vm2098_vm0, %v3080_v3, 0 }
 0x66e   : > { %6017 = vmatpush3.bf16.msra.mxu0 %v6390_v49  ;;  %6020 = vmatprep.mubr.bf16.mxu0 %v7553_v13 }
 0x66f   : > { %6018 = vmatprep.subr.bf16.mxu0 %v6391_v46 }
 0x672   : > { %6019 = vmatpush3.bf16.msra.mxu0 %v6391_v46 }
 0x675   : > { %6021 = vmatmul.mubr.bf16.vlgmr.msra.gmra.mrb[32].mxu0 %v7562_v11 }
 0x676   : > { %6024 = vmatprep.mubr.bf16.mxu0 %v7565_v12 }
 0x67d   : > { %6025 = vmatmul.mubr.bf16.gmra.mrb[36].mxu0 %v7570_v27 }
 0x67e   : > { %6028 = vmatprep.mubr.bf16.mxu0 %v7573_v2 }
 0x685   : > { %6029 = vmatmul.mubr.bf16.gmra.mrb[40].mxu0 %v7578_v38 }
 0x686   : > { %6032 = vmatprep.mubr.bf16.mxu0 %v7581_v57 }
 0x68d   : > { %6033 = vmatmul.mubr.bf16.gmra.mrb[44].mxu0 %v7586_v54 }
 0x68e   : > { %6084 = vmatprep.mubr.bf16.mxu0 %v7553_v13  ;;  %v2883_v13 = vpop.f32.mrb[63].mxu1 }
 0x68f   : > { %v2884_v41 = vadd.f32 %v7855_v24, %v2883_v13 }
 0x691   : > { %v3079_v51 = vpack.c.bf16 %v2884_v41, %v2881_v60 }
 0x693   : > { %6242 = vmatprep.subr.msk.bf16.mxu1 %vm2098_vm0, %v3079_v51  ;;  %v3124_v43 = vsel %vm2098_vm0, %v3079_v51, 0 }
 0x694   : > { %6113 = vmatpush3.bf16.xpose.msra.mxu1 %v3124_v43 }
 0x695   : > { %6243 = vmatprep.subr.msk.bf16.mxu1 %vm2098_vm0, %v3080_v3 }
 0x69c   : > { %6115 = vmatpush3.bf16.xpose.msra.mxu1 %v3127_v62 }
 0x728   : > { %v7930_v9 = vpop.f32.mrb[16].mxu0 }
 0x729   : > { %v7932_v34 = vpop.f32.mrb[17].mxu0 }
 0x72a   : > { %v7934_v55 = vpop.f32.mrb[18].mxu0 }
 0x72b   : > { %v2540_v24 = vpack.c.bf16 %v7934_v55, %v7930_v9  ;;  %v7938_v58 = vpop.f32.mrb[19].mxu0 }
 0x72c   : > { %v2539_v45 = vpack.c.bf16 %v7938_v58, %v7932_v34 }
 0x730   : > { %v7942_v28 = vpop.f32.mrb[20].mxu0 }
 0x731   : > { %v7944_v15 = vpop.f32.mrb[21].mxu0 }
 0x732   : > { %v7946_v39 = vpop.f32.mrb[22].mxu0 }
 0x733   : > { %v2542_v29 = vpack.c.bf16 %v7946_v39, %v7942_v28  ;;  %v7950_v50 = vpop.f32.mrb[23].mxu0  ;;  %v6705_v39 = vld [vmem:[#allocation2] sm:$0xff] }
 0x734   : > { %v2541_v8 = vpack.c.bf16 %v7950_v50, %v7944_v15 }
 0x738   : > { %v7954_v30 = vpop.f32.mrb[24].mxu0 }
 0x739   : > { %v7956_v61 = vpop.f32.mrb[25].mxu0 }
 0x73a   : > { %v7958_v63 = vpop.f32.mrb[26].mxu0 }
 0x73b   : > { %v2544_v20 = vpack.c.bf16 %v7958_v63, %v7954_v30  ;;  %v7962_v53 = vpop.f32.mrb[27].mxu0  ;;  %v6707_v63 = vld [vmem:[#allocation2 + $0x10] sm:$0xff] }
 0x73c   : > { %v2543_v14 = vpack.c.bf16 %v7962_v53, %v7956_v61 }
 0x740   : > { %v7966_v16 = vpop.f32.mrb[28].mxu0 }
 0x741   : > { %v7968_v21 = vpop.f32.mrb[29].mxu0 }
 0x742   : > { %v7970_v40 = vpop.f32.mrb[30].mxu0 }
 0x743   : > { %v2546_v17 = vpack.c.bf16 %v7970_v40, %v7966_v16  ;;  %v7974_v48 = vpop.f32.mrb[31].mxu0 }
 0x744   : > { %v2545_v42 = vpack.c.bf16 %v7974_v48, %v7968_v21  ;;  %v6708_v21 = vld [vmem:[#allocation2 + $0x18] sm:$0xff] }
 0x748   : > { %v6022_v47 = vpop.f32.mrb[32].mxu0 }
 0x749   : > { %v2662_v18 = vpop.f32.mrb[33].mxu0  ;;  %v2671_v59 = vadd.f32 %v6022_v47, %v5448_v7 }
 0x74a   : > { %v6023_v6 = vpop.f32.mrb[34].mxu0  ;;  %v2663_v56 = vadd.f32 %v5448_v7, %v2662_v18 }
 0x74b   : > { %v2674_v52 = vadd.f32 %v6023_v6, %v5448_v7  ;;  %v2665_v19 = vpop.f32.mrb[35].mxu0 }
 0x74c   : > { %v2666_v32 = vadd.f32 %v5448_v7, %v2665_v19 }
 0x74d   : > { %v3066_v31 = vpack.c.bf16 %v2674_v52, %v2671_v59 }
 0x74e   : > { %v3065_v25 = vpack.c.bf16 %v2666_v32, %v2663_v56 }
 0x750   : > { %v6026_v35 = vpop.f32.mrb[36].mxu0  ;;  %6116 = vmatprep.mubr.msk.bf16.mxu1 %vm2098_vm0, %v3065_v25  ;;  %v6393_v25 = vld [vmem:[%s6948_s3 + $0x148] sm:$0xff]  }
 0x751   : > { %v2678_v36 = vpop.f32.mrb[37].mxu0  ;;  %6117 = vmatmul.mubr.msk.bf16.vlgmr.msra.gmra.mrb[64].mxu1 %vm2098_vm0, %v3066_v31  ;;  %v2687_v49 = vadd.f32 %v6026_v35, %v5448_v7  ;;  %v6392_v31 = vld [vmem:[%s6948_s3 + $0x140] sm:$0xff]   ;;  %v6394_v35 = vld [vmem:[%s6948_s3 + $0x150] sm:$0xff]  }
 0x752   : > { %v6027_v22 = vpop.f32.mrb[38].mxu0  ;;  %v2679_v5 = vadd.f32 %v5448_v7, %v2678_v36  ;;  %6068 = vmatprep.subr.bf16.mxu0 %v6392_v31  ;;  %v6395_v36 = vld [vmem:[%s6948_s3 + $0x158] sm:$0xff]  }
 0x753   : > { %v2690_v0 = vadd.f32 %v6027_v22, %v5448_v7  ;;  %v2681_v37 = vpop.f32.mrb[39].mxu0  ;;  %6069 = vmatpush3.bf16.msra.mxu0 %v6392_v31  ;;  %v6397_v22 = vld [vmem:[%s6948_s3 + $0x168] sm:$0xff]  }
 0x754   : > { %v2682_v46 = vadd.f32 %v5448_v7, %v2681_v37  ;;  %6070 = vmatprep.subr.bf16.mxu0 %v6393_v25 }
 0x755   : > { %v3068_v26 = vpack.c.bf16 %v2690_v0, %v2687_v49  ;;  %v6398_v49 = vld [vmem:[%s6948_s3 + $0x170] sm:$0xff]   ;;  %v6399_v0 = vld [vmem:[%s6948_s3 + $0x178] sm:$0xff]  }
 0x756   : > { %v3067_v44 = vpack.c.bf16 %v2682_v46, %v2679_v5 }
 0x757   : > { %6071 = vmatpush3.bf16.msra.mxu0 %v6393_v25 }
 0x758   : > { %v6030_v1 = vpop.f32.mrb[40].mxu0  ;;  %6120 = vmatprep.mubr.msk.bf16.mxu1 %vm2098_vm0, %v3067_v44  ;;  %6072 = vmatprep.subr.bf16.mxu0 %v6394_v35 }
 0x759   : > { %v2694_v33 = vpop.f32.mrb[41].mxu0  ;;  %6121 = vmatmul.mubr.msk.bf16.gmra.mrb[68].mxu1 %vm2098_vm0, %v3068_v26  ;;  %v2703_v60 = vadd.f32 %v6030_v1, %v5448_v7 }
 0x75a   : > { %v6031_v23 = vpop.f32.mrb[42].mxu0  ;;  %v2695_v13 = vadd.f32 %v5448_v7, %v2694_v33 }
 0x75b   : > { %v2706_v10 = vadd.f32 %v6031_v23, %v5448_v7  ;;  %v2697_v4 = vpop.f32.mrb[43].mxu0  ;;  %6073 = vmatpush3.bf16.msra.mxu0 %v6394_v35 }
 0x75c   : > { %v2698_v41 = vadd.f32 %v5448_v7, %v2697_v4  ;;  %6074 = vmatprep.subr.bf16.mxu0 %v6395_v36 }
 0x75d   : > { %v3070_v3 = vpack.c.bf16 %v2706_v10, %v2703_v60 }
 0x75e   : > { %v3069_v51 = vpack.c.bf16 %v2698_v41, %v2695_v13 }
 0x75f   : > { %6075 = vmatpush3.bf16.msra.mxu0 %v6395_v36 }
 0x760   : > { %v6034_v43 = vpop.f32.mrb[44].mxu0  ;;  %6124 = vmatprep.mubr.msk.bf16.mxu1 %vm2098_vm0, %v3069_v51 }
 0x761   : > { %v2710_v62 = vpop.f32.mrb[45].mxu0  ;;  %6125 = vmatmul.mubr.msk.bf16.gmra.mrb[72].mxu1 %vm2098_vm0, %v3070_v3  ;;  %v2719_v18 = vadd.f32 %v6034_v43, %v5448_v7 }
 0x762   : > { %v6035_v47 = vpop.f32.mrb[46].mxu0  ;;  %v2711_v52 = vadd.f32 %v5448_v7, %v2710_v62 }
 0x763   : > { %v2722_v6 = vadd.f32 %v6035_v47, %v5448_v7  ;;  %v2713_v59 = vpop.f32.mrb[47].mxu0 }
 0x764   : > { %v2714_v19 = vadd.f32 %v5448_v7, %v2713_v59  ;;  %v6396_v7 = vld [vmem:[%s6948_s3 + $0x160] sm:$0xff]  }
 0x765   : > { %v3072_v56 = vpack.c.bf16 %v2722_v6, %v2719_v18  ;;  %6076 = vmatprep.subr.bf16.mxu0 %v6396_v7 }
 0x766   : > { %v3071_v32 = vpack.c.bf16 %v2714_v19, %v2711_v52  ;;  %6077 = vmatpush3.bf16.msra.mxu0 %v6396_v7 }
 0x767   : > { %6078 = vmatprep.subr.bf16.mxu0 %v6397_v22 }
 0x768   : > { %6128 = vmatprep.mubr.msk.bf16.mxu1 %vm2098_vm0, %v3071_v32 }
 0x769   : > { %6129 = vmatmul.mubr.msk.bf16.gmra.mrb[76].mxu1 %vm2098_vm0, %v3072_v56 }
 0x76a   : > { %6079 = vmatpush3.bf16.msra.mxu0 %v6397_v22 }
 0x76b   : > { %6080 = vmatprep.subr.bf16.mxu0 %v6398_v49 }
 0x76e   : > { %6081 = vmatpush3.bf16.msra.mxu0 %v6398_v49 }
 0x76f   : > { %6082 = vmatprep.subr.bf16.mxu0 %v6399_v0 }
 0x772   : > { %6083 = vmatpush3.bf16.msra.mxu0 %v6399_v0 }
 0x775   : > { %6085 = vmatmul.mubr.bf16.vlgmr.msra.gmra.mrb[48].mxu0 %v7562_v11  ;;  %v6704_v11 = vld [vmem:[%s9162_s7] ss:$0 sm:$0xff] }
 0x776   : > { %6088 = vmatprep.mubr.bf16.mxu0 %v7565_v12 }
 0x77d   : > { %6089 = vmatmul.mubr.bf16.gmra.mrb[52].mxu0 %v7570_v27 }
 0x77e   : > { %6092 = vmatprep.mubr.bf16.mxu0 %v7573_v2 }
 0x785   : > { %6093 = vmatmul.mubr.bf16.gmra.mrb[56].mxu0 %v7578_v38 }
 0x786   : > { %6096 = vmatprep.mubr.bf16.mxu0 %v7581_v57 }
 0x78d   : > { %6097 = vmatmul.mubr.bf16.gmra.mrb[60].mxu0 %v7586_v54 }
 0x824   : > { %v6118_v37 = vpop.f32.mrb[64].mxu1 }
 0x825   : > { %v3163_v5 = vpop.f32.mrb[65].mxu1  ;;  %v3228_v1 = vmul.f32 0.125, %v6118_v37 }
 0x826   : > { %v3226_v46 = vmul.f32 0.125, %v3163_v5  ;;  %v6119_v26 = vpop.f32.mrb[66].mxu1 }
 0x827   : > { %v3166_v44 = vpop.f32.mrb[67].mxu1  ;;  %v3229_v12 = vmul.f32 0.125, %v6119_v26  ;;  %v8006_v38 = vadd.f32 %v6704_v11, %v3228_v1 }
 0x828   : > { %v3227_v33 = vmul.f32 0.125, %v3166_v44  ;;  %v3242_v23 = vadd.f32 %v6704_v11, %v3226_v46 }
 0x829   : > { %v8009_v10 = vadd.f32 %v6704_v11, %v3229_v12 }
 0x82a   : > { %3258 = vmax.xlane.f32.xlu0 %v3242_v23  ;;  %v8003_v27 = vadd.f32 %v6704_v11, %v3227_v33 }
 0x82c   : > { %3260 = vmax.xlane.f32.xlu1 %v8003_v27  ;;  %v6122_v2 = vpop.f32.mrb[68].mxu1 }
 0x82d   : > { %v3179_v57 = vpop.f32.mrb[69].mxu1  ;;  %v3232_v13 = vmul.f32 0.125, %v6122_v2 }
 0x82e   : > { %v3230_v54 = vmul.f32 0.125, %v3179_v57  ;;  %3262 = vmax.xlane.f32.xlu0 %v8006_v38  ;;  %v6123_v60 = vpop.f32.mrb[70].mxu1 }
 0x82f   : > { %v3182_v4 = vpop.f32.mrb[71].mxu1  ;;  %v3233_v51 = vmul.f32 0.125, %v6123_v60  ;;  %v8018_v47 = vadd.f32 %v6704_v11, %v3232_v13 }
 0x830   : > { %v3231_v41 = vmul.f32 0.125, %v3182_v4  ;;  %3264 = vmax.xlane.f32.xlu1 %v8009_v10  ;;  %v8012_v3 = vadd.f32 %v6704_v11, %v3230_v54  ;;  %v8049_v4 = vld [vmem:[%s6958_s29 + $0x5] ss:$0 sm:$0xff]  ;;  %s9163_s29 = scalar_lea.vmem %s9090_s11, %s6918_s5 }
 0x831   : > { %v8021_v52 = vadd.f32 %v6704_v11, %v3233_v51  ;;  %v8199_v9 = vld [vmem:[%s9163_s29] ss:$0 sm:$0xff] }
 0x832   : > { %3266 = vmax.xlane.f32.xlu0 %v8012_v3  ;;  %v8015_v43 = vadd.f32 %v6704_v11, %v3231_v41 }
 0x834   : > { %3268 = vmax.xlane.f32.xlu1 %v8015_v43  ;;  %v6126_v62 = vpop.f32.mrb[72].mxu1 }
 0x835   : > { %v3195_v18 = vpop.f32.mrb[73].mxu1  ;;  %v3236_v56 = vmul.f32 0.125, %v6126_v62 }
 0x836   : > { %v3234_v6 = vmul.f32 0.125, %v3195_v18  ;;  %3270 = vmax.xlane.f32.xlu0 %v8018_v47  ;;  %v6127_v59 = vpop.f32.mrb[74].mxu1 }
 0x837   : > { %v3198_v19 = vpop.f32.mrb[75].mxu1  ;;  %v3237_v25 = vmul.f32 0.125, %v6127_v59  ;;  %v8030_v7 = vadd.f32 %v6704_v11, %v3236_v56 }
 0x838   : > { %v3235_v32 = vmul.f32 0.125, %v3198_v19  ;;  %3272 = vmax.xlane.f32.xlu1 %v8021_v52  ;;  %v8024_v31 = vadd.f32 %v6704_v11, %v3234_v6 }
 0x839   : > { %v8033_v37 = vadd.f32 %v6704_v11, %v3237_v25 }
 0x83a   : > { %3274 = vmax.xlane.f32.xlu0 %v8024_v31  ;;  %v8027_v35 = vadd.f32 %v6704_v11, %v3235_v32 }
 0x83c   : > { %3276 = vmax.xlane.f32.xlu1 %v8027_v35  ;;  %v6130_v36 = vpop.f32.mrb[76].mxu1 }
 0x83d   : > { %v3211_v22 = vpop.f32.mrb[77].mxu1  ;;  %v3240_v46 = vmul.f32 0.125, %v6130_v36 }
 0x83e   : > { %v3238_v49 = vmul.f32 0.125, %v3211_v22  ;;  %3278 = vmax.xlane.f32.xlu0 %v8030_v7  ;;  %v6131_v0 = vpop.f32.mrb[78].mxu1 }
 0x83f   : > { %v3214_v5 = vpop.f32.mrb[79].mxu1  ;;  %v3241_v1 = vmul.f32 0.125, %v6131_v0  ;;  %v8042_v12 = vadd.f32 %v6704_v11, %v3240_v46 }
 0x840   : > { %v3239_v26 = vmul.f32 0.125, %v3214_v5  ;;  %3280 = vmax.xlane.f32.xlu1 %v8033_v37  ;;  %v8036_v44 = vadd.f32 %v6704_v11, %v3238_v49 }
 0x841   : > { %v8045_v2 = vadd.f32 %v6704_v11, %v3241_v1 }
 0x842   : > { %3282 = vmax.xlane.f32.xlu0 %v8036_v44  ;;  %v8039_v33 = vadd.f32 %v6704_v11, %v3239_v26 }
 0x844   : > { %3284 = vmax.xlane.f32.xlu1 %v8039_v33 }
 0x846   : > { %3286 = vmax.xlane.f32.xlu0 %v8042_v12 }
 0x848   : > { %3288 = vmax.xlane.f32.xlu1 %v8045_v2  ;;  %v6086_v51 = vpop.f32.mrb[48].mxu0 }
 0x849   : > { %v3011_v18 = vadd.f32 %v6086_v51, %v8049_v4  ;;  %v3002_v6 = vpop.f32.mrb[49].mxu0 }
 0x84a   : > { %v3003_v19 = vadd.f32 %v8049_v4, %v3002_v6  ;;  %v6087_v56 = vpop.f32.mrb[50].mxu0 }
 0x84b   : > { %v3005_v25 = vpop.f32.mrb[51].mxu0 }
 0x84c   : > { %v3006_v22 = vadd.f32 %v8049_v4, %v3005_v25 }
 0x8b7   : > { %v3259_v57 = vpop.xlane.xlu0 %3258 }
 0x8b8   : > { %v3290_v54 = vsub.f32 %v3242_v23, %v3259_v57  ;;  %v3014_v23 = vadd.f32 %v6087_v56, %v8049_v4 }
 0x8b9   : > { %v3261_v60 = vpop.xlane.xlu1 %3260 }
 0x8ba   : > { %v3306_v13 = vmul.f32 1.442695, %v3290_v54  ;;  %v3291_v41 = vsub.f32 %v8003_v27, %v3261_v60  ;;  %v3411_v0 = vpack.c.bf16 %v3014_v23, %v3011_v18  ;;  %v6090_v54 = vpop.f32.mrb[52].mxu0 }
 0x8bb   : > { %v3263_v62 = vpop.xlane.xlu0 %3262 }
 0x8bc   : > { %6512 = vpow2.f32 %v3306_v13  ;;  %v3308_v59 = vmul.f32 1.442695, %v3291_v41  ;;  %v3292_v11 = vsub.f32 %v8006_v38, %v3263_v62  ;;  %v3410_v38 = vpack.c.bf16 %v3006_v22, %v3003_v19 }
 0x8bd   : > { %v3265_v32 = vpop.xlane.xlu1 %3264  ;;  %v3027_v13 = vadd.f32 %v6090_v54, %v8049_v4 }
 0x8be   : > { %6514 = vpow2.f32 %v3308_v59  ;;  %v3310_v36 = vmul.f32 1.442695, %v3292_v11  ;;  %v3293_v27 = vsub.f32 %v8009_v10, %v3265_v32  ;;  %6132 = vmatprep.subr.bf16.mxu0 %v3410_v38  ;;  %v3018_v10 = vpop.f32.mrb[53].mxu0 }
 0x8bf   : > { %v3267_v49 = vpop.xlane.xlu0 %3266  ;;  %6133 = vmatpush3.bf16.msra.mxu0 %v3410_v38  ;;  %v3019_v62 = vadd.f32 %v8049_v4, %v3018_v10 }
 0x8c0   : > { %6516 = vpow2.f32 %v3310_v36  ;;  %v3312_v5 = vmul.f32 1.442695, %v3293_v27  ;;  %v3294_v46 = vsub.f32 %v8012_v3, %v3267_v49  ;;  %v6091_v3 = vpop.f32.mrb[54].mxu0  ;;  %6134 = vmatprep.subr.bf16.mxu0 %v3411_v0 }
 0x8c1   : > { %v3269_v26 = vpop.xlane.xlu1 %3268  ;;  %v3030_v6 = vadd.f32 %v6091_v3, %v8049_v4  ;;  %v3021_v59 = vpop.f32.mrb[55].mxu0 }
 0x8c2   : > { %6518 = vpow2.f32 %v3312_v5  ;;  %v3314_v1 = vmul.f32 1.442695, %v3294_v46  ;;  %v3295_v57 = vsub.f32 %v8015_v43, %v3269_v26  ;;  %v3022_v56 = vadd.f32 %v8049_v4, %v3021_v59  ;;  %v6094_v46 = vpop.f32.mrb[56].mxu0 }
 0x8c3   : > { %v3271_v60 = vpop.xlane.xlu0 %3270  ;;  %6135 = vmatpush3.bf16.msra.mxu0 %v3411_v0  ;;  %v3043_v0 = vadd.f32 %v6094_v46, %v8049_v4  ;;  %v3034_v26 = vpop.f32.mrb[57].mxu0 }
 0x8c4   : > { %6520 = vpow2.f32 %v3314_v1  ;;  %v3316_v41 = vmul.f32 1.442695, %v3295_v57  ;;  %v3296_v51 = vsub.f32 %v8018_v47, %v3271_v60  ;;  %v3413_v47 = vpack.c.bf16 %v3030_v6, %v3027_v13  ;;  %v6095_v60 = vpop.f32.mrb[58].mxu0 }
 0x8c5   : > { %v3273_v18 = vpop.xlane.xlu1 %3272  ;;  %v3412_v27 = vpack.c.bf16 %v3022_v56, %v3019_v62  ;;  %v3035_v54 = vadd.f32 %v8049_v4, %v3034_v26  ;;  %v3046_v13 = vadd.f32 %v6095_v60, %v8049_v4  ;;  %v3037_v10 = vpop.f32.mrb[59].mxu0 }
 0x8c6   : > { %v8064_v43 = vpop.eup %6512  ;;  %6522 = vpow2.f32 %v3316_v41  ;;  %v3318_v11 = vmul.f32 1.442695, %v3296_v51  ;;  %v3297_v19 = vsub.f32 %v8021_v52, %v3273_v18  ;;  %v3038_v3 = vadd.f32 %v8049_v4, %v3037_v10 }
 0x8c7   : > { %v3275_v32 = vpop.xlane.xlu0 %3274  ;;  %3338 = vadd.xlane.f32.xlu0 %v8064_v43  ;;  %6136 = vmatprep.subr.bf16.mxu0 %v3412_v27  ;;  %v3415_v18 = vpack.c.bf16 %v3046_v13, %v3043_v0 }
 0x8c8   : > { %v8069_v23 = vpop.eup %6514  ;;  %6524 = vpow2.f32 %v3318_v11  ;;  %v3320_v25 = vmul.f32 1.442695, %v3297_v19  ;;  %v3298_v36 = vsub.f32 %v8024_v31, %v3275_v32  ;;  %6137 = vmatpush3.bf16.msra.mxu0 %v3412_v27  ;;  %v3414_v19 = vpack.c.bf16 %v3038_v3, %v3035_v54 }
 0x8c9   : > { %v3277_v22 = vpop.xlane.xlu1 %3276  ;;  %3340 = vadd.xlane.f32.xlu1 %v8069_v23  ;;  %6138 = vmatprep.subr.bf16.mxu0 %v3413_v47 }
 0x8ca   : > { %v8073_v49 = vpop.eup %6516  ;;  %6526 = vpow2.f32 %v3320_v25  ;;  %v3322_v52 = vmul.f32 1.442695, %v3298_v36  ;;  %v3299_v5 = vsub.f32 %v8027_v35, %v3277_v22  ;;  %v6098_v36 = vpop.f32.mrb[60].mxu0 }
 0x8cb   : > { %v3279_v38 = vpop.xlane.xlu0 %3278  ;;  %3342 = vadd.xlane.f32.xlu0 %v8073_v49  ;;  %v3059_v27 = vadd.f32 %v6098_v36, %v8049_v4  ;;  %v3050_v22 = vpop.f32.mrb[61].mxu0 }
 0x8cc   : > { %v8078_v31 = vpop.eup %6518  ;;  %6528 = vpow2.f32 %v3322_v52  ;;  %v3324_v1 = vmul.f32 1.442695, %v3299_v5  ;;  %v3300_v57 = vsub.f32 %v8030_v7, %v3279_v38  ;;  %6139 = vmatpush3.bf16.msra.mxu0 %v3413_v47  ;;  %v3051_v46 = vadd.f32 %v8049_v4, %v3050_v22  ;;  %v6099_v38 = vpop.f32.mrb[62].mxu0 }
 0x8cd   : > { %v3281_v35 = vpop.xlane.xlu1 %3280  ;;  %3344 = vadd.xlane.f32.xlu1 %v8078_v31  ;;  %6140 = vmatprep.subr.bf16.mxu0 %v3414_v19  ;;  %v3062_v0 = vadd.f32 %v6099_v38, %v8049_v4  ;;  %v3053_v26 = vpop.f32.mrb[63].mxu0 }
 0x8ce   : > { %v8084_v41 = vpop.eup %6520  ;;  %6530 = vpow2.f32 %v3324_v1  ;;  %v3326_v51 = vmul.f32 1.442695, %v3300_v57  ;;  %v3301_v62 = vsub.f32 %v8033_v37, %v3281_v35  ;;  %v3054_v60 = vadd.f32 %v8049_v4, %v3053_v26 }
 0x8cf   : > { %3346 = vadd.xlane.f32.xlu0 %v8084_v41  ;;  %v3283_v7 = vpop.xlane.xlu0 %3282 }
 0x8d0   : > { %v8089_v6 = vpop.eup %6522  ;;  %6532 = vpow2.f32 %v3326_v51  ;;  %v3328_v59 = vmul.f32 1.442695, %v3301_v62  ;;  %v3302_v11 = vsub.f32 %v8036_v44, %v3283_v7  ;;  %6141 = vmatpush3.bf16.msra.mxu0 %v3414_v19  ;;  %v3416_v10 = vpack.c.bf16 %v3054_v60, %v3051_v46 }
 0x8d1   : > { %3348 = vadd.xlane.f32.xlu1 %v8089_v6  ;;  %v3285_v56 = vpop.xlane.xlu1 %3284  ;;  %6142 = vmatprep.subr.bf16.mxu0 %v3415_v18 }
 0x8d2   : > { %v8093_v32 = vpop.eup %6524  ;;  %6534 = vpow2.f32 %v3328_v59  ;;  %v3330_v37 = vmul.f32 1.442695, %v3302_v11  ;;  %v3303_v25 = vsub.f32 %v8039_v33, %v3285_v56 }
 0x8d3   : > { %3350 = vadd.xlane.f32.xlu0 %v8093_v32  ;;  %v3287_v47 = vpop.xlane.xlu0 %3286 }
 0x8d4   : > { %v8098_v44 = vpop.eup %6526  ;;  %6536 = vpow2.f32 %v3330_v37  ;;  %v3332_v52 = vmul.f32 1.442695, %v3303_v25  ;;  %v3304_v5 = vsub.f32 %v8042_v12, %v3287_v47  ;;  %v3417_v12 = vpack.c.bf16 %v3062_v0, %v3059_v27  ;;  %6143 = vmatpush3.bf16.msra.mxu0 %v3415_v18  ;;  %v6400_v18 = vld [vmem:[%s6953_s1 + $0x20] sm:$0xff]  }
 0x8d5   : > { %3352 = vadd.xlane.f32.xlu1 %v8098_v44  ;;  %v3289_v33 = vpop.xlane.xlu1 %3288  ;;  %6144 = vmatprep.subr.bf16.mxu0 %v3416_v10 }
 0x8d6   : > { %v8104_v1 = vpop.eup %6528  ;;  %6538 = vpow2.f32 %v3332_v52  ;;  %v3334_v57 = vmul.f32 1.442695, %v3304_v5  ;;  %v3305_v54 = vsub.f32 %v8045_v2, %v3289_v33 }
 0x8d7   : > { %3354 = vadd.xlane.f32.xlu0 %v8104_v1 }
 0x8d8   : > { %v8109_v35 = vpop.eup %6530  ;;  %6540 = vpow2.f32 %v3334_v57  ;;  %v3336_v13 = vmul.f32 1.442695, %v3305_v54  ;;  %6145 = vmatpush3.bf16.msra.mxu0 %v3416_v10 }
 0x8d9   : > { %3356 = vadd.xlane.f32.xlu1 %v8109_v35  ;;  %6146 = vmatprep.subr.bf16.mxu0 %v3417_v12 }
 0x8da   : > { %v8112_v51 = vpop.eup %6532  ;;  %6542 = vpow2.f32 %v3336_v13  ;;  %v6401_v13 = vld [vmem:[%s6953_s1 + $0x28] sm:$0xff]  }
 0x8db   : > { %3358 = vadd.xlane.f32.xlu0 %v8112_v51 }
 0x8dc   : > { %v8115_v2 = vpop.eup %6534  ;;  %6147 = vmatpush3.bf16.msra.mxu0 %v3417_v12 }
 0x8dd   : > { %3360 = vadd.xlane.f32.xlu1 %v8115_v2  ;;  %6164 = vmatprep.subr.bf16.mxu0 %v6400_v18 }
 0x8de   : > { %v8118_v4 = vpop.eup %6536 }
 0x8df   : > { %3362 = vadd.xlane.f32.xlu0 %v8118_v4 }
 0x8e0   : > { %v8121_v62 = vpop.eup %6538 }
 0x8e1   : > { %3364 = vadd.xlane.f32.xlu1 %v8121_v62 }
 0x8e2   : > { %v8124_v3 = vpop.eup %6540 }
 0x8e3   : > { %3366 = vadd.xlane.f32.xlu0 %v8124_v3 }
 0x8e4   : > { %v8127_v7 = vpop.eup %6542 }
 0x8e5   : > { %3368 = vadd.xlane.f32.xlu1 %v8127_v7 }
 0x954   : > { %v3339_v59 = vpop.xlane.xlu0 %3338 }
 0x955   : > { %6544 = vrcp.f32 %v3339_v59 }
 0x956   : > { %v3341_v11 = vpop.xlane.xlu1 %3340 }
 0x957   : > { %6546 = vrcp.f32 %v3341_v11 }
 0x958   : > { %v3343_v19 = vpop.xlane.xlu0 %3342 }
 0x959   : > { %6548 = vrcp.f32 %v3343_v19 }
 0x95a   : > { %v3345_v56 = vpop.xlane.xlu1 %3344 }
 0x95b   : > { %6550 = vrcp.f32 %v3345_v56  ;;  %v6402_v56 = vld [vmem:[%s6953_s1 + $0x30] sm:$0xff]  }
 0x95c   : > { %v3347_v37 = vpop.xlane.xlu0 %3346 }
 0x95d   : > { %6552 = vrcp.f32 %v3347_v37 }
 0x95e   : > { %v3349_v25 = vpop.xlane.xlu1 %3348 }
 0x95f   : > { %v6545_v36 = vpop.eup %6544  ;;  %6554 = vrcp.f32 %v3349_v25 }
 0x960   : > { %v3351_v47 = vpop.xlane.xlu0 %3350  ;;  %v3386_v52 = vmul.f32 %v6545_v36, %v8064_v43 }
 0x961   : > { %v6547_v27 = vpop.eup %6546  ;;  %6556 = vrcp.f32 %v3351_v47 }
 0x962   : > { %v3353_v22 = vpop.xlane.xlu1 %3352  ;;  %v3387_v5 = vmul.f32 %v6547_v27, %v8069_v23 }
 0x963   : > { %v6549_v46 = vpop.eup %6548  ;;  %6558 = vrcp.f32 %v3353_v22 }
 0x964   : > { %v3355_v38 = vpop.xlane.xlu0 %3354  ;;  %v3402_v33 = vpack.c.bf16 %v3387_v5, %v3386_v52  ;;  %v3388_v26 = vmul.f32 %v6549_v46, %v8073_v49 }
 0x965   : > { %v6551_v0 = vpop.eup %6550  ;;  %6560 = vrcp.f32 %v3355_v38 }
 0x966   : > { %v3389_v57 = vmul.f32 %v6551_v0, %v8078_v31  ;;  %6148 = vmatprep.mubr.bf16.mxu0 %v3402_v33  ;;  %v3357_v54 = vpop.xlane.xlu1 %3356 }
 0x967   : > { %v6553_v60 = vpop.eup %6552  ;;  %6562 = vrcp.f32 %v3357_v54 }
 0x968   : > { %v3359_v12 = vpop.xlane.xlu0 %3358  ;;  %v3403_v43 = vpack.c.bf16 %v3389_v57, %v3388_v26  ;;  %v3390_v59 = vmul.f32 %v6553_v60, %v8084_v41 }
 0x969   : > { %v6555_v10 = vpop.eup %6554  ;;  %6564 = vrcp.f32 %v3359_v12 }
 0x96a   : > { %6149 = vmatmul.mubr.bf16.vlgmr.msra.gmra.mrb[64].mxu0 %v3403_v43  ;;  %v3361_v23 = vpop.xlane.xlu1 %3360  ;;  %v3391_v11 = vmul.f32 %v6555_v10, %v8089_v6  ;;  %v6404_v10 = vld [vmem:[%s6953_s1] sm:$0xff]  }
 0x96b   : > { %v6557_v19 = vpop.eup %6556  ;;  %6566 = vrcp.f32 %v3361_v23  ;;  %6165 = vmatpush3.bf16.msra.mxu0 %v6400_v18  ;;  %v6403_v18 = vld [vmem:[%s6953_s1 + $0x38] sm:$0xff]  }
 0x96c   : > { %v3363_v49 = vpop.xlane.xlu0 %3362  ;;  %v3404_v31 = vpack.c.bf16 %v3391_v11, %v3390_v59  ;;  %6166 = vmatprep.subr.bf16.mxu0 %v6401_v13  ;;  %v3392_v36 = vmul.f32 %v6557_v19, %v8093_v32 }
 0x96d   : > { %v6559_v37 = vpop.eup %6558  ;;  %6568 = vrcp.f32 %v3363_v49  ;;  %v6405_v49 = vld [vmem:[%s6953_s1 + $0x8] sm:$0xff]  }
 0x96e   : > { %6152 = vmatprep.mubr.bf16.mxu0 %v3404_v31  ;;  %v3365_v25 = vpop.xlane.xlu1 %3364  ;;  %v3393_v47 = vmul.f32 %v6559_v37, %v8098_v44  ;;  %v6406_v31 = vld [vmem:[%s6953_s1 + $0x10] sm:$0xff]  }
 0x96f   : > { %v6561_v27 = vpop.eup %6560  ;;  %6570 = vrcp.f32 %v3365_v25  ;;  %6167 = vmatpush3.bf16.msra.mxu0 %v6401_v13 }
 0x970   : > { %v3367_v41 = vpop.xlane.xlu0 %3366  ;;  %v3405_v6 = vpack.c.bf16 %v3393_v47, %v3392_v36  ;;  %6168 = vmatprep.subr.bf16.mxu0 %v6402_v56  ;;  %v3394_v5 = vmul.f32 %v6561_v27, %v8104_v1  ;;  %v6407_v47 = vld [vmem:[%s6953_s1 + $0x18] sm:$0xff]  }
 0x971   : > { %v6563_v22 = vpop.eup %6562  ;;  %6572 = vrcp.f32 %v3367_v41 }
 0x972   : > { %6153 = vmatmul.mubr.bf16.gmra.mrb[68].mxu0 %v3405_v6  ;;  %v3369_v52 = vpop.xlane.xlu1 %3368  ;;  %v3395_v46 = vmul.f32 %v6563_v22, %v8109_v35 }
 0x973   : > { %v6565_v38 = vpop.eup %6564  ;;  %6574 = vrcp.f32 %v3369_v52  ;;  %6169 = vmatpush3.bf16.msra.mxu0 %v6402_v56 }
 0x974   : > { %v3406_v32 = vpack.c.bf16 %v3395_v46, %v3394_v5  ;;  %6170 = vmatprep.subr.bf16.mxu0 %v6403_v18  ;;  %v3396_v33 = vmul.f32 %v6565_v38, %v8112_v51 }
 0x975   : > { %v6567_v44 = vpop.eup %6566 }
 0x976   : > { %6156 = vmatprep.mubr.bf16.mxu0 %v3406_v32  ;;  %v3397_v0 = vmul.f32 %v6567_v44, %v8115_v2 }
 0x977   : > { %v6569_v26 = vpop.eup %6568  ;;  %6171 = vmatpush3.bf16.msra.mxu0 %v6403_v18 }
 0x978   : > { %v3407_v57 = vpack.c.bf16 %v3397_v0, %v3396_v33  ;;  %v3398_v1 = vmul.f32 %v6569_v26, %v8118_v4  ;;  %6188 = vmatprep.subr.bf16.mxu0 %v6404_v10  ;;  %v6709_v0 = vld [vmem:[#allocation2 + $0x20] sm:$0xff] }
 0x979   : > { %v6571_v54 = vpop.eup %6570 }
 0x97a   : > { %6157 = vmatmul.mubr.bf16.gmra.mrb[72].mxu0 %v3407_v57  ;;  %v3399_v35 = vmul.f32 %v6571_v54, %v8121_v62  ;;  %v6710_v54 = vld [vmem:[#allocation2 + $0x28] sm:$0xff] }
 0x97b   : > { %v6573_v60 = vpop.eup %6572 }
 0x97c   : > { %v3408_v12 = vpack.c.bf16 %v3399_v35, %v3398_v1  ;;  %v3400_v13 = vmul.f32 %v6573_v60, %v8124_v3  ;;  %v6711_v60 = vld [vmem:[#allocation2 + $0x30] sm:$0xff] }
 0x97d   : > { %v6575_v43 = vpop.eup %6574 }
 0x97e   : > { %6160 = vmatprep.mubr.bf16.mxu0 %v3408_v12  ;;  %v3401_v51 = vmul.f32 %v6575_v43, %v8127_v7 }
 0x980   : > { %v3409_v2 = vpack.c.bf16 %v3401_v51, %v3400_v13 }
 0x982   : > { %6161 = vmatmul.mubr.bf16.gmra.mrb[76].mxu0 %v3409_v2  ;;  %v6712_v2 = vld [vmem:[#allocation2 + $0x38] sm:$0xff] }
 0xa3d   : > { %v6150_v23 = vpop.f32.mrb[64].mxu0 }
 0xa3e   : > { %v3452_v59 = vpop.f32.mrb[65].mxu0 }
 0xa3f   : > { %v6151_v11 = vpop.f32.mrb[66].mxu0 }
 0xa40   : > { %v3516_v4 = vpack.c.bf16 %v6151_v11, %v6150_v23  ;;  %v3455_v19 = vpop.f32.mrb[67].mxu0 }
 0xa41   : > { %v3515_v62 = vpack.c.bf16 %v3455_v19, %v3452_v59 }
 0xa43   : > { %6172 = vmatprep.mubr.msk.bf16.mxu0 %vm2098_vm0, %v3515_v62 }
 0xa44   : > { %6173 = vmatmul.mubr.msk.bf16.vlgmr.msra.gmra.mrb[80].mxu0 %vm2098_vm0, %v3516_v4  ;;  %v6713_v4 = vld [vmem:[#allocation2 + $0x40] sm:$0xff] }
 0xa45   : > { %v6154_v3 = vpop.f32.mrb[68].mxu0  ;;  %6189 = vmatpush3.bf16.msra.mxu0 %v6404_v10 }
 0xa46   : > { %v3468_v7 = vpop.f32.mrb[69].mxu0  ;;  %6190 = vmatprep.subr.bf16.mxu0 %v6405_v49 }
 0xa47   : > { %v6155_v56 = vpop.f32.mrb[70].mxu0 }
 0xa48   : > { %v3518_v37 = vpack.c.bf16 %v6155_v56, %v6154_v3  ;;  %v3471_v25 = vpop.f32.mrb[71].mxu0 }
 0xa49   : > { %v3517_v36 = vpack.c.bf16 %v3471_v25, %v3468_v7  ;;  %6191 = vmatpush3.bf16.msra.mxu0 %v6405_v49  ;;  %v6714_v49 = vld [vmem:[#allocation2 + $0x48] sm:$0xff] }
 0xa4a   : > { %6192 = vmatprep.subr.bf16.mxu0 %v6406_v31 }
 0xa4b   : > { %6176 = vmatprep.mubr.msk.bf16.mxu0 %vm2098_vm0, %v3517_v36 }
 0xa4c   : > { %6177 = vmatmul.mubr.msk.bf16.gmra.mrb[84].mxu0 %vm2098_vm0, %v3518_v37 }
 0xa4d   : > { %v6158_v27 = vpop.f32.mrb[72].mxu0  ;;  %6193 = vmatpush3.bf16.msra.mxu0 %v6406_v31  ;;  %v6715_v31 = vld [vmem:[#allocation2 + $0x50] sm:$0xff] }
 0xa4e   : > { %v3484_v41 = vpop.f32.mrb[73].mxu0  ;;  %6194 = vmatprep.subr.bf16.mxu0 %v6407_v47 }
 0xa4f   : > { %v6159_v6 = vpop.f32.mrb[74].mxu0 }
 0xa50   : > { %v3520_v18 = vpack.c.bf16 %v6159_v6, %v6158_v27  ;;  %v3487_v22 = vpop.f32.mrb[75].mxu0 }
 0xa51   : > { %v3519_v52 = vpack.c.bf16 %v3487_v22, %v3484_v41  ;;  %6195 = vmatpush3.bf16.msra.mxu0 %v6407_v47  ;;  %v6716_v47 = vld [vmem:[#allocation2 + $0x58] sm:$0xff]  ;;  %v6717_v22 = vld [vmem:[#allocation2 + $0x60] sm:$0xff] }
 0xa53   : > { %6180 = vmatprep.mubr.msk.bf16.mxu0 %vm2098_vm0, %v3519_v52 }
 0xa54   : > { %6181 = vmatmul.mubr.msk.bf16.gmra.mrb[88].mxu0 %vm2098_vm0, %v3520_v18 }
 0xa55   : > { %v6162_v5 = vpop.f32.mrb[76].mxu0 }
 0xa56   : > { %v3500_v46 = vpop.f32.mrb[77].mxu0 }
 0xa57   : > { %v6163_v38 = vpop.f32.mrb[78].mxu0 }
 0xa58   : > { %v3522_v32 = vpack.c.bf16 %v6163_v38, %v6162_v5  ;;  %v3503_v44 = vpop.f32.mrb[79].mxu0 }
 0xa59   : > { %v3521_v33 = vpack.c.bf16 %v3503_v44, %v3500_v46  ;;  %v6718_v46 = vld [vmem:[#allocation2 + $0x68] sm:$0xff] }
 0xa5b   : > { %6184 = vmatprep.mubr.msk.bf16.mxu0 %vm2098_vm0, %v3521_v33  ;;  %v6720_v33 = vld [vmem:[#allocation2 + $0x78] sm:$0xff] }
 0xa5c   : > { %6185 = vmatmul.mubr.msk.bf16.gmra.mrb[92].mxu0 %vm2098_vm0, %v3522_v32  ;;  %v6719_v32 = vld [vmem:[#allocation2 + $0x70] sm:$0xff] }
 0xa5d   : > { %6196 = vmatprep.mubr.msk.bf16.mxu0 %vm2098_vm0, %v2539_v45 }
 0xa64   : > { %6197 = vmatmul.mubr.msk.bf16.vlgmr.msra.gmra.mrb[80].mxu0 %vm2098_vm0, %v2540_v24 }
 0xa65   : > { %6200 = vmatprep.mubr.msk.bf16.mxu0 %vm2098_vm0, %v2541_v8  ;;  %v6706_v8 = vld [vmem:[#allocation2 + $0x8] sm:$0xff] }
 0xa6c   : > { %6201 = vmatmul.mubr.msk.bf16.gmra.mrb[84].mxu0 %vm2098_vm0, %v2542_v29 }
 0xa6d   : > { %6204 = vmatprep.mubr.msk.bf16.mxu0 %vm2098_vm0, %v2543_v14 }
 0xa74   : > { %6205 = vmatmul.mubr.msk.bf16.gmra.mrb[88].mxu0 %vm2098_vm0, %v2544_v20 }
 0xa75   : > { %6208 = vmatprep.mubr.msk.bf16.mxu0 %vm2098_vm0, %v2545_v42 }
 0xa7c   : > { %6209 = vmatmul.mubr.msk.bf16.gmra.mrb[92].mxu0 %vm2098_vm0, %v2546_v17 }
 0xb37   : > { %v6198_v34 = vpop.f32.mrb[80].mxu0 }
 0xb38   : > { %v3759_v55 = vpop.f32.mrb[81].mxu0  ;;  %v3831_v28 = vadd.f32 %v6198_v34, %v8199_v9 }
 0xb39   : > { %v3829_v24 = vadd.f32 %v8199_v9, %v3759_v55  ;;  %v6199_v58 = vpop.f32.mrb[82].mxu0  ;;  %v6408_v55 = vld [vmem:[%s6977_s20] ss:$8 sps:$4 sm:$0xff]  }
 0xb3a   : > { %v3762_v45 = vpop.f32.mrb[83].mxu0  ;;  %v3832_v50 = vadd.f32 %v6199_v58, %v8199_v9  ;;  %v8211_v20 = vadd.f32 %v6707_v63, %v3831_v28  ;;  %v6411_v58 = vld [vmem:[%s6977_s20 + $0x10] ss:$8 sps:$4 sm:$0xff]  }
 0xb3b   : > { %v3830_v15 = vadd.f32 %v8199_v9, %v3762_v45  ;;  %v8204_v29 = vadd.f32 %v6705_v39, %v3829_v24  ;;  %v6413_v24 = vld [vmem:[%s6977_s20 + $0x14] ss:$8 sps:$4 sm:$0xff]  }
 0xb3c   : > { %v8215_v40 = vadd.f32 %v6708_v21, %v3832_v50 }
 0xb3d   : > { %3863 = vadd.xlane.f32.xlu0 %v8204_v29  ;;  %v8208_v30 = vadd.f32 %v6706_v8, %v3830_v15 }
 0xb3f   : > { %3865 = vadd.xlane.f32.xlu1 %v8208_v30  ;;  %v6202_v61 = vpop.f32.mrb[84].mxu0 }
 0xb40   : > { %v3775_v53 = vpop.f32.mrb[85].mxu0  ;;  %v3835_v48 = vadd.f32 %v6202_v61, %v8199_v9 }
 0xb41   : > { %v3833_v14 = vadd.f32 %v8199_v9, %v3775_v53  ;;  %3867 = vadd.xlane.f32.xlu0 %v8211_v20  ;;  %v6203_v16 = vpop.f32.mrb[86].mxu0 }
 0xb42   : > { %v3778_v17 = vpop.f32.mrb[87].mxu0  ;;  %v3836_v57 = vadd.f32 %v6203_v16, %v8199_v9  ;;  %v8227_v12 = vadd.f32 %v6711_v60, %v3835_v48 }
 0xb43   : > { %v3834_v42 = vadd.f32 %v8199_v9, %v3778_v17  ;;  %3869 = vadd.xlane.f32.xlu1 %v8215_v40  ;;  %v8220_v26 = vadd.f32 %v6709_v0, %v3833_v14 }
 0xb44   : > { %v8231_v10 = vadd.f32 %v6712_v2, %v3836_v57 }
 0xb45   : > { %3871 = vadd.xlane.f32.xlu0 %v8220_v26  ;;  %v8224_v1 = vadd.f32 %v6710_v54, %v3834_v42 }
 0xb47   : > { %3873 = vadd.xlane.f32.xlu1 %v8224_v1  ;;  %v6206_v35 = vpop.f32.mrb[88].mxu0 }
 0xb48   : > { %v3791_v43 = vpop.f32.mrb[89].mxu0  ;;  %v3839_v59 = vadd.f32 %v6206_v35, %v8199_v9 }
 0xb49   : > { %v3837_v13 = vadd.f32 %v8199_v9, %v3791_v43  ;;  %3875 = vadd.xlane.f32.xlu0 %v8227_v12  ;;  %v6207_v51 = vpop.f32.mrb[90].mxu0 }
 0xb4a   : > { %v3794_v23 = vpop.f32.mrb[91].mxu0  ;;  %v3840_v62 = vadd.f32 %v6207_v51, %v8199_v9  ;;  %v8243_v56 = vadd.f32 %v6715_v31, %v3839_v59  ;;  %v6416_v31 = vld [vmem:[%s6977_s20 + $0x24] ss:$8 sps:$4 sm:$0xff]  }
 0xb4b   : > { %v3838_v11 = vadd.f32 %v8199_v9, %v3794_v23  ;;  %3877 = vadd.xlane.f32.xlu1 %v8231_v10  ;;  %v8236_v19 = vadd.f32 %v6713_v4, %v3837_v13 }
 0xb4c   : > { %v8247_v27 = vadd.f32 %v6716_v47, %v3840_v62 }
 0xb4d   : > { %3879 = vadd.xlane.f32.xlu0 %v8236_v19  ;;  %v8240_v3 = vadd.f32 %v6714_v49, %v3838_v11 }
 0xb4f   : > { %3881 = vadd.xlane.f32.xlu1 %v8240_v3  ;;  %v6210_v7 = vpop.f32.mrb[92].mxu0 }
 0xb50   : > { %v3807_v37 = vpop.f32.mrb[93].mxu0  ;;  %v3843_v6 = vadd.f32 %v6210_v7, %v8199_v9 }
 0xb51   : > { %v3841_v25 = vadd.f32 %v8199_v9, %v3807_v37  ;;  %3883 = vadd.xlane.f32.xlu0 %v8243_v56  ;;  %v6211_v36 = vpop.f32.mrb[94].mxu0 }
 0xb52   : > { %v3810_v41 = vpop.f32.mrb[95].mxu0  ;;  %v3844_v5 = vadd.f32 %v6211_v36, %v8199_v9  ;;  %v8259_v44 = vadd.f32 %v6719_v32, %v3843_v6  ;;  %v6414_v36 = vld [vmem:[%s6977_s20 + $0x20] ss:$8 sps:$4 sm:$0xff]  }
 0xb53   : > { %v3842_v18 = vadd.f32 %v8199_v9, %v3810_v41  ;;  %3885 = vadd.xlane.f32.xlu1 %v8247_v27  ;;  %v8252_v52 = vadd.f32 %v6717_v22, %v3841_v25  ;;  %v6410_v9 = vld [vmem:[%s6977_s20 + $0x4] ss:$8 sps:$4 sm:$0xff]  }
 0xb54   : > { %v8262_v34 = vadd.f32 %v6720_v33, %v3844_v5  ;;  %4200 = vmatprep.subr.bf16.mxu1 %v6410_v9 }
 0xb55   : > { %3887 = vadd.xlane.f32.xlu0 %v8252_v52  ;;  %v8256_v38 = vadd.f32 %v6718_v46, %v3842_v18  ;;  %4201 = vmatpush1.bf16.msra.mxu1 %v6408_v55  ;;  %v6419_v18 = vld [vmem:[%s6977_s20 + $0x34] ss:$8 sps:$4 sm:$0xff]  }
 0xb56   : > { %4202 = vmatprep.subr.bf16.mxu1 %v6413_v24  ;;  %v6422_v24 = vld [vmem:[%s6977_s20 + $0x44] ss:$8 sps:$4 sm:$0xff]  }
 0xb57   : > { %3889 = vadd.xlane.f32.xlu1 %v8256_v38 }
 0xb59   : > { %3891 = vadd.xlane.f32.xlu0 %v8259_v44  ;;  %4203 = vmatpush1.bf16.msra.mxu1 %v6411_v58 }
 0xb5a   : > { %4204 = vmatprep.subr.bf16.mxu1 %v6416_v31 }
 0xb5b   : > { %3893 = vadd.xlane.f32.xlu1 %v8262_v34 }
 0xb5d   : > { %4205 = vmatpush1.bf16.msra.mxu1 %v6414_v36 }
 0xb5e   : > { %4206 = vmatprep.subr.bf16.mxu1 %v6419_v18 }
 0xbca   : > { %v3864_v45 = vpop.xlane.xlu0 %3863 }
 0xbcb   : > { %v3896_v28 = vmul.f32 0.0078125, %v3864_v45 }
 0xbcc   : > { %v3866_v15 = vpop.xlane.xlu1 %3865 }
 0xbcd   : > { %v8270_v39 = vsub.f32 %v8204_v29, %v3896_v28  ;;  %v3897_v50 = vmul.f32 0.0078125, %v3866_v15 }
 0xbce   : > { %v3868_v8 = vpop.xlane.xlu0 %3867 }
 0xbcf   : > { %v8273_v61 = vsub.f32 %v8208_v30, %v3897_v50  ;;  %v3898_v63 = vmul.f32 0.0078125, %v3868_v8  ;;  %v3928_v53 = vmul.f32 %v8270_v39, %v8270_v39 }
 0xbd0   : > { %v3870_v14 = vpop.xlane.xlu1 %3869 }
 0xbd1   : > { %v8278_v16 = vsub.f32 %v8211_v20, %v3898_v63  ;;  %v3899_v21 = vmul.f32 0.0078125, %v3870_v14  ;;  %3944 = vadd.xlane.f32.xlu0 %v3928_v53  ;;  %v3929_v17 = vmul.f32 %v8273_v61, %v8273_v61  ;;  %v6425_v63 = vld [vmem:[%s6977_s20 + $0x54] ss:$8 sps:$4 sm:$0xff]  }
 0xbd2   : > { %v3872_v29 = vpop.xlane.xlu0 %3871 }
 0xbd3   : > { %v8283_v48 = vsub.f32 %v8215_v40, %v3899_v21  ;;  %v3900_v42 = vmul.f32 0.0078125, %v3872_v29  ;;  %3946 = vadd.xlane.f32.xlu1 %v3929_v17  ;;  %v3930_v30 = vmul.f32 %v8278_v16, %v8278_v16  ;;  %v6423_v21 = vld [vmem:[%s6977_s20 + $0x50] ss:$8 sps:$4 sm:$0xff]   ;;  %v6428_v17 = vld [vmem:[%s6977_s20 + $0x64] ss:$8 sps:$4 sm:$0xff]  }
 0xbd4   : > { %v3874_v0 = vpop.xlane.xlu1 %3873  ;;  %v6426_v29 = vld [vmem:[%s6977_s20 + $0x60] ss:$8 sps:$4 sm:$0xff]  }
 0xbd5   : > { %v8288_v57 = vsub.f32 %v8220_v26, %v3900_v42  ;;  %v3901_v20 = vmul.f32 0.0078125, %v3874_v0  ;;  %3948 = vadd.xlane.f32.xlu0 %v3930_v30  ;;  %v3931_v54 = vmul.f32 %v8283_v48, %v8283_v48  ;;  %v6431_v42 = vld [vmem:[%s6977_s20 + $0x74] ss:$8 sps:$4 sm:$0xff]   ;;  %v6429_v30 = vld [vmem:[%s6977_s20 + $0x70] ss:$8 sps:$4 sm:$0xff]  }
 0xbd6   : > { %v3876_v35 = vpop.xlane.xlu0 %3875 }
 0xbd7   : > { %v8293_v60 = vsub.f32 %v8224_v1, %v3901_v20  ;;  %v3902_v40 = vmul.f32 0.0078125, %v3876_v35  ;;  %3950 = vadd.xlane.f32.xlu1 %v3931_v54  ;;  %v3932_v43 = vmul.f32 %v8288_v57, %v8288_v57 }
 0xbd8   : > { %v3878_v13 = vpop.xlane.xlu1 %3877 }
 0xbd9   : > { %v8298_v51 = vsub.f32 %v8227_v12, %v3902_v40  ;;  %v3903_v26 = vmul.f32 0.0078125, %v3878_v13  ;;  %3952 = vadd.xlane.f32.xlu0 %v3932_v43  ;;  %v3933_v2 = vmul.f32 %v8293_v60, %v8293_v60 }
 0xbda   : > { %v3880_v23 = vpop.xlane.xlu0 %3879 }
 0xbdb   : > { %v8303_v1 = vsub.f32 %v8231_v10, %v3903_v26  ;;  %v3904_v59 = vmul.f32 0.0078125, %v3880_v23  ;;  %3954 = vadd.xlane.f32.xlu1 %v3933_v2  ;;  %v3934_v11 = vmul.f32 %v8298_v51, %v8298_v51 }
 0xbdc   : > { %v3882_v4 = vpop.xlane.xlu1 %3881 }
 0xbdd   : > { %v8308_v62 = vsub.f32 %v8236_v19, %v3904_v59  ;;  %v3905_v12 = vmul.f32 0.0078125, %v3882_v4  ;;  %3956 = vadd.xlane.f32.xlu0 %v3934_v11  ;;  %v3935_v49 = vmul.f32 %v8303_v1, %v8303_v1 }
 0xbde   : > { %v3884_v7 = vpop.xlane.xlu0 %3883 }
 0xbdf   : > { %v8314_v10 = vsub.f32 %v8240_v3, %v3905_v12  ;;  %v3906_v37 = vmul.f32 0.0078125, %v3884_v7  ;;  %3958 = vadd.xlane.f32.xlu1 %v3935_v49  ;;  %v3936_v25 = vmul.f32 %v8308_v62, %v8308_v62 }
 0xbe0   : > { %v3886_v19 = vpop.xlane.xlu1 %3885 }
 0xbe1   : > { %v8320_v47 = vsub.f32 %v8243_v56, %v3906_v37  ;;  %v3907_v41 = vmul.f32 0.0078125, %v3886_v19  ;;  %3960 = vadd.xlane.f32.xlu0 %v3936_v25  ;;  %v3937_v6 = vmul.f32 %v8314_v10, %v8314_v10  ;;  %v6417_v56 = vld [vmem:[%s6977_s20 + $0x30] ss:$8 sps:$4 sm:$0xff]  }
 0xbe2   : > { %v3888_v3 = vpop.xlane.xlu0 %3887  ;;  %4207 = vmatpush1.bf16.msra.mxu1 %v6417_v56 }
 0xbe3   : > { %v8326_v22 = vsub.f32 %v8247_v27, %v3907_v41  ;;  %v3908_v5 = vmul.f32 0.0078125, %v3888_v3  ;;  %3962 = vadd.xlane.f32.xlu1 %v3937_v6  ;;  %v3938_v46 = vmul.f32 %v8320_v47, %v8320_v47  ;;  %4208 = vmatprep.subr.bf16.mxu1 %v6422_v24  ;;  %v8367_v41 = vld [vmem:[%s9164_s4] ss:$0 sm:$0xff] }
 0xbe4   : > { %v3890_v32 = vpop.xlane.xlu1 %3889 }
 0xbe5   : > { %v8332_v33 = vsub.f32 %v8252_v52, %v3908_v5  ;;  %v3909_v55 = vmul.f32 0.0078125, %v3890_v32  ;;  %3964 = vadd.xlane.f32.xlu0 %v3938_v46  ;;  %v3939_v9 = vmul.f32 %v8326_v22, %v8326_v22  ;;  %v6420_v52 = vld [vmem:[%s6977_s20 + $0x40] ss:$8 sps:$4 sm:$0xff]  }
 0xbe6   : > { %v3892_v27 = vpop.xlane.xlu0 %3891  ;;  %4209 = vmatpush1.bf16.msra.mxu1 %v6420_v52 }
 0xbe7   : > { %v8338_v58 = vsub.f32 %v8256_v38, %v3909_v55  ;;  %v3910_v45 = vmul.f32 0.0078125, %v3892_v27  ;;  %3966 = vadd.xlane.f32.xlu1 %v3939_v9  ;;  %v3940_v28 = vmul.f32 %v8332_v33, %v8332_v33  ;;  %4210 = vmatprep.subr.bf16.mxu1 %v6425_v63  ;;  %v8377_v9 = vld [vmem:[%s9165_s8] ss:$0 sm:$0xff] }
 0xbe8   : > { %v3894_v15 = vpop.xlane.xlu1 %3893 }
 0xbe9   : > { %v8344_v50 = vsub.f32 %v8259_v44, %v3910_v45  ;;  %v3911_v8 = vmul.f32 0.0078125, %v3894_v15  ;;  %3968 = vadd.xlane.f32.xlu0 %v3940_v28  ;;  %v3941_v38 = vmul.f32 %v8338_v58, %v8338_v58 }
 0xbea   : > { %4211 = vmatpush1.bf16.msra.mxu1 %v6423_v21 }
 0xbeb   : > { %v8350_v53 = vsub.f32 %v8262_v34, %v3911_v8  ;;  %3970 = vadd.xlane.f32.xlu1 %v3941_v38  ;;  %v3942_v14 = vmul.f32 %v8344_v50, %v8344_v50  ;;  %4212 = vmatprep.subr.bf16.mxu1 %v6428_v17  ;;  %v6762_v34 = vmov 0  }
 0xbec   : > { %4232 = vmatprep.mubr.bf16.mxu1 %v6762_v34 }
 0xbed   : > { %3972 = vadd.xlane.f32.xlu0 %v3942_v14  ;;  %v3943_v44 = vmul.f32 %v8350_v53, %v8350_v53 }
 0xbee   : > { %4213 = vmatpush1.bf16.msra.mxu1 %v6426_v29 }
 0xbef   : > { %3974 = vadd.xlane.f32.xlu1 %v3943_v44  ;;  %4214 = vmatprep.subr.bf16.mxu1 %v6431_v42 }
 0xbf2   : > { %4215 = vmatpush1.bf16.msra.mxu1 %v6429_v30 }
 0xc5e   : > { %v3945_v0 = vpop.xlane.xlu0 %3944 }
 0xc5f   : > { %v3976_v20 = vmul.f32 0.0078125, %v3945_v0 }
 0xc60   : > { %v3947_v54 = vpop.xlane.xlu1 %3946 }
 0xc61   : > { %v3992_v35 = vadd.f32 1e-12, %v3976_v20  ;;  %v3977_v40 = vmul.f32 0.0078125, %v3947_v54 }
 0xc62   : > { %v3949_v43 = vpop.xlane.xlu0 %3948 }
 0xc63   : > { %6576 = vrsqrt.f32 %v3992_v35  ;;  %v3993_v13 = vadd.f32 1e-12, %v3977_v40  ;;  %v3978_v26 = vmul.f32 0.0078125, %v3949_v43 }
 0xc64   : > { %v3951_v2 = vpop.xlane.xlu1 %3950 }
 0xc65   : > { %6578 = vrsqrt.f32 %v3993_v13  ;;  %v3994_v23 = vadd.f32 1e-12, %v3978_v26  ;;  %v3979_v59 = vmul.f32 0.0078125, %v3951_v2 }
 0xc66   : > { %v3953_v11 = vpop.xlane.xlu0 %3952 }
 0xc67   : > { %6580 = vrsqrt.f32 %v3994_v23  ;;  %v3995_v4 = vadd.f32 1e-12, %v3979_v59  ;;  %v3980_v12 = vmul.f32 0.0078125, %v3953_v11 }
 0xc68   : > { %v3955_v49 = vpop.xlane.xlu1 %3954 }
 0xc69   : > { %6582 = vrsqrt.f32 %v3995_v4  ;;  %v3981_v7 = vmul.f32 0.0078125, %v3955_v49  ;;  %v3996_v31 = vadd.f32 1e-12, %v3980_v12 }
 0xc6a   : > { %v3957_v25 = vpop.xlane.xlu0 %3956 }
 0xc6b   : > { %v3997_v37 = vadd.f32 1e-12, %v3981_v7  ;;  %v3982_v5 = vmul.f32 0.0078125, %v3957_v25 }
 0xc6c   : > { %v3959_v36 = vpop.xlane.xlu1 %3958 }
 0xc6d   : > { %v6577_v19 = vpop.eup %6576  ;;  %6584 = vrsqrt.f32 %v3997_v37  ;;  %v3983_v6 = vmul.f32 0.0078125, %v3959_v36 }
 0xc6e   : > { %v4024_v3 = vmul.f32 %v6577_v19, %v8270_v39  ;;  %6586 = vrsqrt.f32 %v3996_v31  ;;  %v3998_v39 = vadd.f32 1e-12, %v3982_v5  ;;  %v3961_v28 = vpop.xlane.xlu0 %3960 }
 0xc6f   : > { %v6579_v18 = vpop.eup %6578  ;;  %v3999_v55 = vadd.f32 1e-12, %v3983_v6  ;;  %v3984_v44 = vmul.f32 0.0078125, %v3961_v28 }
 0xc70   : > { %v4046_v46 = vmul.f32 %v8367_v41, %v4024_v3  ;;  %v4025_v56 = vmul.f32 %v6579_v18, %v8273_v61  ;;  %v3963_v24 = vpop.xlane.xlu1 %3962 }
 0xc71   : > { %v6581_v32 = vpop.eup %6580  ;;  %6588 = vrsqrt.f32 %v3999_v55  ;;  %v3985_v38 = vmul.f32 0.0078125, %v3963_v24  ;;  %v4000_v0 = vadd.f32 1e-12, %v3984_v44 }
 0xc72   : > { %v4047_v27 = vmul.f32 %v8367_v41, %v4025_v56  ;;  %v8381_v52 = vadd.f32 %v8377_v9, %v4046_v46  ;;  %v4026_v61 = vmul.f32 %v6581_v32, %v8278_v16  ;;  %6590 = vrsqrt.f32 %v3998_v39  ;;  %v3965_v20 = vpop.xlane.xlu0 %3964 }
 0xc73   : > { %v6583_v45 = vpop.eup %6582  ;;  %v4001_v42 = vadd.f32 1e-12, %v3985_v38  ;;  %v3986_v2 = vmul.f32 0.0078125, %v3965_v20 }
 0xc74   : > { %v8384_v15 = vadd.f32 %v8377_v9, %v4047_v27  ;;  %v4027_v8 = vmul.f32 %v6583_v45, %v8283_v48  ;;  %v4048_v17 = vmul.f32 %v8367_v41, %v4026_v61  ;;  %v3967_v16 = vpop.xlane.xlu1 %3966 }
 0xc75   : > { %6592 = vrsqrt.f32 %v4001_v42  ;;  %v3987_v40 = vmul.f32 0.0078125, %v3967_v16  ;;  %v4002_v12 = vadd.f32 1e-12, %v3986_v2 }
 0xc76   : > { %v4084_v63 = vpack.c.bf16 %v8384_v15, %v8381_v52  ;;  %v4049_v14 = vmul.f32 %v8367_v41, %v4027_v8  ;;  %v8398_v54 = vadd.f32 %v8377_v9, %v4048_v17  ;;  %6594 = vrsqrt.f32 %v4000_v0  ;;  %v3969_v49 = vpop.xlane.xlu0 %3968 }
 0xc77   : > { %v6585_v21 = vpop.eup %6584  ;;  %v4003_v59 = vadd.f32 1e-12, %v3987_v40  ;;  %v3988_v6 = vmul.f32 0.0078125, %v3969_v49  ;;  %v6433_v49 = vld [vmem:[%s6987_s22] sm:$0xff]  }
 0xc78   : > { %4233 = vmatmul.mubr.bf16.vlgmr.msra.gmra.mrb[80].mxu1 %v4084_v63  ;;  %v6587_v29 = vpop.eup %6586  ;;  %v8394_v48 = vadd.f32 %v8377_v9, %v4049_v14  ;;  %v4029_v30 = vmul.f32 %v6585_v21, %v8293_v60  ;;  %v3971_v11 = vpop.xlane.xlu1 %3970 }
 0xc79   : > { %4242 = vmatprep.mubr.bf16.mxu1 %v6762_v34  ;;  %v4028_v35 = vmul.f32 %v6587_v29, %v8288_v57  ;;  %6596 = vrsqrt.f32 %v4003_v59  ;;  %v3989_v37 = vmul.f32 0.0078125, %v3971_v11  ;;  %v4004_v56 = vadd.f32 1e-12, %v3988_v6  ;;  %v6442_v6 = vld [vmem:[%s6987_s22 + $0x68] sm:$0xff]  }
 0xc7a   : > { %v4085_v43 = vpack.c.bf16 %v8394_v48, %v8398_v54  ;;  %v4051_v13 = vmul.f32 %v8367_v41, %v4029_v30  ;;  %6598 = vrsqrt.f32 %v4002_v12  ;;  %v3973_v32 = vpop.xlane.xlu0 %3972  ;;  %v6432_v12 = vld [vmem:[%s6987_s22 + $0x40] sm:$0xff]  }
 0xc7b   : > { %v6589_v26 = vpop.eup %6588  ;;  %v4050_v60 = vmul.f32 %v8367_v41, %v4028_v35  ;;  %v4005_v18 = vadd.f32 1e-12, %v3989_v37  ;;  %v3990_v61 = vmul.f32 0.0078125, %v3973_v32  ;;  %5780 = vmatprep.subr.bf16.mxu0 %v6432_v12  ;;  %v6438_v37 = vld [vmem:[%s6987_s22 + $0x58] sm:$0xff]  }
 0xc7c   : > { %v6591_v23 = vpop.eup %6590  ;;  %v8407_v57 = vadd.f32 %v8377_v9, %v4051_v13  ;;  %v4031_v4 = vmul.f32 %v6589_v26, %v8303_v1  ;;  %v3975_v5 = vpop.xlane.xlu1 %3974  ;;  %5781 = vmatpush3.bf16.msra.mxu0 %v6433_v49 }
 0xc7d   : > { %v8411_v7 = vadd.f32 %v8377_v9, %v4050_v60  ;;  %v4030_v31 = vmul.f32 %v6591_v23, %v8298_v51  ;;  %6600 = vrsqrt.f32 %v4005_v18  ;;  %v3991_v24 = vmul.f32 0.0078125, %v3975_v5  ;;  %v6445_v18 = vld [vmem:[%s6987_s22 + $0x30] sm:$0xff]   ;;  %v6446_v5 = vld [vmem:[%s6987_s22 + $0x78] sm:$0xff]  }
 0xc7e   : > { %v4053_v36 = vmul.f32 %v8367_v41, %v4031_v4  ;;  %6602 = vrsqrt.f32 %v4004_v56  ;;  %v4006_v14 = vadd.f32 1e-12, %v3990_v61  ;;  %v4110_v56 = vlaneseq }
 0xc7f   : > { %v4086_v25 = vpack.c.bf16 %v8407_v57, %v8411_v7  ;;  %v6593_v19 = vpop.eup %6592  ;;  %v4052_v1 = vmul.f32 %v8367_v41, %v4030_v31  ;;  %v4007_v38 = vadd.f32 1e-12, %v3991_v24  ;;  %v6436_v31 = vld [vmem:[%s6987_s22 + $0x50] sm:$0xff]   ;;  %v4108_v24 = vld [vmem:[%s9173_s9] sm:$0x3] }
 0xc80   : > { %4243 = vmatmul.mubr.bf16.gmra.mrb[84].mxu1 %v4085_v43  ;;  %v6595_v3 = vpop.eup %6594  ;;  %v8420_v51 = vadd.f32 %v8377_v9, %v4053_v36  ;;  %v4033_v46 = vmul.f32 %v6593_v19, %v8314_v10  ;;  %v6440_v36 = vld [vmem:[%s6987_s22 + $0x60] sm:$0xff]   ;;  %v4111_v32 = vshrl.u32 %v4110_v56, 7 }
 0xc81   : > { %4252 = vmatprep.mubr.bf16.mxu1 %v6762_v34  ;;  %v8424_v55 = vadd.f32 %v8377_v9, %v4052_v1  ;;  %v4032_v27 = vmul.f32 %v6595_v3, %v8308_v62  ;;  %6604 = vrsqrt.f32 %v4007_v38  ;;  %v6441_v19 = vld [vmem:[%s6987_s22 + $0x20] sm:$0xff]   ;;  %v6443_v1 = vld [vmem:[%s6987_s22 + $0x28] sm:$0xff]   ;;  %v6444_v3 = vld [vmem:[%s6987_s22 + $0x70] sm:$0xff]  }
 0xc82   : > { %v4055_v39 = vmul.f32 %v8367_v41, %v4033_v46  ;;  %6606 = vrsqrt.f32 %v4006_v14  ;;  %v6447_v46 = vld [vmem:[%s6987_s22 + $0x38] sm:$0xff]  }
 0xc83   : > { %v4087_v45 = vpack.c.bf16 %v8420_v51, %v8424_v55  ;;  %v6597_v28 = vpop.eup %6596  ;;  %v4054_v10 = vmul.f32 %v8367_v41, %v4032_v27  ;;  %v4112_v27 = vsub.s32 0, %v4111_v32 }
 0xc84   : > { %v6599_v8 = vpop.eup %6598  ;;  %v8433_v63 = vadd.f32 %v8377_v9, %v4055_v39  ;;  %v4035_v62 = vmul.f32 %v6597_v28, %v8326_v22 }
 0xc85   : > { %v8437_v21 = vadd.f32 %v8377_v9, %v4054_v10  ;;  %v4034_v44 = vmul.f32 %v6599_v8, %v8320_v47  ;;  %v8496_v39 = vrot.slane %v4108_v24, %v4112_v27 }
 0xc86   : > { %9166 = vst [vmem:[#allocation15_spill] sm:$0xff] %v8433_v63  ;;  %v4057_v29 = vmul.f32 %v8367_v41, %v4035_v62 }
 0xc87   : > { %v4088_v17 = vpack.c.bf16 %v8433_v63, %v8437_v21  ;;  %v6601_v42 = vpop.eup %6600  ;;  %v4056_v16 = vmul.f32 %v8367_v41, %v4034_v44 }
 0xc88   : > { %4253 = vmatmul.mubr.bf16.gmra.mrb[88].mxu1 %v4086_v25  ;;  %v6603_v30 = vpop.eup %6602  ;;  %v8446_v22 = vadd.f32 %v8377_v9, %v4057_v29  ;;  %v4037_v0 = vmul.f32 %v6601_v42, %v8338_v58  ;;  %v6439_v25 = vld [vmem:[%s6987_s22 + $0x18] sm:$0xff]  }
 0xc89   : > { %4262 = vmatprep.mubr.bf16.mxu1 %v6762_v34  ;;  %v8450_v47 = vadd.f32 %v8377_v9, %v4056_v16  ;;  %v4036_v20 = vmul.f32 %v6603_v30, %v8332_v33 }
 0xc8a   : > { %9167 = vst [vmem:[#allocation16_spill] sm:$0xff] %v8446_v22  ;;  %v4059_v40 = vmul.f32 %v8367_v41, %v4037_v0 }
 0xc8b   : > { %9168 = vst [vmem:[#allocation17_spill] sm:$0xff] %v8450_v47  ;;  %v4089_v35 = vpack.c.bf16 %v8446_v22, %v8450_v47  ;;  %v6605_v43 = vpop.eup %6604  ;;  %v4058_v13 = vmul.f32 %v8367_v41, %v4036_v20 }
 0xc8c   : > { %v6607_v26 = vpop.eup %6606  ;;  %v8459_v58 = vadd.f32 %v8377_v9, %v4059_v40  ;;  %v4039_v2 = vmul.f32 %v6605_v43, %v8350_v53 }
 0xc8d   : > { %v8463_v33 = vadd.f32 %v8377_v9, %v4058_v13  ;;  %v4038_v60 = vmul.f32 %v6607_v26, %v8344_v50 }
 0xc8e   : > { %9169 = vst [vmem:[#allocation18_spill] sm:$0xff] %v8459_v58  ;;  %v4061_v59 = vmul.f32 %v8367_v41, %v4039_v2 }
 0xc8f   : > { %9170 = vst [vmem:[#allocation19_spill] sm:$0xff] %v8463_v33  ;;  %v4090_v23 = vpack.c.bf16 %v8459_v58, %v8463_v33  ;;  %v4060_v11 = vmul.f32 %v8367_v41, %v4038_v60  ;;  %v6434_v41 = vld [vmem:[%s6987_s22 + $0x48] sm:$0xff]  }
 0xc90   : > { %4263 = vmatmul.mubr.bf16.gmra.mrb[92].mxu1 %v4087_v45  ;;  %v8472_v53 = vadd.f32 %v8377_v9, %v4061_v59  ;;  %5782 = vmatprep.subr.bf16.mxu0 %v6434_v41  ;;  %v4116_v45 = vsub.s32 1, %v4111_v32 }
 0xc91   : > { %4272 = vmatprep.mubr.bf16.mxu1 %v6762_v34  ;;  %v8475_v4 = vadd.f32 %v8377_v9, %v4060_v11  ;;  %v6437_v9 = vld [vmem:[%s6987_s22 + $0x10] sm:$0xff]  }
 0xc92   : > { %9171 = vst [vmem:[#allocation20_spill] sm:$0xff] %v8472_v53  ;;  %v8498_v28 = vrot.slane %v4108_v24, %v4116_v45 }
 0xc93   : > { %9172 = vst [vmem:[#allocation21_spill] sm:$0xff] %v8475_v4  ;;  %v4091_v50 = vpack.c.bf16 %v8472_v53, %v8475_v4 }
 0xc98   : > { %4273 = vmatmul.mubr.bf16.gmra.mrb[96].mxu1 %v4088_v17 }
 0xc99   : > { %4282 = vmatprep.mubr.bf16.mxu1 %v6762_v34 }
 0xca0   : > { %4283 = vmatmul.mubr.bf16.gmra.mrb[100].mxu1 %v4089_v35 }
 0xca1   : > { %4292 = vmatprep.mubr.bf16.mxu1 %v6762_v34 }
 0xca8   : > { %4293 = vmatmul.mubr.bf16.gmra.mrb[104].mxu1 %v4090_v23 }
 0xca9   : > { %4302 = vmatprep.mubr.bf16.mxu1 %v6762_v34  ;;  %v6435_v34 = vld [vmem:[%s6987_s22 + $0x8] sm:$0xff]  }
 0xcaa   : > { %5783 = vmatpush3.bf16.msra.mxu0 %v6435_v34 }
 0xcab   : > { %5784 = vmatprep.subr.bf16.mxu0 %v6436_v31 }
 0xcae   : > { %5785 = vmatpush3.bf16.msra.mxu0 %v6437_v9 }
 0xcaf   : > { %5786 = vmatprep.subr.bf16.mxu0 %v6438_v37 }
 0xcb0   : > { %4303 = vmatmul.mubr.bf16.gmra.mrb[108].mxu1 %v4091_v50 }
 0xcb2   : > { %5787 = vmatpush3.bf16.msra.mxu0 %v6439_v25 }
 0xcb3   : > { %5788 = vmatprep.subr.bf16.mxu0 %v6440_v36 }
 0xcb6   : > { %5789 = vmatpush3.bf16.msra.mxu0 %v6441_v19 }
 0xcb7   : > { %5790 = vmatprep.subr.bf16.mxu0 %v6442_v6 }
 0xcba   : > { %5791 = vmatpush3.bf16.msra.mxu0 %v6443_v1 }
 0xcbb   : > { %5792 = vmatprep.subr.bf16.mxu0 %v6444_v3 }
 0xcbe   : > { %5793 = vmatpush3.bf16.msra.mxu0 %v6445_v18 }
 0xcbf   : > { %5794 = vmatprep.subr.bf16.mxu0 %v6446_v5 }
 0xcc2   : > { %5795 = vmatpush3.bf16.msra.mxu0 %v6447_v46 }
 0xd4b   : > { %v4234_v61 = vpop.f32.mrb[80].mxu1 }
 0xd4c   : > { %v8501_v10 = vadd.f32 %v4234_v61, %v8496_v39  ;;  %v4236_v8 = vpop.f32.mrb[81].mxu1 }
 0xd4d   : > { %v8504_v38 = vadd.f32 %v4236_v8, %v8498_v28  ;;  %v4238_v62 = vpop.f32.mrb[82].mxu1 }
 0xd4e   : > { %v4313_v14 = vmul.f32 %v8501_v10, %v8501_v10  ;;  %v8509_v44 = vadd.f32 %v4238_v62, %v8496_v39  ;;  %v4240_v17 = vpop.f32.mrb[83].mxu1 }
 0xd4f   : > { %v4314_v29 = vmul.f32 %v8504_v38, %v8504_v38  ;;  %v8514_v42 = vadd.f32 %v4240_v17, %v8498_v28 }
 0xd50   : > { %v4345_v16 = vmul.f32 %v4313_v14, %v8501_v10  ;;  %v4315_v30 = vmul.f32 %v8509_v44, %v8509_v44 }
 0xd51   : > { %v4346_v0 = vmul.f32 %v4314_v29, %v8504_v38  ;;  %v4316_v20 = vmul.f32 %v8514_v42, %v8514_v42 }
 0xd52   : > { %v4377_v35 = vmul.f32 0.044715, %v4345_v16  ;;  %v4347_v40 = vmul.f32 %v4315_v30, %v8509_v44 }
 0xd53   : > { %v4378_v43 = vmul.f32 0.044715, %v4346_v0  ;;  %v4348_v13 = vmul.f32 %v4316_v20, %v8514_v42  ;;  %v4244_v26 = vpop.f32.mrb[84].mxu1 }
 0xd54   : > { %v4409_v2 = vadd.f32 %v4377_v35, %v8501_v10  ;;  %v4379_v60 = vmul.f32 0.044715, %v4347_v40  ;;  %v8526_v23 = vadd.f32 %v4244_v26, %v8496_v39  ;;  %v4246_v59 = vpop.f32.mrb[85].mxu1 }
 0xd55   : > { %v4410_v11 = vadd.f32 %v4378_v43, %v8504_v38  ;;  %v4380_v50 = vmul.f32 0.044715, %v4348_v13  ;;  %v8530_v12 = vadd.f32 %v4246_v59, %v8498_v28  ;;  %v4248_v49 = vpop.f32.mrb[86].mxu1 }
 0xd56   : > { %v4441_v41 = vmul.f32 0.7978846, %v4409_v2  ;;  %v4411_v34 = vadd.f32 %v4379_v60, %v8509_v44  ;;  %v4317_v31 = vmul.f32 %v8526_v23, %v8526_v23  ;;  %v8536_v9 = vadd.f32 %v4248_v49, %v8496_v39  ;;  %v4250_v37 = vpop.f32.mrb[87].mxu1 }
 0xd57   : > { %v4442_v25 = vmul.f32 0.7978846, %v4410_v11  ;;  %v4412_v36 = vadd.f32 %v4380_v50, %v8514_v42  ;;  %v4318_v19 = vmul.f32 %v8530_v12, %v8530_v12  ;;  %v8542_v6 = vadd.f32 %v4250_v37, %v8498_v28 }
 0xd58   : > { %6608 = vtanh.f32 %v4441_v41  ;;  %v4443_v1 = vmul.f32 0.7978846, %v4411_v34  ;;  %v4349_v3 = vmul.f32 %v4317_v31, %v8526_v23  ;;  %v4319_v18 = vmul.f32 %v8536_v9, %v8536_v9 }
 0xd59   : > { %6610 = vtanh.f32 %v4442_v25  ;;  %v4444_v5 = vmul.f32 0.7978846, %v4412_v36  ;;  %v4350_v46 = vmul.f32 %v4318_v19, %v8530_v12  ;;  %v4320_v56 = vmul.f32 %v8542_v6, %v8542_v6 }
 0xd5a   : > { %6612 = vtanh.f32 %v4443_v1  ;;  %v4381_v32 = vmul.f32 0.044715, %v4349_v3  ;;  %v4351_v27 = vmul.f32 %v4319_v18, %v8536_v9 }
 0xd5b   : > { %v4382_v24 = vmul.f32 0.044715, %v4350_v46  ;;  %v4352_v45 = vmul.f32 %v4320_v56, %v8542_v6  ;;  %v4254_v61 = vpop.f32.mrb[88].mxu1  ;;  %6614 = vtanh.f32 %v4444_v5 }
 0xd5c   : > { %v4413_v8 = vadd.f32 %v4381_v32, %v8526_v23  ;;  %v4383_v62 = vmul.f32 0.044715, %v4351_v27  ;;  %v8554_v14 = vadd.f32 %v4254_v61, %v8496_v39  ;;  %v4256_v17 = vpop.f32.mrb[89].mxu1 }
 0xd5d   : > { %v4414_v29 = vadd.f32 %v4382_v24, %v8530_v12  ;;  %v4384_v16 = vmul.f32 0.044715, %v4352_v45  ;;  %v8558_v30 = vadd.f32 %v4256_v17, %v8498_v28  ;;  %v4258_v0 = vpop.f32.mrb[90].mxu1 }
 0xd5e   : > { %v4445_v20 = vmul.f32 0.7978846, %v4413_v8  ;;  %v4415_v35 = vadd.f32 %v4383_v62, %v8536_v9  ;;  %v4321_v40 = vmul.f32 %v8554_v14, %v8554_v14  ;;  %v8564_v43 = vadd.f32 %v4258_v0, %v8496_v39  ;;  %v4260_v13 = vpop.f32.mrb[91].mxu1 }
 0xd5f   : > { %v4446_v26 = vmul.f32 0.7978846, %v4414_v29  ;;  %v4416_v2 = vadd.f32 %v4384_v16, %v8542_v6  ;;  %v4322_v60 = vmul.f32 %v8558_v30, %v8558_v30  ;;  %v8570_v59 = vadd.f32 %v4260_v13, %v8498_v28 }
 0xd60   : > { %6616 = vtanh.f32 %v4445_v20  ;;  %v4447_v11 = vmul.f32 0.7978846, %v4415_v35  ;;  %v4353_v50 = vmul.f32 %v4321_v40, %v8554_v14  ;;  %v4323_v49 = vmul.f32 %v8564_v43, %v8564_v43 }
 0xd61   : > { %6618 = vtanh.f32 %v4446_v26  ;;  %v4448_v41 = vmul.f32 0.7978846, %v4416_v2  ;;  %v4354_v34 = vmul.f32 %v4322_v60, %v8558_v30  ;;  %v4324_v31 = vmul.f32 %v8570_v59, %v8570_v59 }
 0xd62   : > { %v6609_v37 = vpop.eup %6608  ;;  %6620 = vtanh.f32 %v4447_v11  ;;  %v4385_v25 = vmul.f32 0.044715, %v4353_v50  ;;  %v4355_v36 = vmul.f32 %v4323_v49, %v8564_v43 }
 0xd63   : > { %v6611_v19 = vpop.eup %6610  ;;  %v4505_v1 = vadd.f32 1.0, %v6609_v37  ;;  %6622 = vtanh.f32 %v4448_v41  ;;  %v4386_v3 = vmul.f32 0.044715, %v4354_v34  ;;  %v4356_v18 = vmul.f32 %v4324_v31, %v8570_v59  ;;  %v4264_v5 = vpop.f32.mrb[92].mxu1 }
 0xd64   : > { %v6613_v46 = vpop.eup %6612  ;;  %v4417_v56 = vadd.f32 %v4385_v25, %v8554_v14  ;;  %v4387_v32 = vmul.f32 0.044715, %v4355_v36  ;;  %v8582_v27 = vadd.f32 %v4264_v5, %v8496_v39  ;;  %v4266_v24 = vpop.f32.mrb[93].mxu1  ;;  %v4506_v45 = vadd.f32 1.0, %v6611_v19 }
 0xd65   : > { %v4537_v61 = vmul.f32 0.5, %v4505_v1  ;;  %v4507_v8 = vadd.f32 1.0, %v6613_v46  ;;  %v4418_v62 = vadd.f32 %v4386_v3, %v8558_v30  ;;  %v4388_v17 = vmul.f32 0.044715, %v4356_v18  ;;  %v4268_v29 = vpop.f32.mrb[94].mxu1  ;;  %v6615_v13 = vpop.eup %6614 }
 0xd66   : > { %v4449_v16 = vmul.f32 0.7978846, %v4417_v56  ;;  %v4419_v0 = vadd.f32 %v4387_v32, %v8564_v43  ;;  %v4325_v20 = vmul.f32 %v8582_v27, %v8582_v27  ;;  %v8589_v35 = vadd.f32 %v4266_v24, %v8498_v28  ;;  %v4270_v40 = vpop.f32.mrb[95].mxu1 }
 0xd67   : > { %v8592_v26 = vmul.f32 %v4537_v61, %v8501_v10  ;;  %v4539_v2 = vmul.f32 0.5, %v4507_v8  ;;  %v4450_v60 = vmul.f32 0.7978846, %v4418_v62  ;;  %v4420_v11 = vadd.f32 %v4388_v17, %v8570_v59 }
 0xd68   : > { %6624 = vtanh.f32 %v4449_v16  ;;  %v4451_v50 = vmul.f32 0.7978846, %v4419_v0  ;;  %v4357_v49 = vmul.f32 %v4325_v20, %v8582_v27  ;;  %v4326_v41 = vmul.f32 %v8589_v35, %v8589_v35 }
 0xd69   : > { %v8599_v34 = vmul.f32 %v4539_v2, %v8509_v44  ;;  %6626 = vtanh.f32 %v4450_v60  ;;  %v4452_v31 = vmul.f32 0.7978846, %v4420_v11  ;;  %v8602_v37 = vadd.f32 %v4268_v29, %v8496_v39 }
 0xd6a   : > { %v8604_v10 = vpop.eup %6616  ;;  %6628 = vtanh.f32 %v4451_v50  ;;  %v4389_v25 = vmul.f32 0.044715, %v4357_v49  ;;  %v4358_v36 = vmul.f32 %v4326_v41, %v8589_v35  ;;  %v8608_v19 = vadd.f32 %v4270_v40, %v8498_v28 }
 0xd6b   : > { %v8610_v1 = vpop.eup %6618  ;;  %6630 = vtanh.f32 %v4452_v31  ;;  %v4327_v3 = vmul.f32 %v8602_v37, %v8602_v37  ;;  %v4274_v18 = vpop.f32.mrb[96].mxu1  ;;  %v4508_v5 = vadd.f32 1.0, %v6615_v13  ;;  %v4538_v0 = vmul.f32 0.5, %v4506_v45 }
 0xd6c   : > { %v8616_v46 = vpop.eup %6620  ;;  %v4421_v56 = vadd.f32 %v4389_v25, %v8582_v27  ;;  %v4390_v32 = vmul.f32 0.044715, %v4358_v36  ;;  %v4328_v24 = vmul.f32 %v8608_v19, %v8608_v19  ;;  %v8622_v61 = vadd.f32 %v4274_v18, %v8496_v39  ;;  %v4276_v8 = vpop.f32.mrb[97].mxu1 }
 0xd6d   : > { %v8624_v62 = vpop.eup %6622  ;;  %v4359_v17 = vmul.f32 %v4327_v3, %v8602_v37  ;;  %v8628_v29 = vadd.f32 %v4276_v8, %v8498_v28  ;;  %v4278_v16 = vpop.f32.mrb[98].mxu1  ;;  %v4540_v20 = vmul.f32 0.5, %v4508_v5 }
 0xd6e   : > { %v4453_v40 = vmul.f32 0.7978846, %v4421_v56  ;;  %v4422_v13 = vadd.f32 %v4390_v32, %v8589_v35  ;;  %v4360_v2 = vmul.f32 %v4328_v24, %v8608_v19  ;;  %v4329_v60 = vmul.f32 %v8622_v61, %v8622_v61  ;;  %v4280_v11 = vpop.f32.mrb[99].mxu1 }
 0xd6f   : > { %v4391_v50 = vmul.f32 0.044715, %v4359_v17  ;;  %v4330_v49 = vmul.f32 %v8628_v29, %v8628_v29  ;;  %v8637_v41 = vadd.f32 %v4278_v16, %v8496_v39  ;;  %v8640_v31 = vadd.f32 %v4280_v11, %v8498_v28 }
 0xd70   : > { %6632 = vtanh.f32 %v4453_v40  ;;  %v4454_v45 = vmul.f32 0.7978846, %v4422_v13  ;;  %v4392_v25 = vmul.f32 0.044715, %v4360_v2  ;;  %v4361_v36 = vmul.f32 %v4329_v60, %v8622_v61 }
 0xd71   : > { %v4423_v3 = vadd.f32 %v4391_v50, %v8602_v37  ;;  %v4362_v18 = vmul.f32 %v4330_v49, %v8628_v29  ;;  %v4331_v5 = vmul.f32 %v8637_v41, %v8637_v41  ;;  %v4332_v56 = vmul.f32 %v8640_v31, %v8640_v31 }
 0xd72   : > { %v8649_v32 = vpop.eup %6624  ;;  %6634 = vtanh.f32 %v4454_v45  ;;  %v4424_v24 = vadd.f32 %v4392_v25, %v8608_v19  ;;  %v4393_v8 = vmul.f32 0.044715, %v4361_v36  ;;  %v4570_v17 = vmul.f32 %v4538_v0, %v8504_v38 }
 0xd73   : > { %v8653_v16 = vpop.eup %6626  ;;  %v4455_v40 = vmul.f32 0.7978846, %v4423_v3  ;;  %v4394_v13 = vmul.f32 0.044715, %v4362_v18  ;;  %v4363_v2 = vmul.f32 %v4331_v5, %v8637_v41  ;;  %v4364_v60 = vmul.f32 %v4332_v56, %v8640_v31  ;;  %v4284_v11 = vpop.f32.mrb[100].mxu1 }
 0xd74   : > { %v8657_v50 = vpop.eup %6628  ;;  %v4456_v49 = vmul.f32 0.7978846, %v4424_v24  ;;  %v4425_v44 = vadd.f32 %v4393_v8, %v8622_v61  ;;  %v4572_v45 = vmul.f32 %v4540_v20, %v8514_v42  ;;  %v8662_v25 = vadd.f32 %v4284_v11, %v8496_v39  ;;  %v4286_v38 = vpop.f32.mrb[101].mxu1 }
 0xd75   : > { %v8664_v0 = vpop.eup %6630  ;;  %6636 = vtanh.f32 %v4455_v40  ;;  %v4426_v36 = vadd.f32 %v4394_v13, %v8628_v29  ;;  %v4395_v3 = vmul.f32 0.044715, %v4363_v2  ;;  %v4396_v18 = vmul.f32 0.044715, %v4364_v60  ;;  %v4288_v5 = vpop.f32.mrb[102].mxu1 }
 0xd76   : > { %6638 = vtanh.f32 %v4456_v49  ;;  %v4457_v56 = vmul.f32 0.7978846, %v4425_v44  ;;  %v4602_v53 = vpack.c.bf16 %v4572_v45, %v4570_v17  ;;  %v4333_v24 = vmul.f32 %v8662_v25, %v8662_v25  ;;  %v4290_v8 = vpop.f32.mrb[103].mxu1 }
 0xd77   : > { %v4458_v42 = vmul.f32 0.7978846, %v4426_v36  ;;  %v4427_v20 = vadd.f32 %v4395_v3, %v8637_v41  ;;  %v4428_v11 = vadd.f32 %v4396_v18, %v8640_v31  ;;  %v8672_v4 = vadd.f32 %v4286_v38, %v8498_v28 }
 0xd78   : > { %6640 = vtanh.f32 %v4457_v56  ;;  %4784 = vmatprep.mubr.bf16.mxu0 %v4602_v53  ;;  %v4365_v40 = vmul.f32 %v4333_v24, %v8662_v25  ;;  %v8676_v13 = vadd.f32 %v4288_v5, %v8496_v39  ;;  %v8679_v44 = vadd.f32 %v4290_v8, %v8498_v28 }
 0xd79   : > { %6642 = vtanh.f32 %v4458_v42  ;;  %v4459_v17 = vmul.f32 0.7978846, %v4427_v20  ;;  %v4460_v2 = vmul.f32 0.7978846, %v4428_v11  ;;  %v9174_v60 = vpack.c.bf16 %v8599_v34, %v8592_v26 }
 0xd7a   : > { %v4334_v49 = vmul.f32 %v8672_v4, %v8672_v4  ;;  %v8686_v45 = vpop.eup %6632  ;;  %v4397_v53 = vmul.f32 0.044715, %v4365_v40  ;;  %v4335_v38 = vmul.f32 %v8676_v13, %v8676_v13  ;;  %v4336_v36 = vmul.f32 %v8679_v44, %v8679_v44 }
 0xd7b   : > { %4785 = vmatmul.mubr.bf16.vlgmr.msra.gmra.mrb[96].mxu0 %v9174_v60  ;;  %v4510_v3 = vadd.f32 1.0, %v8610_v1  ;;  %6644 = vtanh.f32 %v4459_v17  ;;  %v4512_v26 = vadd.f32 1.0, %v8624_v62  ;;  %v4509_v34 = vadd.f32 1.0, %v8604_v10  ;;  %v4294_v5 = vpop.f32.mrb[104].mxu1 }
 0xd7c   : > { %v4366_v18 = vmul.f32 %v4334_v49, %v8672_v4  ;;  %v8696_v56 = vpop.eup %6634  ;;  %6646 = vtanh.f32 %v4460_v2  ;;  %v4429_v24 = vadd.f32 %v4397_v53, %v8662_v25  ;;  %v4367_v8 = vmul.f32 %v4335_v38, %v8676_v13  ;;  %v4296_v20 = vpop.f32.mrb[105].mxu1 }
 0xd7d   : > { %v4368_v42 = vmul.f32 %v4336_v36, %v8679_v44  ;;  %v4542_v1 = vmul.f32 0.5, %v4510_v3  ;;  %v4544_v40 = vmul.f32 0.5, %v4512_v26  ;;  %v4511_v17 = vadd.f32 1.0, %v8616_v46  ;;  %v4298_v60 = vpop.f32.mrb[106].mxu1 }
 0xd7e   : > { %v4398_v11 = vmul.f32 0.044715, %v4366_v18  ;;  %v4461_v62 = vmul.f32 0.7978846, %v4429_v24  ;;  %v4399_v49 = vmul.f32 0.044715, %v4367_v8  ;;  %v8703_v58 = vadd.f32 %v4294_v5, %v8496_v39 }
 0xd7f   : > { %v4400_v10 = vmul.f32 0.044715, %v4368_v42  ;;  %v8705_v2 = vpop.eup %6636  ;;  %v4574_v38 = vmul.f32 %v4542_v1, %v8530_v12  ;;  %v4576_v36 = vmul.f32 %v4544_v40, %v8542_v6  ;;  %v4541_v18 = vmul.f32 0.5, %v4509_v34  ;;  %v4300_v3 = vpop.f32.mrb[107].mxu1 }
 0xd80   : > { %v4430_v53 = vadd.f32 %v4398_v11, %v8672_v4  ;;  %v8710_v26 = vpop.eup %6638  ;;  %6648 = vtanh.f32 %v4461_v62  ;;  %v4431_v46 = vadd.f32 %v4399_v49, %v8676_v13  ;;  %v4543_v8 = vmul.f32 0.5, %v4511_v17 }
 0xd81   : > { %v4432_v24 = vadd.f32 %v4400_v10, %v8679_v44  ;;  %v4604_v42 = vpack.c.bf16 %v4576_v36, %v4574_v38  ;;  %v4573_v33 = vmul.f32 %v4541_v18, %v8526_v23  ;;  %v4337_v11 = vmul.f32 %v8703_v58, %v8703_v58 }
 0xd82   : > { %v4462_v5 = vmul.f32 0.7978846, %v4430_v53  ;;  %v8717_v12 = vpop.eup %6640  ;;  %v4463_v6 = vmul.f32 0.7978846, %v4431_v46  ;;  %v4575_v1 = vmul.f32 %v4543_v8, %v8536_v9  ;;  %v8721_v40 = vadd.f32 %v4296_v20, %v8498_v28 }
 0xd83   : > { %v4464_v34 = vmul.f32 0.7978846, %v4432_v24  ;;  %v8723_v62 = vpop.eup %6642  ;;  %4792 = vmatprep.mubr.bf16.mxu0 %v4604_v42  ;;  %v4369_v17 = vmul.f32 %v4337_v11, %v8703_v58  ;;  %v8727_v23 = vadd.f32 %v4298_v60, %v8496_v39  ;;  %v8730_v49 = vadd.f32 %v4300_v3, %v8498_v28  ;;  %v4304_v10 = vpop.f32.mrb[108].mxu1 }
 0xd84   : > { %6650 = vtanh.f32 %v4462_v5  ;;  %v4603_v53 = vpack.c.bf16 %v4575_v1, %v4573_v33  ;;  %v4338_v9 = vmul.f32 %v8721_v40, %v8721_v40  ;;  %v4514_v20 = vadd.f32 1.0, %v8653_v16  ;;  %v4306_v38 = vpop.f32.mrb[109].mxu1 }
 0xd85   : > { %6652 = vtanh.f32 %v4463_v6  ;;  %v8735_v36 = vpop.eup %6644  ;;  %v4401_v18 = vmul.f32 0.044715, %v4369_v17  ;;  %v4339_v60 = vmul.f32 %v8727_v23, %v8727_v23  ;;  %v4340_v3 = vmul.f32 %v8730_v49, %v8730_v49  ;;  %v4308_v46 = vpop.f32.mrb[110].mxu1 }
 0xd86   : > { %6654 = vtanh.f32 %v4464_v34  ;;  %v8741_v24 = vpop.eup %6646  ;;  %4793 = vmatmul.mubr.bf16.gmra.mrb[100].mxu0 %v4603_v53  ;;  %v4370_v33 = vmul.f32 %v4338_v9, %v8721_v40  ;;  %v4516_v8 = vadd.f32 1.0, %v8664_v0  ;;  %v4546_v16 = vmul.f32 0.5, %v4514_v20  ;;  %v4310_v42 = vpop.f32.mrb[111].mxu1 }
 0xd87   : > { %v4513_v5 = vadd.f32 1.0, %v8649_v32  ;;  %v4433_v11 = vadd.f32 %v4401_v18, %v8703_v58  ;;  %v4371_v6 = vmul.f32 %v4339_v60, %v8727_v23  ;;  %v4372_v34 = vmul.f32 %v4340_v3, %v8730_v49 }
 0xd88   : > { %v4515_v1 = vadd.f32 1.0, %v8657_v50  ;;  %v4402_v17 = vmul.f32 0.044715, %v4370_v33  ;;  %v4548_v22 = vmul.f32 0.5, %v4516_v8  ;;  %v4578_v53 = vmul.f32 %v4546_v16, %v8558_v30 }
 0xd89   : > { %v4545_v47 = vmul.f32 0.5, %v4513_v5  ;;  %v4465_v9 = vmul.f32 0.7978846, %v4433_v11  ;;  %v4403_v63 = vmul.f32 0.044715, %v4371_v6  ;;  %v8752_v20 = vadd.f32 %v4304_v10, %v8496_v39 }
 0xd8a   : > { %v4404_v0 = vmul.f32 0.044715, %v4372_v34  ;;  %v8754_v32 = vpop.eup %6648  ;;  %v4434_v18 = vadd.f32 %v4402_v17, %v8721_v40  ;;  %v4580_v60 = vmul.f32 %v4548_v22, %v8570_v59  ;;  %v4547_v3 = vmul.f32 0.5, %v4515_v1 }
 0xd8b   : > { %v4577_v50 = vmul.f32 %v4545_v47, %v8554_v14  ;;  %6656 = vtanh.f32 %v4465_v9  ;;  %v4435_v33 = vadd.f32 %v4403_v63, %v8727_v23  ;;  %v4341_v8 = vmul.f32 %v8752_v20, %v8752_v20 }
 0xd8c   : > { %v4436_v30 = vadd.f32 %v4404_v0, %v8730_v49  ;;  %v4466_v16 = vmul.f32 0.7978846, %v4434_v18  ;;  %v4606_v10 = vpack.c.bf16 %v4580_v60, %v4578_v53  ;;  %v4579_v5 = vmul.f32 %v4547_v3, %v8564_v43 }
 0xd8d   : > { %v8765_v11 = vadd.f32 %v4306_v38, %v8498_v28  ;;  %v4467_v22 = vmul.f32 0.7978846, %v4435_v33  ;;  %v4373_v47 = vmul.f32 %v4341_v8, %v8752_v20  ;;  %v8771_v63 = vadd.f32 %v4308_v46, %v8496_v39 }
 0xd8e   : > { %v8767_v6 = vpop.eup %6650  ;;  %v4468_v59 = vmul.f32 0.7978846, %v4436_v30  ;;  %6658 = vtanh.f32 %v4466_v16  ;;  %4800 = vmatprep.mubr.bf16.mxu0 %v4606_v10  ;;  %v4605_v34 = vpack.c.bf16 %v4579_v5, %v4577_v50  ;;  %v8778_v38 = vadd.f32 %v4310_v42, %v8498_v28 }
 0xd8f   : > { %v8773_v14 = vpop.eup %6652  ;;  %v4342_v43 = vmul.f32 %v8765_v11, %v8765_v11  ;;  %6660 = vtanh.f32 %v4467_v22  ;;  %v4405_v17 = vmul.f32 0.044715, %v4373_v47  ;;  %v4343_v53 = vmul.f32 %v8771_v63, %v8771_v63 }
 0xd90   : > { %v6655_v1 = vpop.eup %6654  ;;  %v4518_v39 = vadd.f32 1.0, %v8696_v56  ;;  %6662 = vtanh.f32 %v4468_v59  ;;  %4801 = vmatmul.mubr.bf16.gmra.mrb[104].mxu0 %v4605_v34  ;;  %v4344_v9 = vmul.f32 %v8778_v38, %v8778_v38  ;;  %v4520_v0 = vadd.f32 1.0, %v8710_v26 }
 0xd91   : > { %v4374_v46 = vmul.f32 %v4342_v43, %v8765_v11  ;;  %v4437_v28 = vadd.f32 %v4405_v17, %v8752_v20  ;;  %v4375_v42 = vmul.f32 %v4343_v53, %v8771_v63  ;;  %v4517_v60 = vadd.f32 1.0, %v8686_v45 }
 0xd92   : > { %v4550_v18 = vmul.f32 0.5, %v4518_v39  ;;  %v4376_v50 = vmul.f32 %v4344_v9, %v8778_v38  ;;  %v4552_v56 = vmul.f32 0.5, %v4520_v0  ;;  %v4519_v33 = vadd.f32 1.0, %v8705_v2 }
 0xd93   : > { %v4406_v3 = vmul.f32 0.044715, %v4374_v46  ;;  %v4469_v30 = vmul.f32 0.7978846, %v4437_v28  ;;  %v4407_v8 = vmul.f32 0.044715, %v4375_v42 }
 0xd94   : > { %v4582_v16 = vmul.f32 %v4550_v18, %v8589_v35  ;;  %v4549_v10 = vmul.f32 0.5, %v4517_v60  ;;  %v4408_v5 = vmul.f32 0.044715, %v4376_v50  ;;  %v4584_v22 = vmul.f32 %v4552_v56, %v8608_v19 }
 0xd95   : > { %v4438_v26 = vadd.f32 %v4406_v3, %v8765_v11  ;;  %v4551_v59 = vmul.f32 0.5, %v4519_v33  ;;  %v6657_v47 = vpop.eup %6656  ;;  %6664 = vtanh.f32 %v4469_v30  ;;  %v4439_v45 = vadd.f32 %v4407_v8, %v8771_v63 }
 0xd96   : > { %v4581_v34 = vmul.f32 %v4549_v10, %v8582_v27  ;;  %v4522_v43 = vadd.f32 1.0, %v8723_v62  ;;  %v4440_v17 = vadd.f32 %v4408_v5, %v8778_v38  ;;  %v4608_v53 = vpack.c.bf16 %v4584_v22, %v4582_v16 }
 0xd97   : > { %v4470_v2 = vmul.f32 0.7978846, %v4438_v26  ;;  %v4583_v35 = vmul.f32 %v4551_v59, %v8602_v37  ;;  %v4471_v39 = vmul.f32 0.7978846, %v4439_v45  ;;  %v4524_v46 = vadd.f32 1.0, %v8741_v24 }
 0xd98   : > { %v4554_v9 = vmul.f32 0.5, %v4522_v43  ;;  %v4521_v19 = vadd.f32 1.0, %v8717_v12  ;;  %v6659_v0 = vpop.eup %6658  ;;  %v4472_v28 = vmul.f32 0.7978846, %v4440_v17  ;;  %4808 = vmatprep.mubr.bf16.mxu0 %v4608_v53  ;;  %v4523_v27 = vadd.f32 1.0, %v8735_v36 }
 0xd99   : > { %6666 = vtanh.f32 %v4470_v2  ;;  %v4607_v42 = vpack.c.bf16 %v4583_v35, %v4581_v34  ;;  %v6661_v62 = vpop.eup %6660  ;;  %v4556_v18 = vmul.f32 0.5, %v4524_v46  ;;  %v4526_v50 = vadd.f32 1.0, %v8767_v6 }
 0xd9a   : > { %6668 = vtanh.f32 %v4471_v39  ;;  %v4586_v60 = vmul.f32 %v4554_v9, %v8628_v29  ;;  %v4553_v3 = vmul.f32 0.5, %v4521_v19  ;;  %v6663_v37 = vpop.eup %6662  ;;  %v4555_v24 = vmul.f32 0.5, %v4523_v27 }
 0xd9b   : > { %6670 = vtanh.f32 %v4472_v28  ;;  %4809 = vmatmul.mubr.bf16.gmra.mrb[108].mxu0 %v4607_v42  ;;  %v4528_v12 = vadd.f32 1.0, %v6655_v1  ;;  %v4588_v56 = vmul.f32 %v4556_v18, %v8640_v31  ;;  %v4525_v30 = vadd.f32 1.0, %v8754_v32 }
 0xd9c   : > { %v4585_v33 = vmul.f32 %v4553_v3, %v8622_v61  ;;  %v4527_v36 = vadd.f32 1.0, %v8773_v14  ;;  %v4587_v8 = vmul.f32 %v4555_v24, %v8637_v41  ;;  %v4558_v16 = vmul.f32 0.5, %v4526_v50 }
 0xd9d   : > { %v4560_v29 = vmul.f32 0.5, %v4528_v12  ;;  %v4530_v10 = vadd.f32 1.0, %v6659_v0  ;;  %v4610_v26 = vpack.c.bf16 %v4588_v56, %v4586_v60  ;;  %v4557_v5 = vmul.f32 0.5, %v4525_v30  ;;  %v8827_v12 = vld [vmem:[%s936_s27] ss:$0 sm:$0xff] }
 0xd9e   : > { %v4559_v22 = vmul.f32 0.5, %v4527_v36  ;;  %v4532_v59 = vadd.f32 1.0, %v6663_v37  ;;  %v4609_v45 = vpack.c.bf16 %v4587_v8, %v4585_v33  ;;  %v4590_v6 = vmul.f32 %v4558_v16, %v8672_v4 }
 0xd9f   : > { %v4592_v31 = vmul.f32 %v4560_v29, %v8679_v44  ;;  %v4562_v1 = vmul.f32 0.5, %v4530_v10  ;;  %v6665_v61 = vpop.eup %6664  ;;  %4816 = vmatprep.mubr.bf16.mxu0 %v4610_v26  ;;  %v4589_v32 = vmul.f32 %v4557_v5, %v8662_v25  ;;  %v4529_v34 = vadd.f32 1.0, %v6657_v47 }
 0xda0   : > { %v4591_v14 = vmul.f32 %v4559_v22, %v8676_v13  ;;  %v4564_v41 = vmul.f32 0.5, %v4532_v59  ;;  %v4531_v2 = vadd.f32 1.0, %v6661_v62  ;;  %v4533_v17 = vadd.f32 1.0, %v6665_v61 }
 0xda1   : > { %v4612_v43 = vpack.c.bf16 %v4592_v31, %v4590_v6  ;;  %v4594_v35 = vmul.f32 %v4562_v1, %v8721_v40  ;;  %v4561_v4 = vmul.f32 0.5, %v4529_v34 }
 0xda2   : > { %v4611_v53 = vpack.c.bf16 %v4591_v14, %v4589_v32  ;;  %v4596_v39 = vmul.f32 %v4564_v41, %v8730_v49  ;;  %v4563_v44 = vmul.f32 0.5, %v4531_v2  ;;  %v4565_v42 = vmul.f32 0.5, %v4533_v17 }
 0xda3   : > { %v6667_v46 = vpop.eup %6666  ;;  %4817 = vmatmul.mubr.bf16.gmra.mrb[112].mxu0 %v4609_v45  ;;  %v4593_v13 = vmul.f32 %v4561_v4, %v8703_v58 }
 0xda4   : > { %v6669_v9 = vpop.eup %6668  ;;  %4824 = vmatprep.mubr.bf16.mxu0 %v4612_v43  ;;  %v4614_v19 = vpack.c.bf16 %v4596_v39, %v4594_v35  ;;  %v4534_v25 = vadd.f32 1.0, %v6667_v46  ;;  %v4595_v47 = vmul.f32 %v4563_v44, %v8727_v23  ;;  %v4597_v60 = vmul.f32 %v4565_v42, %v8752_v20 }
 0xda5   : > { %v6671_v0 = vpop.eup %6670  ;;  %v4535_v28 = vadd.f32 1.0, %v6669_v9 }
 0xda6   : > { %v4536_v27 = vadd.f32 1.0, %v6671_v0  ;;  %v4566_v62 = vmul.f32 0.5, %v4534_v25  ;;  %v4613_v40 = vpack.c.bf16 %v4595_v47, %v4593_v13 }
 0xda7   : > { %v4567_v49 = vmul.f32 0.5, %v4535_v28 }
 0xda8   : > { %v4568_v18 = vmul.f32 0.5, %v4536_v27  ;;  %v4598_v37 = vmul.f32 %v4566_v62, %v8765_v11  ;;  %v9175_v27 = vld [vmem:[#allocation15_spill] sm:$0xff] }
 0xda9   : > { %v4599_v3 = vmul.f32 %v4567_v49, %v8771_v63 }
 0xdaa   : > { %v4600_v24 = vmul.f32 %v4568_v18, %v8778_v38 }
 0xdab   : > { %4825 = vmatmul.mubr.bf16.gmra.mrb[116].mxu0 %v4611_v53  ;;  %v4615_v58 = vpack.c.bf16 %v4599_v3, %v4597_v60 }
 0xdac   : > { %4832 = vmatprep.mubr.bf16.mxu0 %v4614_v19  ;;  %v4616_v23 = vpack.c.bf16 %v4600_v24, %v4598_v37  ;;  %v9176_v24 = vld [vmem:[#allocation17_spill] sm:$0xff] }
 0xdb3   : > { %4833 = vmatmul.mubr.bf16.gmra.mrb[120].mxu0 %v4613_v40 }
 0xdb4   : > { %4840 = vmatprep.mubr.bf16.mxu0 %v4616_v23  ;;  %v9177_v23 = vld [vmem:[#allocation16_spill] sm:$0xff] }
 0xdbb   : > { %4841 = vmatmul.mubr.bf16.gmra.mrb[124].mxu0 %v4615_v58 }
 0xe4e   : > { %v5796_v50 = vpop.f32.mrb[96].mxu0 }
 0xe4f   : > { %v5797_v20 = vpop.f32.mrb[97].mxu0 }
 0xe50   : > { %v5798_v63 = vadd.f32 %v5797_v20, %v5796_v50  ;;  %v5799_v56 = vpop.f32.mrb[98].mxu0 }
 0xe51   : > { %v5800_v11 = vpop.f32.mrb[99].mxu0 }
 0xe52   : > { %v4787_v38 = vadd.f32 %v5798_v63, %v8827_v12  ;;  %v5801_v33 = vadd.f32 %v5800_v11, %v5799_v56 }
 0xe54   : > { %v4790_v30 = vadd.f32 %v5801_v33, %v8827_v12  ;;  %v8832_v36 = vadd.f32 %v4787_v38, %v8381_v52 }
 0xe56   : > { %4867 = vadd.xlane.f32.xlu0 %v8832_v36  ;;  %v8836_v8 = vadd.f32 %v4790_v30, %v8384_v15 }
 0xe58   : > { %4869 = vadd.xlane.f32.xlu1 %v8836_v8 }
 0xe59   : > { %v5802_v16 = vpop.f32.mrb[100].mxu0 }
 0xe5a   : > { %v5803_v29 = vpop.f32.mrb[101].mxu0 }
 0xe5b   : > { %v5804_v10 = vadd.f32 %v5803_v29, %v5802_v16  ;;  %v5805_v26 = vpop.f32.mrb[102].mxu0  ;;  %v9178_v16 = vld [vmem:[#allocation19_spill] sm:$0xff] }
 0xe5c   : > { %v5806_v5 = vpop.f32.mrb[103].mxu0 }
 0xe5d   : > { %v4795_v22 = vadd.f32 %v5804_v10, %v8827_v12  ;;  %v5807_v59 = vadd.f32 %v5806_v5, %v5805_v26  ;;  %v9179_v26 = vld [vmem:[#allocation18_spill] sm:$0xff] }
 0xe5f   : > { %v4798_v45 = vadd.f32 %v5807_v59, %v8827_v12  ;;  %v8842_v52 = vadd.f32 %v4795_v22, %v8398_v54 }
 0xe61   : > { %4871 = vadd.xlane.f32.xlu0 %v8842_v52  ;;  %v8846_v15 = vadd.f32 %v4798_v45, %v8394_v48 }
 0xe63   : > { %v5808_v6 = vpop.f32.mrb[104].mxu0  ;;  %4873 = vadd.xlane.f32.xlu1 %v8846_v15 }
 0xe64   : > { %v5809_v31 = vpop.f32.mrb[105].mxu0 }
 0xe65   : > { %v5810_v1 = vadd.f32 %v5809_v31, %v5808_v6  ;;  %v5811_v61 = vpop.f32.mrb[106].mxu0 }
 0xe66   : > { %v5812_v32 = vpop.f32.mrb[107].mxu0 }
 0xe67   : > { %v4803_v14 = vadd.f32 %v5810_v1, %v8827_v12  ;;  %v5813_v41 = vadd.f32 %v5812_v32, %v5811_v61  ;;  %v9180_v32 = vld [vmem:[#allocation21_spill] sm:$0xff] }
 0xe69   : > { %v4806_v34 = vadd.f32 %v5813_v41, %v8827_v12  ;;  %v8852_v54 = vadd.f32 %v4803_v14, %v8411_v7  ;;  %v9181_v41 = vld [vmem:[#allocation20_spill] sm:$0xff] }
 0xe6b   : > { %4875 = vadd.xlane.f32.xlu0 %v8852_v54  ;;  %v8856_v48 = vadd.f32 %v4806_v34, %v8407_v57 }
 0xe6d   : > { %4877 = vadd.xlane.f32.xlu1 %v8856_v48 }
 0xe6e   : > { %v5814_v43 = vpop.f32.mrb[108].mxu0 }
 0xe6f   : > { %v5815_v2 = vpop.f32.mrb[109].mxu0 }
 0xe70   : > { %v5816_v17 = vadd.f32 %v5815_v2, %v5814_v43  ;;  %v5817_v53 = vpop.f32.mrb[110].mxu0 }
 0xe71   : > { %v5818_v35 = vpop.f32.mrb[111].mxu0 }
 0xe72   : > { %v4811_v39 = vadd.f32 %v5816_v17, %v8827_v12  ;;  %v5819_v4 = vadd.f32 %v5818_v35, %v5817_v53 }
 0xe74   : > { %v4814_v46 = vadd.f32 %v5819_v4, %v8827_v12  ;;  %v8862_v7 = vadd.f32 %v4811_v39, %v8424_v55 }
 0xe76   : > { %4879 = vadd.xlane.f32.xlu0 %v8862_v7  ;;  %v5820_v44 = vpop.f32.mrb[112].mxu0  ;;  %v8866_v57 = vadd.f32 %v4814_v46, %v8420_v51 }
 0xe77   : > { %v5821_v9 = vpop.f32.mrb[113].mxu0 }
 0xe78   : > { %v5822_v19 = vadd.f32 %v5821_v9, %v5820_v44  ;;  %4881 = vadd.xlane.f32.xlu1 %v8866_v57  ;;  %v5823_v25 = vpop.f32.mrb[114].mxu0 }
 0xe79   : > { %v5824_v0 = vpop.f32.mrb[115].mxu0 }
 0xe7a   : > { %v4819_v13 = vadd.f32 %v5822_v19, %v8827_v12  ;;  %v5825_v47 = vadd.f32 %v5824_v0, %v5823_v25 }
 0xe7c   : > { %v4822_v28 = vadd.f32 %v5825_v47, %v8827_v12  ;;  %v8872_v55 = vadd.f32 %v4819_v13, %v8437_v21 }
 0xe7e   : > { %4883 = vadd.xlane.f32.xlu0 %v8872_v55  ;;  %v5826_v42 = vpop.f32.mrb[116].mxu0  ;;  %v8876_v51 = vadd.f32 %v4822_v28, %v9175_v27 }
 0xe7f   : > { %v5827_v62 = vpop.f32.mrb[117].mxu0 }
 0xe80   : > { %v5828_v40 = vadd.f32 %v5827_v62, %v5826_v42  ;;  %4885 = vadd.xlane.f32.xlu1 %v8876_v51  ;;  %v5829_v49 = vpop.f32.mrb[118].mxu0 }
 0xe81   : > { %v5830_v18 = vpop.f32.mrb[119].mxu0 }
 0xe82   : > { %v4827_v60 = vadd.f32 %v5828_v40, %v8827_v12  ;;  %v5831_v3 = vadd.f32 %v5830_v18, %v5829_v49 }
 0xe84   : > { %v4830_v37 = vadd.f32 %v5831_v3, %v8827_v12  ;;  %v8882_v21 = vadd.f32 %v4827_v60, %v9176_v24 }
 0xe86   : > { %4887 = vadd.xlane.f32.xlu0 %v8882_v21  ;;  %v5832_v58 = vpop.f32.mrb[120].mxu0  ;;  %v8886_v50 = vadd.f32 %v4830_v37, %v9177_v23 }
 0xe87   : > { %v5833_v20 = vpop.f32.mrb[121].mxu0 }
 0xe88   : > { %v5834_v63 = vadd.f32 %v5833_v20, %v5832_v58  ;;  %4889 = vadd.xlane.f32.xlu1 %v8886_v50  ;;  %v5835_v56 = vpop.f32.mrb[122].mxu0 }
 0xe89   : > { %v5836_v11 = vpop.f32.mrb[123].mxu0 }
 0xe8a   : > { %v4835_v38 = vadd.f32 %v5834_v63, %v8827_v12  ;;  %v5837_v33 = vadd.f32 %v5836_v11, %v5835_v56 }
 0xe8c   : > { %v4838_v30 = vadd.f32 %v5837_v33, %v8827_v12  ;;  %v8892_v29 = vadd.f32 %v4835_v38, %v9178_v16 }
 0xe8e   : > { %4891 = vadd.xlane.f32.xlu0 %v8892_v29  ;;  %v5838_v10 = vpop.f32.mrb[124].mxu0  ;;  %v8896_v5 = vadd.f32 %v4838_v30, %v9179_v26 }
 0xe8f   : > { %v5839_v22 = vpop.f32.mrb[125].mxu0 }
 0xe90   : > { %v5840_v59 = vadd.f32 %v5839_v22, %v5838_v10  ;;  %4893 = vadd.xlane.f32.xlu1 %v8896_v5  ;;  %v5841_v45 = vpop.f32.mrb[126].mxu0 }
 0xe91   : > { %v5842_v6 = vpop.f32.mrb[127].mxu0 }
 0xe92   : > { %v4843_v31 = vadd.f32 %v5840_v59, %v8827_v12  ;;  %v5843_v1 = vadd.f32 %v5842_v6, %v5841_v45 }
 0xe94   : > { %v4846_v61 = vadd.f32 %v5843_v1, %v8827_v12  ;;  %v8902_v14 = vadd.f32 %v4843_v31, %v9180_v32 }
 0xe96   : > { %4895 = vadd.xlane.f32.xlu0 %v8902_v14  ;;  %v8906_v34 = vadd.f32 %v4846_v61, %v9181_v41 }
 0xe98   : > { %4897 = vadd.xlane.f32.xlu1 %v8906_v34 }
 0xee3   : > { %v4868_v43 = vpop.xlane.xlu0 %4867 }
 0xee4   : > { %v4899_v2 = vmul.f32 0.0078125, %v4868_v43 }
 0xee5   : > { %v4870_v17 = vpop.xlane.xlu1 %4869 }
 0xee6   : > { %v8910_v53 = vsub.f32 %v8832_v36, %v4899_v2  ;;  %v4900_v35 = vmul.f32 0.0078125, %v4870_v17 }
 0xee8   : > { %v8913_v39 = vsub.f32 %v8836_v8, %v4900_v35  ;;  %v4931_v12 = vmul.f32 %v8910_v53, %v8910_v53 }
 0xeea   : > { %4947 = vadd.xlane.f32.xlu0 %v4931_v12  ;;  %v4932_v4 = vmul.f32 %v8913_v39, %v8913_v39 }
 0xeec   : > { %4949 = vadd.xlane.f32.xlu1 %v4932_v4 }
 0xeee   : > { %v4872_v46 = vpop.xlane.xlu0 %4871 }
 0xeef   : > { %v4901_v44 = vmul.f32 0.0078125, %v4872_v46 }
 0xef0   : > { %v4874_v9 = vpop.xlane.xlu1 %4873 }
 0xef1   : > { %v8920_v19 = vsub.f32 %v8842_v52, %v4901_v44  ;;  %v4902_v36 = vmul.f32 0.0078125, %v4874_v9 }
 0xef3   : > { %v8923_v25 = vsub.f32 %v8846_v15, %v4902_v36  ;;  %v4933_v8 = vmul.f32 %v8920_v19, %v8920_v19  ;;  %v8994_v36 = vld [vmem:[%s939_s10] ss:$0 sm:$0xff] }
 0xef5   : > { %4951 = vadd.xlane.f32.xlu0 %v4933_v8  ;;  %v4934_v0 = vmul.f32 %v8923_v25, %v8923_v25 }
 0xef7   : > { %4953 = vadd.xlane.f32.xlu1 %v4934_v0 }
 0xef8   : > { %v4876_v13 = vpop.xlane.xlu0 %4875 }
 0xef9   : > { %v4903_v47 = vmul.f32 0.0078125, %v4876_v13 }
 0xefa   : > { %v4878_v28 = vpop.xlane.xlu1 %4877 }
 0xefb   : > { %v8930_v42 = vsub.f32 %v8852_v54, %v4903_v47  ;;  %v4904_v52 = vmul.f32 0.0078125, %v4878_v28 }
 0xefd   : > { %v8933_v27 = vsub.f32 %v8856_v48, %v4904_v52  ;;  %v4935_v15 = vmul.f32 %v8930_v42, %v8930_v42  ;;  %v9002_v52 = vld [vmem:[%s942_s14] ss:$0 sm:$0xff]  ;;  %s9182_s14 = sld [smem:[#allocation4_spill]] }
 0xeff   : > { %4955 = vadd.xlane.f32.xlu0 %v4935_v15  ;;  %v4936_v62 = vmul.f32 %v8933_v27, %v8933_v27 }
 0xf01   : > { %4957 = vadd.xlane.f32.xlu1 %v4936_v62 }
 0xf03   : > { %v4880_v40 = vpop.xlane.xlu0 %4879  ;;  %p5587_p8 = scmp.ne.s32.totalorder %s9182_s14, 1 }
 0xf04   : > { %v4905_v49 = vmul.f32 0.0078125, %v4880_v40  ;;  %s9183_s25 = sld [smem:[#allocation35_spill]] (!%p5587_p8)  ;;  %vm5109_vm1 = vcmask (!%p5587_p8), 1040384  }
 0xf05   : > { %v4882_v18 = vpop.xlane.xlu1 %4881 }
 0xf06   : > { %v8940_v60 = vsub.f32 %v8862_v7, %v4905_v49  ;;  %v4906_v54 = vmul.f32 0.0078125, %v4882_v18 }
 0xf08   : > { %v8943_v3 = vsub.f32 %v8866_v57, %v4906_v54  ;;  %v4937_v48 = vmul.f32 %v8940_v60, %v8940_v60 }
 0xf0a   : > { %4959 = vadd.xlane.f32.xlu0 %v4937_v48  ;;  %v4938_v37 = vmul.f32 %v8943_v3, %v8943_v3 }
 0xf0b   : > { %v4884_v24 = vpop.xlane.xlu0 %4883 }
 0xf0c   : > { %v4907_v58 = vmul.f32 0.0078125, %v4884_v24  ;;  %4961 = vadd.xlane.f32.xlu1 %v4938_v37 }
 0xf0d   : > { %v4886_v23 = vpop.xlane.xlu1 %4885 }
 0xf0e   : > { %v8950_v20 = vsub.f32 %v8872_v55, %v4907_v58  ;;  %v4908_v7 = vmul.f32 0.0078125, %v4886_v23 }
 0xf10   : > { %v8953_v63 = vsub.f32 %v8876_v51, %v4908_v7  ;;  %v4939_v57 = vmul.f32 %v8950_v20, %v8950_v20 }
 0xf12   : > { %4963 = vadd.xlane.f32.xlu0 %v4939_v57  ;;  %v4940_v56 = vmul.f32 %v8953_v63, %v8953_v63 }
 0xf13   : > { %v4888_v11 = vpop.xlane.xlu0 %4887 }
 0xf14   : > { %v4909_v38 = vmul.f32 0.0078125, %v4888_v11  ;;  %4965 = vadd.xlane.f32.xlu1 %v4940_v56 }
 0xf15   : > { %v4890_v33 = vpop.xlane.xlu1 %4889 }
 0xf16   : > { %v8960_v30 = vsub.f32 %v8882_v21, %v4909_v38  ;;  %v4910_v55 = vmul.f32 0.0078125, %v4890_v33 }
 0xf18   : > { %v8963_v16 = vsub.f32 %v8886_v50, %v4910_v55  ;;  %v4941_v51 = vmul.f32 %v8960_v30, %v8960_v30 }
 0xf1a   : > { %4967 = vadd.xlane.f32.xlu0 %v4941_v51  ;;  %v4942_v10 = vmul.f32 %v8963_v16, %v8963_v16 }
 0xf1b   : > { %v4892_v26 = vpop.xlane.xlu0 %4891 }
 0xf1c   : > { %v4911_v22 = vmul.f32 0.0078125, %v4892_v26  ;;  %4969 = vadd.xlane.f32.xlu1 %v4942_v10 }
 0xf1d   : > { %v4894_v59 = vpop.xlane.xlu1 %4893 }
 0xf1e   : > { %v8970_v45 = vsub.f32 %v8892_v29, %v4911_v22  ;;  %v4912_v21 = vmul.f32 0.0078125, %v4894_v59 }
 0xf20   : > { %v8973_v6 = vsub.f32 %v8896_v5, %v4912_v21  ;;  %v4943_v50 = vmul.f32 %v8970_v45, %v8970_v45 }
 0xf22   : > { %4971 = vadd.xlane.f32.xlu0 %v4943_v50  ;;  %v4944_v31 = vmul.f32 %v8973_v6, %v8973_v6 }
 0xf23   : > { %v4896_v1 = vpop.xlane.xlu0 %4895 }
 0xf24   : > { %v4913_v61 = vmul.f32 0.0078125, %v4896_v1  ;;  %4973 = vadd.xlane.f32.xlu1 %v4944_v31 }
 0xf25   : > { %v4898_v32 = vpop.xlane.xlu1 %4897 }
 0xf26   : > { %v8980_v41 = vsub.f32 %v8902_v14, %v4913_v61  ;;  %v4914_v29 = vmul.f32 0.0078125, %v4898_v32 }
 0xf28   : > { %v8983_v43 = vsub.f32 %v8906_v34, %v4914_v29  ;;  %v4945_v5 = vmul.f32 %v8980_v41, %v8980_v41 }
 0xf2a   : > { %4975 = vadd.xlane.f32.xlu0 %v4945_v5  ;;  %v4946_v2 = vmul.f32 %v8983_v43, %v8983_v43 }
 0xf2c   : > { %4977 = vadd.xlane.f32.xlu1 %v4946_v2 }
 0xf77   : > { %v4948_v17 = vpop.xlane.xlu0 %4947 }
 0xf78   : > { %v4979_v35 = vmul.f32 0.0078125, %v4948_v17 }
 0xf79   : > { %v4950_v12 = vpop.xlane.xlu1 %4949 }
 0xf7a   : > { %v4995_v4 = vadd.f32 1e-12, %v4979_v35  ;;  %v4980_v14 = vmul.f32 0.0078125, %v4950_v12 }
 0xf7c   : > { %6672 = vrsqrt.f32 %v4995_v4  ;;  %v4996_v46 = vadd.f32 1e-12, %v4980_v14 }
 0xf7e   : > { %6674 = vrsqrt.f32 %v4996_v46 }
 0xf82   : > { %v4952_v34 = vpop.xlane.xlu0 %4951 }
 0xf83   : > { %v4981_v44 = vmul.f32 0.0078125, %v4952_v34 }
 0xf84   : > { %v4954_v8 = vpop.xlane.xlu1 %4953 }
 0xf85   : > { %v4997_v13 = vadd.f32 1e-12, %v4981_v44  ;;  %v4982_v47 = vmul.f32 0.0078125, %v4954_v8 }
 0xf86   : > { %v6673_v9 = vpop.eup %6672 }
 0xf87   : > { %v5027_v0 = vmul.f32 %v6673_v9, %v8910_v53  ;;  %6676 = vrsqrt.f32 %v4997_v13  ;;  %v4998_v40 = vadd.f32 1e-12, %v4982_v47 }
 0xf88   : > { %v6675_v28 = vpop.eup %6674 }
 0xf89   : > { %v5049_v15 = vmul.f32 %v8994_v36, %v5027_v0  ;;  %v5028_v62 = vmul.f32 %v6675_v28, %v8913_v39  ;;  %6678 = vrsqrt.f32 %v4998_v40 }
 0xf8b   : > { %v9007_v49 = vadd.f32 %v9002_v52, %v5049_v15  ;;  %v5050_v53 = vmul.f32 %v8994_v36, %v5028_v62 }
 0xf8c   : > { %v4956_v54 = vpop.xlane.xlu0 %4955 }
 0xf8d   : > { %5087 = vst [vmem:[#allocation2] sm:$0xff] %v9007_v49  ;;  %v5072_v18 = vadd.f32 %v9002_v52, %v5050_v53  ;;  %v4983_v48 = vmul.f32 0.0078125, %v4956_v54 }
 0xf8e   : > { %v4958_v37 = vpop.xlane.xlu1 %4957 }
 0xf8f   : > { %5088 = vst [vmem:[#allocation2 + $0x8] sm:$0xff] %v5072_v18  ;;  %v4999_v24 = vadd.f32 1e-12, %v4983_v48  ;;  %v4984_v58 = vmul.f32 0.0078125, %v4958_v37 }
 0xf91   : > { %v6677_v23 = vpop.eup %6676  ;;  %6680 = vrsqrt.f32 %v4999_v24  ;;  %v5000_v39 = vadd.f32 1e-12, %v4984_v58 }
 0xf92   : > { %v5029_v7 = vmul.f32 %v6677_v23, %v8920_v19 }
 0xf93   : > { %v6679_v57 = vpop.eup %6678  ;;  %6682 = vrsqrt.f32 %v5000_v39 }
 0xf94   : > { %v5051_v56 = vmul.f32 %v8994_v36, %v5029_v7  ;;  %v5030_v11 = vmul.f32 %v6679_v57, %v8923_v25 }
 0xf96   : > { %v5073_v38 = vadd.f32 %v9002_v52, %v5051_v56  ;;  %v5052_v33 = vmul.f32 %v8994_v36, %v5030_v11 }
 0xf97   : > { %v4960_v55 = vpop.xlane.xlu0 %4959 }
 0xf98   : > { %v4985_v51 = vmul.f32 0.0078125, %v4960_v55  ;;  %5089 = vst [vmem:[#allocation2 + $0x10] sm:$0xff] %v5073_v38  ;;  %v5074_v10 = vadd.f32 %v9002_v52, %v5052_v33 }
 0xf99   : > { %v4962_v26 = vpop.xlane.xlu1 %4961 }
 0xf9a   : > { %v5001_v22 = vadd.f32 1e-12, %v4985_v51  ;;  %v4986_v59 = vmul.f32 0.0078125, %v4962_v26  ;;  %5090 = vst [vmem:[#allocation2 + $0x18] sm:$0xff] %v5074_v10 }
 0xf9b   : > { %v6681_v19 = vpop.eup %6680 }
 0xf9c   : > { %6684 = vrsqrt.f32 %v5001_v22  ;;  %v5002_v21 = vadd.f32 1e-12, %v4986_v59  ;;  %v5031_v50 = vmul.f32 %v6681_v19, %v8930_v42 }
 0xf9d   : > { %v6683_v31 = vpop.eup %6682 }
 0xf9e   : > { %6686 = vrsqrt.f32 %v5002_v21  ;;  %v5053_v25 = vmul.f32 %v8994_v36, %v5031_v50  ;;  %v5032_v1 = vmul.f32 %v6683_v31, %v8933_v27 }
 0xf9f   : > { %v4964_v61 = vpop.xlane.xlu0 %4963 }
 0xfa0   : > { %v4987_v32 = vmul.f32 0.0078125, %v4964_v61  ;;  %v5075_v29 = vadd.f32 %v9002_v52, %v5053_v25  ;;  %v5054_v5 = vmul.f32 %v8994_v36, %v5032_v1 }
 0xfa1   : > { %v4966_v2 = vpop.xlane.xlu1 %4965 }
 0xfa2   : > { %v5003_v17 = vadd.f32 1e-12, %v4987_v32  ;;  %v4988_v35 = vmul.f32 0.0078125, %v4966_v2  ;;  %5091 = vst [vmem:[#allocation2 + $0x20] sm:$0xff] %v5075_v29  ;;  %v5076_v12 = vadd.f32 %v9002_v52, %v5054_v5 }
 0xfa4   : > { %6688 = vrsqrt.f32 %v5003_v17  ;;  %v5004_v42 = vadd.f32 1e-12, %v4988_v35  ;;  %5092 = vst [vmem:[#allocation2 + $0x28] sm:$0xff] %v5076_v12 }
 0xfa6   : > { %v6685_v4 = vpop.eup %6684  ;;  %6690 = vrsqrt.f32 %v5004_v42 }
 0xfa7   : > { %v5033_v14 = vmul.f32 %v6685_v4, %v8940_v60  ;;  %v4968_v27 = vpop.xlane.xlu0 %4967  ;;  %v6763_v4 = vmov (!%p5587_p8), 0  }
 0xfa8   : > { %v6687_v46 = vpop.eup %6686  ;;  %v4989_v34 = vmul.f32 0.0078125, %v4968_v27  ;;  %6721 = vset.pattern.permute.xlu0 (!%p5587_p8), %v6763_v4 }
 0xfa9   : > { %v5055_v44 = vmul.f32 %v8994_v36, %v5033_v14  ;;  %v5034_v9 = vmul.f32 %v6687_v46, %v8943_v3  ;;  %v4970_v8 = vpop.xlane.xlu1 %4969 }
 0xfaa   : > { %v5005_v0 = vadd.f32 1e-12, %v4989_v34  ;;  %v4990_v13 = vmul.f32 0.0078125, %v4970_v8 }
 0xfab   : > { %v5077_v47 = vadd.f32 %v9002_v52, %v5055_v44  ;;  %v5056_v28 = vmul.f32 %v8994_v36, %v5034_v9 }
 0xfac   : > { %6692 = vrsqrt.f32 %v5005_v0  ;;  %v5006_v15 = vadd.f32 1e-12, %v4990_v13 }
 0xfad   : > { %5093 = vst [vmem:[#allocation2 + $0x30] sm:$0xff] %v5077_v47  ;;  %v5078_v62 = vadd.f32 %v9002_v52, %v5056_v28 }
 0xfae   : > { %v6689_v60 = vpop.eup %6688  ;;  %6694 = vrsqrt.f32 %v5006_v15 }
 0xfaf   : > { %5094 = vst [vmem:[#allocation2 + $0x38] sm:$0xff] %v5078_v62  ;;  %v5035_v40 = vmul.f32 %v6689_v60, %v8950_v20  ;;  %v4972_v53 = vpop.xlane.xlu0 %4971 }
 0xfb0   : > { %v6691_v18 = vpop.eup %6690  ;;  %v4991_v3 = vmul.f32 0.0078125, %v4972_v53 }
 0xfb1   : > { %v5057_v54 = vmul.f32 %v8994_v36, %v5035_v40  ;;  %v5036_v48 = vmul.f32 %v6691_v18, %v8953_v63  ;;  %v4974_v37 = vpop.xlane.xlu1 %4973 }
 0xfb2   : > { %v5007_v24 = vadd.f32 1e-12, %v4991_v3  ;;  %v4992_v58 = vmul.f32 0.0078125, %v4974_v37 }
 0xfb3   : > { %v5079_v23 = vadd.f32 %v9002_v52, %v5057_v54  ;;  %v5058_v39 = vmul.f32 %v8994_v36, %v5036_v48 }
 0xfb4   : > { %6696 = vrsqrt.f32 %v5007_v24  ;;  %v5008_v7 = vadd.f32 1e-12, %v4992_v58 }
 0xfb5   : > { %5095 = vst [vmem:[#allocation2 + $0x40] sm:$0xff] %v5079_v23  ;;  %v5080_v57 = vadd.f32 %v9002_v52, %v5058_v39 }
 0xfb6   : > { %v6693_v20 = vpop.eup %6692  ;;  %6698 = vrsqrt.f32 %v5008_v7 }
 0xfb7   : > { %5096 = vst [vmem:[#allocation2 + $0x48] sm:$0xff] %v5080_v57  ;;  %v5037_v56 = vmul.f32 %v6693_v20, %v8960_v30  ;;  %v4976_v11 = vpop.xlane.xlu0 %4975 }
 0xfb8   : > { %v6695_v38 = vpop.eup %6694  ;;  %v4993_v63 = vmul.f32 0.0078125, %v4976_v11 }
 0xfb9   : > { %v5059_v33 = vmul.f32 %v8994_v36, %v5037_v56  ;;  %v5038_v55 = vmul.f32 %v6695_v38, %v8963_v16  ;;  %v4978_v51 = vpop.xlane.xlu1 %4977 }
 0xfba   : > { %v5009_v10 = vadd.f32 1e-12, %v4993_v63  ;;  %v4994_v26 = vmul.f32 0.0078125, %v4978_v51 }
 0xfbb   : > { %v5081_v22 = vadd.f32 %v9002_v52, %v5059_v33  ;;  %v5060_v59 = vmul.f32 %v8994_v36, %v5038_v55 }
 0xfbc   : > { %6700 = vrsqrt.f32 %v5009_v10  ;;  %v5010_v19 = vadd.f32 1e-12, %v4994_v26 }
 0xfbd   : > { %5097 = vst [vmem:[#allocation2 + $0x50] sm:$0xff] %v5081_v22  ;;  %v5082_v21 = vadd.f32 %v9002_v52, %v5060_v59 }
 0xfbe   : > { %v6697_v30 = vpop.eup %6696  ;;  %6702 = vrsqrt.f32 %v5010_v19 }
 0xfbf   : > { %5098 = vst [vmem:[#allocation2 + $0x58] sm:$0xff] %v5082_v21  ;;  %v5039_v50 = vmul.f32 %v6697_v30, %v8970_v45 }
 0xfc0   : > { %v6699_v31 = vpop.eup %6698 }
 0xfc1   : > { %v5061_v16 = vmul.f32 %v8994_v36, %v5039_v50  ;;  %v5040_v25 = vmul.f32 %v6699_v31, %v8973_v6 }
 0xfc3   : > { %v5083_v1 = vadd.f32 %v9002_v52, %v5061_v16  ;;  %v5062_v61 = vmul.f32 %v8994_v36, %v5040_v25 }
 0xfc5   : > { %5099 = vst [vmem:[#allocation2 + $0x60] sm:$0xff] %v5083_v1  ;;  %v5084_v32 = vadd.f32 %v9002_v52, %v5062_v61 }
 0xfc6   : > { %v6701_v29 = vpop.eup %6700 }
 0xfc7   : > { %5100 = vst [vmem:[#allocation2 + $0x68] sm:$0xff] %v5084_v32  ;;  %v5041_v5 = vmul.f32 %v6701_v29, %v8980_v41  ;;  %v5107_v41 = vld [vmem:[%s9183_s25] sm:$0x1] (!%p5587_p8) }
 0xfc8   : > { %v6703_v2 = vpop.eup %6702  ;;  %v5108_v42 = vmul.f32 (!%p5587_p8), %v5107_v41, %v9007_v49 }
 0xfc9   : > { %v5063_v17 = vmul.f32 %v8994_v36, %v5041_v5  ;;  %v5042_v45 = vmul.f32 %v6703_v2, %v8983_v43  ;;  %5106 = sbr.rel (%p5587_p8) target bundleno = 4316 (0x10dc), region = 116 }
 0xfca   : > { %v5110_v43 = vsel (!%p5587_p8), %vm5109_vm1, %v5108_v42, 0.0 }
 0xfcb   : > { %v5085_v35 = vadd.f32 %v9002_v52, %v5063_v17  ;;  %v5064_v6 = vmul.f32 %v8994_v36, %v5042_v45  ;;  %5111 = vadd.xlane.f32.xlu0 (!%p5587_p8), %v5110_v43  ;;  %v5113_v36 = vld [vmem:[#allocation3] sm:$0x1] (!%p5587_p8) }
 0xfcd   : > { %5101 = vst [vmem:[#allocation2 + $0x70] sm:$0xff] %v5085_v35  ;;  %v5086_v12 = vadd.f32 %v9002_v52, %v5064_v6 }
 0xfcf   : > { %5102 = vst [vmem:[#allocation2 + $0x78] sm:$0xff] %v5086_v12 }
0x1058   : > { %v5112_v14 = vpop.xlane.xlu0 %5111 }
0x1059   : > { %v5114_v27 = vadd.f32 %v5113_v36, %v5112_v14 }
0x105b   : > { %5117 = vperm.xlu0 %6721, %v5114_v27  }
0x10da   : > { %v5118_v52 = vpop.permute.xlu0 %5117 }
0x10db   : > { %5120 = vst [vmem:[%s945_s15] sm:$0x1] %v5118_v52 }
0x10dc PF: > { %s9185_s29 = sld [smem:[#allocation7_spill]]  ;;  %s9187_s30 = sld [smem:[#allocation6_spill]] }
0x10dd   : > { %s9188_s4 = sld [smem:[#allocation8_spill]]  ;;  %s9189_s0 = sld [smem:[#allocation9_spill]] }
0x10e2   : > { %s34_s23 = sadd.s32 1, %s9185_s29   ;;  %s9186_s29 = sld [smem:[#allocation5_spill]] }
0x10e3   : > { %p31_p9 = scmp.ge.s32.totalorder %s34_s23, 6  }
0x10e5   :  { %33 = sbr.rel (!%p31_p9) target bundleno = 16 (0x10), region = 202 }

</bundles_post_ra>
